<compile_context>
chip_gen: v5e
topology: v5e:2x2
jax: 0.10.0
libtpu: 0.0.40
codegen_flags: <defaults>
</compile_context>

<pallas_src>
import functools

import numpy as np

import jax
import jax.numpy as jnp
from jax.experimental import pallas as pl
from jax.experimental.pallas import tpu as pltpu


# --------------------------------------------------------------------------
# Kernel
# --------------------------------------------------------------------------
def _make_dense_block_kernel(C, stages, H, W, ipt):
    HW = H * W
    Mt = ipt * HW
    PAD = ((W + 1 + 127) // 128) * 128   # 128-aligned store offset, >= halo (W+1)

    def kernel(alpha_ref, mask_ref, x_ref, sa_ref, ba_ref, w1_ref, b1_ref,
               w3_ref, b3_ref, o_ref, halo_ref):
        # Zero the halo scratch once per tile; only its centre [PAD, PAD+Mt) is
        # rewritten each stage, so the halo columns stay zero for shifted reads.
        halo_ref[...] = jnp.zeros(halo_ref.shape, jnp.float32)

        # Hoist the 9 tap masks (validity of each 3x3 tap at every lane).
        taps = []
        for ky in range(3):
            for kx in range(3):
                k = ky * 3 + kx
                shift = (ky - 1) * W + (kx - 1)
                taps.append((k, shift, mask_ref[k]))        # mask: (1, Mt)

        nodes = [x_ref[...]]                                # dense nodes stay on-chip
        for i in range(stages):
            aa = alpha_ref[i, 0]                            # PReLU-a slope (SMEM scalar)
            ab = alpha_ref[i, 1]                            # PReLU-b slope

            # BN-a -> PReLU-a -> 1x1 conv (BN-b pre-folded into w1/b1),
            # accumulated node-by-node (replaces torch.cat(nodes, 1)).
            acc = None
            for j, node in enumerate(nodes):
                h = node * sa_ref[i, j] + ba_ref[i, j]      # (C,Mt)*(C,1)+(C,1)
                h = jnp.where(h >= 0.0, h, aa * h)          # PReLU-a
                part = jnp.dot(w1_ref[i, j], h,
                               preferred_element_type=jnp.float32)
                acc = part if acc is None else acc + part
            y = acc + b1_ref[i]
            y = jnp.where(y >= 0.0, y, ab * y)              # PReLU-b

            # 3x3 SAME conv: write y into the zero-haloed scratch, then
            # accumulate 9 shifted-window (C,C)@(C,Mt) matmuls.
            halo_ref[:, pl.ds(PAD, Mt)] = y
            conv = None
            for k, shift, mask in taps:
                window = halo_ref[:, pl.ds(PAD + shift, Mt)] * mask
                tap = jnp.dot(w3_ref[i, k], window,
                              preferred_element_type=jnp.float32)
                conv = tap if conv is None else conv + tap
            dense = conv + b3_ref[i]
            # TODO(synk): Dropout(p=0.25) is identity in eval mode; training-mode
            # random masking is not implemented.
            nodes.append(dense)

        o_ref[...] = nodes[-1].astype(o_ref.dtype)

    return kernel, PAD


# --------------------------------------------------------------------------
# Parameter packing (fold BN-b into conv1; kernel-layout, fixed shapes)
# --------------------------------------------------------------------------
def _prep_kernel_params(params, C):
    S = len(params)

    def pad_nodes(a, ni):
        if ni == S:
            return a
        return jnp.concatenate(
            [a, jnp.zeros((S - ni,) + a.shape[1:], jnp.float32)], axis=0)

    al, sa, ba, w1, b1, w3, b3 = [], [], [], [], [], [], []
    for i, p in enumerate(params):
        ni = i + 1
        sa.append(pad_nodes(p["scale_a"].reshape(ni, C, 1), ni))
        ba.append(pad_nodes(p["bias_a"].reshape(ni, C, 1), ni))
        w1f = (p["w1"] * p["scale_b"][None, :]).reshape(ni, C, C)    # fold BN-b scale
        w1.append(pad_nodes(jnp.transpose(w1f, (0, 2, 1)), ni))      # (ni, Cout, Cin)
        b1.append((p["b1"] * p["scale_b"] + p["bias_b"]).reshape(C, 1))
        w3.append(jnp.transpose(p["w3"], (0, 1, 3, 2)).reshape(9, C, C))  # (tap,Cout,Cin)
        b3.append(p["b3"].reshape(C, 1))
        al.append(jnp.stack([jnp.asarray(p["alpha_a"], jnp.float32),
                             jnp.asarray(p["alpha_b"], jnp.float32)]))
    return (jnp.stack(al), jnp.stack(sa), jnp.stack(ba), jnp.stack(w1),
            jnp.stack(b1), jnp.stack(w3), jnp.stack(b3))


def _tap_masks(H, W, ipt):
    """Static 3x3-tap validity masks over the flattened (img, h, w) lane axis."""
    Mt = ipt * H * W
    pos = np.arange(Mt)
    hh = (pos // W) % H
    ww = pos % W
    m = np.zeros((9, 1, Mt), np.float32)
    for ky in range(3):
        for kx in range(3):
            dy, dx = ky - 1, kx - 1
            ok = ((hh + dy >= 0) & (hh + dy < H) &
                  (ww + dx >= 0) & (ww + dx < W))
            m[ky * 3 + kx, 0] = ok.astype(np.float32)
    return jnp.asarray(m)


# --------------------------------------------------------------------------
# Forward pass wrapper
# --------------------------------------------------------------------------
def dense_block_forward(x_nchw, params, channels, *, images_per_tile=None):
    N, C, H, W = x_nchw.shape
    assert C == channels
    HW = H * W
    stages = len(params)

    if images_per_tile is None:
        ipt = max(1, min(N, 1024 // HW))          # target ~1024-lane tiles
        while N % ipt:
            ipt -= 1
        if N // ipt < 2 and N >= 2:               # keep >=2 parallel steps (v7x: 2 TCs)
            ipt = max(1, N // 2)
            while N % ipt:
                ipt -= 1
    else:
        ipt = images_per_tile
    assert N % ipt == 0
    Mt = ipt * HW
    grid_n = N // ipt
    assert Mt % 128 == 0 or grid_n == 1, "tile lane width must be a multiple of 128"

    al, sa, ba, w1, b1, w3, b3 = _prep_kernel_params(params, C)
    masks = _tap_masks(H, W, ipt)
    # TODO(synk): on v6e/v7x, storing x/out as bf16 would halve the (already tiny)
    # HBM traffic; kept float32 here to match the PyTorch module's numerics.
    x2d = jnp.transpose(x_nchw, (1, 0, 2, 3)).reshape(C, N * HW).astype(jnp.float32)

    kernel, PAD = _make_dense_block_kernel(C, stages, H, W, ipt)
    full = lambda a: pl.BlockSpec(a.shape, (lambda n, nd=a.ndim: (0,) * nd))

    out2d = pl.pallas_call(
        kernel,
        out_shape=jax.ShapeDtypeStruct((C, N * HW), jnp.float32),
        grid=(grid_n,),
        in_specs=[
            pl.BlockSpec(memory_space=pltpu.MemorySpace.SMEM),   # PReLU alphas
            full(masks),                                         # 3x3 tap masks
            pl.BlockSpec((C, Mt), lambda n: (0, n)),             # input image tile
            full(sa), full(ba), full(w1), full(b1), full(w3), full(b3),
        ],
        out_specs=pl.BlockSpec((C, Mt), lambda n: (0, n)),
        scratch_shapes=[pltpu.VMEM((C, Mt + 2 * PAD), jnp.float32)],
        compiler_params=pltpu.CompilerParams(
            dimension_semantics=("parallel",),
            vmem_limit_bytes=32 * 1024 * 1024),
    )(al, masks, x2d, sa, ba, w1, b1, w3, b3)

    return jnp.transpose(out2d.reshape(C, N, H, W), (1, 0, 2, 3))


# --------------------------------------------------------------------------
# Deterministic eval-mode parameters (BatchNorm folded to scale/bias)
# --------------------------------------------------------------------------
def _fold_bn(gamma, beta, mean, var, eps=1e-5):
    scale = gamma / jnp.sqrt(var + eps)
    return scale, beta - mean * scale


def init_params(key, channels, stages=5):
    params = []
    for i in range(1, stages + 1):
        cin = channels * i
        ks = jax.random.split(jax.random.fold_in(key, i), 12)
        ga = 0.5 + jax.random.uniform(ks[0], (cin,))
        be = 0.1 * jax.random.normal(ks[1], (cin,))
        mu = 0.1 * jax.random.normal(ks[2], (cin,))
        va = 0.5 + jax.random.uniform(ks[3], (cin,))
        scale_a, bias_a = _fold_bn(ga, be, mu, va)
        gb = 0.5 + jax.random.uniform(ks[4], (channels,))
        bb = 0.1 * jax.random.normal(ks[5], (channels,))
        mb = 0.1 * jax.random.normal(ks[6], (channels,))
        vb = 0.5 + jax.random.uniform(ks[7], (channels,))
        scale_b, bias_b = _fold_bn(gb, bb, mb, vb)
        w1 = 0.2 * jax.random.normal(ks[8], (cin, channels), jnp.float32)
        b1 = 0.05 * jax.random.normal(ks[9], (channels,), jnp.float32)
        w3 = 0.2 * jax.random.normal(ks[10], (3, 3, channels, channels), jnp.float32)
        b3 = 0.05 * jax.random.normal(ks[11], (channels,), jnp.float32)
        params.append(dict(
            scale_a=scale_a, bias_a=bias_a, alpha_a=0.25,   # nn.PReLU() default
            w1=w1, b1=b1, scale_b=scale_b, bias_b=bias_b, alpha_b=0.25,
            w3=w3, b3=b3))
    return params


# --------------------------------------------------------------------------
# Pure-JAX reference (same folded params)
# --------------------------------------------------------------------------
def dense_block_ref(x_nchw, params, channels):
    x = jnp.transpose(x_nchw, (0, 2, 3, 1)).astype(jnp.float32)
    nodes = [x]
    dense = x
    for p in params:
        cat = jnp.concatenate(nodes, axis=-1)
        h = cat * p["scale_a"] + p["bias_a"]
        h = jnp.where(h >= 0, h, p["alpha_a"] * h)
        y = jnp.einsum("nhwc,cd->nhwd", h, p["w1"]) + p["b1"]
        y = y * p["scale_b"] + p["bias_b"]
        y = jnp.where(y >= 0, y, p["alpha_b"] * y)
        d = jax.lax.conv_general_dilated(
            y, p["w3"], (1, 1), "SAME",
            dimension_numbers=("NHWC", "HWIO", "NHWC")) + p["b3"]
        dense = d
        nodes.append(dense)
    return jnp.transpose(dense, (0, 3, 1, 2))


if __name__ == "__main__":
    channels, growth_rate = 4, 4
    N, H, W = 2, 16, 16
    key = jax.random.PRNGKey(0)
    kx, kp = jax.random.split(key)
    x = jax.random.normal(kx, (N, channels, H, W), jnp.float32)
    params = init_params(kp, channels)

    fwd = jax.jit(functools.partial(dense_block_forward, channels=channels))
    out = jax.block_until_ready(fwd(x, params))

    ref = dense_block_ref(x, params, channels)
    assert out.shape == (N, channels, H, W)
    assert jnp.allclose(out, ref, rtol=2e-4, atol=2e-4), "mismatch vs reference"
    print("KERNEL_OK")
</pallas_src>

<mosaic_0001>
module attributes {stable_mosaic.version = 11 : i64} {
  func.func @kernel(%arg0: i32, %arg1: memref<5x2xf32, #tpu.memory_space<smem>>, %arg2: memref<9x1x256xf32, #tpu.memory_space<vmem>>, %arg3: memref<4x256xf32, #tpu.memory_space<vmem>>, %arg4: memref<5x5x4x1xf32, #tpu.memory_space<vmem>>, %arg5: memref<5x5x4x1xf32, #tpu.memory_space<vmem>>, %arg6: memref<5x5x4x4xf32, #tpu.memory_space<vmem>>, %arg7: memref<5x4x1xf32, #tpu.memory_space<vmem>>, %arg8: memref<5x9x4x4xf32, #tpu.memory_space<vmem>>, %arg9: memref<5x4x1xf32, #tpu.memory_space<vmem>>, %arg10: memref<4x256xf32, #tpu.memory_space<vmem>>, %arg11: memref<4x512xf32, #tpu.memory_space<vmem>>) attributes {dimension_semantics = [#tpu.dimension_semantics<parallel>], iteration_bounds = array<i64: 2>, scalar_prefetch = 0 : i64, scratch_operands = 1 : i64, tpu.core_type = #tpu.core_type<tc>, window_params = [{transform_indices = @transform_0, window_bounds = array<i64: 5, 2>}, {pipeline_mode = #tpu.pipeline_mode<synchronous>, transform_indices = @transform_1, window_bounds = array<i64: 9, 1, 256>}, {transform_indices = @transform_2, window_bounds = array<i64: 4, 256>}, {pipeline_mode = #tpu.pipeline_mode<synchronous>, transform_indices = @transform_3, window_bounds = array<i64: 5, 5, 4, 1>}, {pipeline_mode = #tpu.pipeline_mode<synchronous>, transform_indices = @transform_4, window_bounds = array<i64: 5, 5, 4, 1>}, {pipeline_mode = #tpu.pipeline_mode<synchronous>, transform_indices = @transform_5, window_bounds = array<i64: 5, 5, 4, 4>}, {pipeline_mode = #tpu.pipeline_mode<synchronous>, transform_indices = @transform_6, window_bounds = array<i64: 5, 4, 1>}, {pipeline_mode = #tpu.pipeline_mode<synchronous>, transform_indices = @transform_7, window_bounds = array<i64: 5, 9, 4, 4>}, {pipeline_mode = #tpu.pipeline_mode<synchronous>, transform_indices = @transform_8, window_bounds = array<i64: 5, 4, 1>}, {transform_indices = @transform_9, window_bounds = array<i64: 4, 256>}]} {
    %cst = arith.constant 0.000000e+00 : f32
    %0 = vector.broadcast %cst : f32 to vector<4x512xf32>
    %c0 = arith.constant 0 : index
    %c0_0 = arith.constant 0 : index
    %1 = vector.load %arg11[%c0, %c0_0] : memref<4x512xf32, #tpu.memory_space<vmem>>, vector<4x512xf32>
    tpu.vector_store %arg11[%c0, %c0_0], %0 {strides = array<i32>} : memref<4x512xf32, #tpu.memory_space<vmem>>, vector<4x512xf32>,
    %c0_1 = arith.constant 0 : index
    %c0_2 = arith.constant 0 : index
    %c0_3 = arith.constant 0 : index
    %2 = vector.load %arg2[%c0_1, %c0_2, %c0_3] : memref<9x1x256xf32, #tpu.memory_space<vmem>>, vector<1x1x256xf32>
    %3 = vector.shape_cast %2 : vector<1x1x256xf32> to vector<1x256xf32>
    %c1 = arith.constant 1 : index
    %c0_4 = arith.constant 0 : index
    %c0_5 = arith.constant 0 : index
    %4 = vector.load %arg2[%c1, %c0_4, %c0_5] : memref<9x1x256xf32, #tpu.memory_space<vmem>>, vector<1x1x256xf32>
    %5 = vector.shape_cast %4 : vector<1x1x256xf32> to vector<1x256xf32>
    %c2 = arith.constant 2 : index
    %c0_6 = arith.constant 0 : index
    %c0_7 = arith.constant 0 : index
    %6 = vector.load %arg2[%c2, %c0_6, %c0_7] : memref<9x1x256xf32, #tpu.memory_space<vmem>>, vector<1x1x256xf32>
    %7 = vector.shape_cast %6 : vector<1x1x256xf32> to vector<1x256xf32>
    %c3 = arith.constant 3 : index
    %c0_8 = arith.constant 0 : index
    %c0_9 = arith.constant 0 : index
    %8 = vector.load %arg2[%c3, %c0_8, %c0_9] : memref<9x1x256xf32, #tpu.memory_space<vmem>>, vector<1x1x256xf32>
    %9 = vector.shape_cast %8 : vector<1x1x256xf32> to vector<1x256xf32>
    %c4 = arith.constant 4 : index
    %c0_10 = arith.constant 0 : index
    %c0_11 = arith.constant 0 : index
    %10 = vector.load %arg2[%c4, %c0_10, %c0_11] : memref<9x1x256xf32, #tpu.memory_space<vmem>>, vector<1x1x256xf32>
    %11 = vector.shape_cast %10 : vector<1x1x256xf32> to vector<1x256xf32>
    %c5 = arith.constant 5 : index
    %c0_12 = arith.constant 0 : index
    %c0_13 = arith.constant 0 : index
    %12 = vector.load %arg2[%c5, %c0_12, %c0_13] : memref<9x1x256xf32, #tpu.memory_space<vmem>>, vector<1x1x256xf32>
    %13 = vector.shape_cast %12 : vector<1x1x256xf32> to vector<1x256xf32>
    %c6 = arith.constant 6 : index
    %c0_14 = arith.constant 0 : index
    %c0_15 = arith.constant 0 : index
    %14 = vector.load %arg2[%c6, %c0_14, %c0_15] : memref<9x1x256xf32, #tpu.memory_space<vmem>>, vector<1x1x256xf32>
    %15 = vector.shape_cast %14 : vector<1x1x256xf32> to vector<1x256xf32>
    %c7 = arith.constant 7 : index
    %c0_16 = arith.constant 0 : index
    %c0_17 = arith.constant 0 : index
    %16 = vector.load %arg2[%c7, %c0_16, %c0_17] : memref<9x1x256xf32, #tpu.memory_space<vmem>>, vector<1x1x256xf32>
    %17 = vector.shape_cast %16 : vector<1x1x256xf32> to vector<1x256xf32>
    %c8 = arith.constant 8 : index
    %c0_18 = arith.constant 0 : index
    %c0_19 = arith.constant 0 : index
    %18 = vector.load %arg2[%c8, %c0_18, %c0_19] : memref<9x1x256xf32, #tpu.memory_space<vmem>>, vector<1x1x256xf32>
    %19 = vector.shape_cast %18 : vector<1x1x256xf32> to vector<1x256xf32>
    %c0_20 = arith.constant 0 : index
    %c0_21 = arith.constant 0 : index
    %20 = vector.load %arg3[%c0_20, %c0_21] : memref<4x256xf32, #tpu.memory_space<vmem>>, vector<4x256xf32>
    %c0_22 = arith.constant 0 : index
    %c0_23 = arith.constant 0 : index
    %21 = memref.load %arg1[%c0_22, %c0_23] : memref<5x2xf32, #tpu.memory_space<smem>>
    %c0_24 = arith.constant 0 : index
    %c1_25 = arith.constant 1 : index
    %22 = memref.load %arg1[%c0_24, %c1_25] : memref<5x2xf32, #tpu.memory_space<smem>>
    %c0_26 = arith.constant 0 : index
    %c0_27 = arith.constant 0 : index
    %c0_28 = arith.constant 0 : index
    %c0_29 = arith.constant 0 : index
    %23 = vector.load %arg4[%c0_26, %c0_27, %c0_28, %c0_29] : memref<5x5x4x1xf32, #tpu.memory_space<vmem>>, vector<1x1x4x1xf32>
    %24 = vector.shape_cast %23 : vector<1x1x4x1xf32> to vector<4x1xf32>
    %25 = vector.broadcast %24 : vector<4x1xf32> to vector<4x256xf32>
    %26 = arith.mulf %20, %25 : vector<4x256xf32>
    %c0_30 = arith.constant 0 : index
    %c0_31 = arith.constant 0 : index
    %c0_32 = arith.constant 0 : index
    %c0_33 = arith.constant 0 : index
    %27 = vector.load %arg5[%c0_30, %c0_31, %c0_32, %c0_33] : memref<5x5x4x1xf32, #tpu.memory_space<vmem>>, vector<1x1x4x1xf32>
    %28 = vector.shape_cast %27 : vector<1x1x4x1xf32> to vector<4x1xf32>
    %29 = vector.broadcast %28 : vector<4x1xf32> to vector<4x256xf32>
    %30 = arith.addf %26, %29 : vector<4x256xf32>
    %cst_34 = arith.constant 0.000000e+00 : f32
    %31 = vector.broadcast %cst_34 : f32 to vector<4x256xf32>
    %32 = arith.cmpf oge, %30, %31 : vector<4x256xf32>
    %33 = vector.broadcast %21 : f32 to vector<4x256xf32>
    %34 = arith.mulf %33, %30 : vector<4x256xf32>
    %35 = arith.select %32, %30, %34 : vector<4x256xi1>, vector<4x256xf32>
    %c0_35 = arith.constant 0 : index
    %c0_36 = arith.constant 0 : index
    %c0_37 = arith.constant 0 : index
    %c0_38 = arith.constant 0 : index
    %36 = vector.load %arg6[%c0_35, %c0_36, %c0_37, %c0_38] : memref<5x5x4x4xf32, #tpu.memory_space<vmem>>, vector<1x1x4x4xf32>
    %37 = vector.shape_cast %36 : vector<1x1x4x4xf32> to vector<4x4xf32>
    %cst_39 = arith.constant dense<0.000000e+00> : vector<4x256xf32>
    %38 = tpu.matmul %37, %35, %cst_39 {dimension_numbers = #tpu.dot_dimension_numbers<[1], [0], [0], [1], [0, 0, 1, 1], [], []>} : vector<4x4xf32>, vector<4x256xf32>, vector<4x256xf32> -> vector<4x256xf32>
    %c0_40 = arith.constant 0 : index
    %c0_41 = arith.constant 0 : index
    %c0_42 = arith.constant 0 : index
    %39 = vector.load %arg7[%c0_40, %c0_41, %c0_42] : memref<5x4x1xf32, #tpu.memory_space<vmem>>, vector<1x4x1xf32>
    %40 = vector.shape_cast %39 : vector<1x4x1xf32> to vector<4x1xf32>
    %41 = vector.broadcast %40 : vector<4x1xf32> to vector<4x256xf32>
    %42 = arith.addf %38, %41 : vector<4x256xf32>
    %cst_43 = arith.constant 0.000000e+00 : f32
    %43 = vector.broadcast %cst_43 : f32 to vector<4x256xf32>
    %44 = arith.cmpf oge, %42, %43 : vector<4x256xf32>
    %45 = vector.broadcast %22 : f32 to vector<4x256xf32>
    %46 = arith.mulf %45, %42 : vector<4x256xf32>
    %47 = arith.select %44, %42, %46 : vector<4x256xi1>, vector<4x256xf32>
    %c0_44 = arith.constant 0 : index
    %c128 = arith.constant 128 : index
    %48 = vector.load %arg11[%c0_44, %c128] : memref<4x512xf32, #tpu.memory_space<vmem>>, vector<4x256xf32>
    tpu.vector_store %arg11[%c0_44, %c128], %47 {strides = array<i32>} : memref<4x512xf32, #tpu.memory_space<vmem>>, vector<4x256xf32>,
    %c0_45 = arith.constant 0 : index
    %c111 = arith.constant 111 : index
    %49 = vector.load %arg11[%c0_45, %c111] : memref<4x512xf32, #tpu.memory_space<vmem>>, vector<4x256xf32>
    %50 = vector.broadcast %3 : vector<1x256xf32> to vector<4x256xf32>
    %51 = arith.mulf %49, %50 : vector<4x256xf32>
    %c0_46 = arith.constant 0 : index
    %c0_47 = arith.constant 0 : index
    %c0_48 = arith.constant 0 : index
    %c0_49 = arith.constant 0 : index
    %52 = vector.load %arg8[%c0_46, %c0_47, %c0_48, %c0_49] : memref<5x9x4x4xf32, #tpu.memory_space<vmem>>, vector<1x1x4x4xf32>
    %53 = vector.shape_cast %52 : vector<1x1x4x4xf32> to vector<4x4xf32>
    %cst_50 = arith.constant dense<0.000000e+00> : vector<4x256xf32>
    %54 = tpu.matmul %53, %51, %cst_50 {dimension_numbers = #tpu.dot_dimension_numbers<[1], [0], [0], [1], [0, 0, 1, 1], [], []>} : vector<4x4xf32>, vector<4x256xf32>, vector<4x256xf32> -> vector<4x256xf32>
    %c0_51 = arith.constant 0 : index
    %c112 = arith.constant 112 : index
    %55 = vector.load %arg11[%c0_51, %c112] : memref<4x512xf32, #tpu.memory_space<vmem>>, vector<4x256xf32>
    %56 = vector.broadcast %5 : vector<1x256xf32> to vector<4x256xf32>
    %57 = arith.mulf %55, %56 : vector<4x256xf32>
    %c0_52 = arith.constant 0 : index
    %c1_53 = arith.constant 1 : index
    %c0_54 = arith.constant 0 : index
    %c0_55 = arith.constant 0 : index
    %58 = vector.load %arg8[%c0_52, %c1_53, %c0_54, %c0_55] : memref<5x9x4x4xf32, #tpu.memory_space<vmem>>, vector<1x1x4x4xf32>
    %59 = vector.shape_cast %58 : vector<1x1x4x4xf32> to vector<4x4xf32>
    %cst_56 = arith.constant dense<0.000000e+00> : vector<4x256xf32>
    %60 = tpu.matmul %59, %57, %cst_56 {dimension_numbers = #tpu.dot_dimension_numbers<[1], [0], [0], [1], [0, 0, 1, 1], [], []>} : vector<4x4xf32>, vector<4x256xf32>, vector<4x256xf32> -> vector<4x256xf32>
    %61 = arith.addf %54, %60 : vector<4x256xf32>
    %c0_57 = arith.constant 0 : index
    %c113 = arith.constant 113 : index
    %62 = vector.load %arg11[%c0_57, %c113] : memref<4x512xf32, #tpu.memory_space<vmem>>, vector<4x256xf32>
    %63 = vector.broadcast %7 : vector<1x256xf32> to vector<4x256xf32>
    %64 = arith.mulf %62, %63 : vector<4x256xf32>
    %c0_58 = arith.constant 0 : index
    %c2_59 = arith.constant 2 : index
    %c0_60 = arith.constant 0 : index
    %c0_61 = arith.constant 0 : index
    %65 = vector.load %arg8[%c0_58, %c2_59, %c0_60, %c0_61] : memref<5x9x4x4xf32, #tpu.memory_space<vmem>>, vector<1x1x4x4xf32>
    %66 = vector.shape_cast %65 : vector<1x1x4x4xf32> to vector<4x4xf32>
    %cst_62 = arith.constant dense<0.000000e+00> : vector<4x256xf32>
    %67 = tpu.matmul %66, %64, %cst_62 {dimension_numbers = #tpu.dot_dimension_numbers<[1], [0], [0], [1], [0, 0, 1, 1], [], []>} : vector<4x4xf32>, vector<4x256xf32>, vector<4x256xf32> -> vector<4x256xf32>
    %68 = arith.addf %61, %67 : vector<4x256xf32>
    %c0_63 = arith.constant 0 : index
    %c127 = arith.constant 127 : index
    %69 = vector.load %arg11[%c0_63, %c127] : memref<4x512xf32, #tpu.memory_space<vmem>>, vector<4x256xf32>
    %70 = vector.broadcast %9 : vector<1x256xf32> to vector<4x256xf32>
    %71 = arith.mulf %69, %70 : vector<4x256xf32>
    %c0_64 = arith.constant 0 : index
    %c3_65 = arith.constant 3 : index
    %c0_66 = arith.constant 0 : index
    %c0_67 = arith.constant 0 : index
    %72 = vector.load %arg8[%c0_64, %c3_65, %c0_66, %c0_67] : memref<5x9x4x4xf32, #tpu.memory_space<vmem>>, vector<1x1x4x4xf32>
    %73 = vector.shape_cast %72 : vector<1x1x4x4xf32> to vector<4x4xf32>
    %cst_68 = arith.constant dense<0.000000e+00> : vector<4x256xf32>
    %74 = tpu.matmul %73, %71, %cst_68 {dimension_numbers = #tpu.dot_dimension_numbers<[1], [0], [0], [1], [0, 0, 1, 1], [], []>} : vector<4x4xf32>, vector<4x256xf32>, vector<4x256xf32> -> vector<4x256xf32>
    %75 = arith.addf %68, %74 : vector<4x256xf32>
    %c0_69 = arith.constant 0 : index
    %c128_70 = arith.constant 128 : index
    %76 = vector.load %arg11[%c0_69, %c128_70] : memref<4x512xf32, #tpu.memory_space<vmem>>, vector<4x256xf32>
    %77 = vector.broadcast %11 : vector<1x256xf32> to vector<4x256xf32>
    %78 = arith.mulf %76, %77 : vector<4x256xf32>
    %c0_71 = arith.constant 0 : index
    %c4_72 = arith.constant 4 : index
    %c0_73 = arith.constant 0 : index
    %c0_74 = arith.constant 0 : index
    %79 = vector.load %arg8[%c0_71, %c4_72, %c0_73, %c0_74] : memref<5x9x4x4xf32, #tpu.memory_space<vmem>>, vector<1x1x4x4xf32>
    %80 = vector.shape_cast %79 : vector<1x1x4x4xf32> to vector<4x4xf32>
    %cst_75 = arith.constant dense<0.000000e+00> : vector<4x256xf32>
    %81 = tpu.matmul %80, %78, %cst_75 {dimension_numbers = #tpu.dot_dimension_numbers<[1], [0], [0], [1], [0, 0, 1, 1], [], []>} : vector<4x4xf32>, vector<4x256xf32>, vector<4x256xf32> -> vector<4x256xf32>
    %82 = arith.addf %75, %81 : vector<4x256xf32>
    %c0_76 = arith.constant 0 : index
    %c129 = arith.constant 129 : index
    %83 = vector.load %arg11[%c0_76, %c129] : memref<4x512xf32, #tpu.memory_space<vmem>>, vector<4x256xf32>
    %84 = vector.broadcast %13 : vector<1x256xf32> to vector<4x256xf32>
    %85 = arith.mulf %83, %84 : vector<4x256xf32>
    %c0_77 = arith.constant 0 : index
    %c5_78 = arith.constant 5 : index
    %c0_79 = arith.constant 0 : index
    %c0_80 = arith.constant 0 : index
    %86 = vector.load %arg8[%c0_77, %c5_78, %c0_79, %c0_80] : memref<5x9x4x4xf32, #tpu.memory_space<vmem>>, vector<1x1x4x4xf32>
    %87 = vector.shape_cast %86 : vector<1x1x4x4xf32> to vector<4x4xf32>
    %cst_81 = arith.constant dense<0.000000e+00> : vector<4x256xf32>
    %88 = tpu.matmul %87, %85, %cst_81 {dimension_numbers = #tpu.dot_dimension_numbers<[1], [0], [0], [1], [0, 0, 1, 1], [], []>} : vector<4x4xf32>, vector<4x256xf32>, vector<4x256xf32> -> vector<4x256xf32>
    %89 = arith.addf %82, %88 : vector<4x256xf32>
    %c0_82 = arith.constant 0 : index
    %c143 = arith.constant 143 : index
    %90 = vector.load %arg11[%c0_82, %c143] : memref<4x512xf32, #tpu.memory_space<vmem>>, vector<4x256xf32>
    %91 = vector.broadcast %15 : vector<1x256xf32> to vector<4x256xf32>
    %92 = arith.mulf %90, %91 : vector<4x256xf32>
    %c0_83 = arith.constant 0 : index
    %c6_84 = arith.constant 6 : index
    %c0_85 = arith.constant 0 : index
    %c0_86 = arith.constant 0 : index
    %93 = vector.load %arg8[%c0_83, %c6_84, %c0_85, %c0_86] : memref<5x9x4x4xf32, #tpu.memory_space<vmem>>, vector<1x1x4x4xf32>
    %94 = vector.shape_cast %93 : vector<1x1x4x4xf32> to vector<4x4xf32>
    %cst_87 = arith.constant dense<0.000000e+00> : vector<4x256xf32>
    %95 = tpu.matmul %94, %92, %cst_87 {dimension_numbers = #tpu.dot_dimension_numbers<[1], [0], [0], [1], [0, 0, 1, 1], [], []>} : vector<4x4xf32>, vector<4x256xf32>, vector<4x256xf32> -> vector<4x256xf32>
    %96 = arith.addf %89, %95 : vector<4x256xf32>
    %c0_88 = arith.constant 0 : index
    %c144 = arith.constant 144 : index
    %97 = vector.load %arg11[%c0_88, %c144] : memref<4x512xf32, #tpu.memory_space<vmem>>, vector<4x256xf32>
    %98 = vector.broadcast %17 : vector<1x256xf32> to vector<4x256xf32>
    %99 = arith.mulf %97, %98 : vector<4x256xf32>
    %c0_89 = arith.constant 0 : index
    %c7_90 = arith.constant 7 : index
    %c0_91 = arith.constant 0 : index
    %c0_92 = arith.constant 0 : index
    %100 = vector.load %arg8[%c0_89, %c7_90, %c0_91, %c0_92] : memref<5x9x4x4xf32, #tpu.memory_space<vmem>>, vector<1x1x4x4xf32>
    %101 = vector.shape_cast %100 : vector<1x1x4x4xf32> to vector<4x4xf32>
    %cst_93 = arith.constant dense<0.000000e+00> : vector<4x256xf32>
    %102 = tpu.matmul %101, %99, %cst_93 {dimension_numbers = #tpu.dot_dimension_numbers<[1], [0], [0], [1], [0, 0, 1, 1], [], []>} : vector<4x4xf32>, vector<4x256xf32>, vector<4x256xf32> -> vector<4x256xf32>
    %103 = arith.addf %96, %102 : vector<4x256xf32>
    %c0_94 = arith.constant 0 : index
    %c145 = arith.constant 145 : index
    %104 = vector.load %arg11[%c0_94, %c145] : memref<4x512xf32, #tpu.memory_space<vmem>>, vector<4x256xf32>
    %105 = vector.broadcast %19 : vector<1x256xf32> to vector<4x256xf32>
    %106 = arith.mulf %104, %105 : vector<4x256xf32>
    %c0_95 = arith.constant 0 : index
    %c8_96 = arith.constant 8 : index
    %c0_97 = arith.constant 0 : index
    %c0_98 = arith.constant 0 : index
    %107 = vector.load %arg8[%c0_95, %c8_96, %c0_97, %c0_98] : memref<5x9x4x4xf32, #tpu.memory_space<vmem>>, vector<1x1x4x4xf32>
    %108 = vector.shape_cast %107 : vector<1x1x4x4xf32> to vector<4x4xf32>
    %cst_99 = arith.constant dense<0.000000e+00> : vector<4x256xf32>
    %109 = tpu.matmul %108, %106, %cst_99 {dimension_numbers = #tpu.dot_dimension_numbers<[1], [0], [0], [1], [0, 0, 1, 1], [], []>} : vector<4x4xf32>, vector<4x256xf32>, vector<4x256xf32> -> vector<4x256xf32>
    %110 = arith.addf %103, %109 : vector<4x256xf32>
    %c0_100 = arith.constant 0 : index
    %c0_101 = arith.constant 0 : index
    %c0_102 = arith.constant 0 : index
    %111 = vector.load %arg9[%c0_100, %c0_101, %c0_102] : memref<5x4x1xf32, #tpu.memory_space<vmem>>, vector<1x4x1xf32>
    %112 = vector.shape_cast %111 : vector<1x4x1xf32> to vector<4x1xf32>
    %113 = vector.broadcast %112 : vector<4x1xf32> to vector<4x256xf32>
    %114 = arith.addf %110, %113 : vector<4x256xf32>
    %c1_103 = arith.constant 1 : index
    %c0_104 = arith.constant 0 : index
    %115 = memref.load %arg1[%c1_103, %c0_104] : memref<5x2xf32, #tpu.memory_space<smem>>
    %c1_105 = arith.constant 1 : index
    %c1_106 = arith.constant 1 : index
    %116 = memref.load %arg1[%c1_105, %c1_106] : memref<5x2xf32, #tpu.memory_space<smem>>
    %c1_107 = arith.constant 1 : index
    %c0_108 = arith.constant 0 : index
    %c0_109 = arith.constant 0 : index
    %c0_110 = arith.constant 0 : index
    %117 = vector.load %arg4[%c1_107, %c0_108, %c0_109, %c0_110] : memref<5x5x4x1xf32, #tpu.memory_space<vmem>>, vector<1x1x4x1xf32>
    %118 = vector.shape_cast %117 : vector<1x1x4x1xf32> to vector<4x1xf32>
    %119 = vector.broadcast %118 : vector<4x1xf32> to vector<4x256xf32>
    %120 = arith.mulf %20, %119 : vector<4x256xf32>
    %c1_111 = arith.constant 1 : index
    %c0_112 = arith.constant 0 : index
    %c0_113 = arith.constant 0 : index
    %c0_114 = arith.constant 0 : index
    %121 = vector.load %arg5[%c1_111, %c0_112, %c0_113, %c0_114] : memref<5x5x4x1xf32, #tpu.memory_space<vmem>>, vector<1x1x4x1xf32>
    %122 = vector.shape_cast %121 : vector<1x1x4x1xf32> to vector<4x1xf32>
    %123 = vector.broadcast %122 : vector<4x1xf32> to vector<4x256xf32>
    %124 = arith.addf %120, %123 : vector<4x256xf32>
    %cst_115 = arith.constant 0.000000e+00 : f32
    %125 = vector.broadcast %cst_115 : f32 to vector<4x256xf32>
    %126 = arith.cmpf oge, %124, %125 : vector<4x256xf32>
    %127 = vector.broadcast %115 : f32 to vector<4x256xf32>
    %128 = arith.mulf %127, %124 : vector<4x256xf32>
    %129 = arith.select %126, %124, %128 : vector<4x256xi1>, vector<4x256xf32>
    %c1_116 = arith.constant 1 : index
    %c0_117 = arith.constant 0 : index
    %c0_118 = arith.constant 0 : index
    %c0_119 = arith.constant 0 : index
    %130 = vector.load %arg6[%c1_116, %c0_117, %c0_118, %c0_119] : memref<5x5x4x4xf32, #tpu.memory_space<vmem>>, vector<1x1x4x4xf32>
    %131 = vector.shape_cast %130 : vector<1x1x4x4xf32> to vector<4x4xf32>
    %cst_120 = arith.constant dense<0.000000e+00> : vector<4x256xf32>
    %132 = tpu.matmul %131, %129, %cst_120 {dimension_numbers = #tpu.dot_dimension_numbers<[1], [0], [0], [1], [0, 0, 1, 1], [], []>} : vector<4x4xf32>, vector<4x256xf32>, vector<4x256xf32> -> vector<4x256xf32>
    %c1_121 = arith.constant 1 : index
    %c1_122 = arith.constant 1 : index
    %c0_123 = arith.constant 0 : index
    %c0_124 = arith.constant 0 : index
    %133 = vector.load %arg4[%c1_121, %c1_122, %c0_123, %c0_124] : memref<5x5x4x1xf32, #tpu.memory_space<vmem>>, vector<1x1x4x1xf32>
    %134 = vector.shape_cast %133 : vector<1x1x4x1xf32> to vector<4x1xf32>
    %135 = vector.broadcast %134 : vector<4x1xf32> to vector<4x256xf32>
    %136 = arith.mulf %114, %135 : vector<4x256xf32>
    %c1_125 = arith.constant 1 : index
    %c1_126 = arith.constant 1 : index
    %c0_127 = arith.constant 0 : index
    %c0_128 = arith.constant 0 : index
    %137 = vector.load %arg5[%c1_125, %c1_126, %c0_127, %c0_128] : memref<5x5x4x1xf32, #tpu.memory_space<vmem>>, vector<1x1x4x1xf32>
    %138 = vector.shape_cast %137 : vector<1x1x4x1xf32> to vector<4x1xf32>
    %139 = vector.broadcast %138 : vector<4x1xf32> to vector<4x256xf32>
    %140 = arith.addf %136, %139 : vector<4x256xf32>
    %cst_129 = arith.constant 0.000000e+00 : f32
    %141 = vector.broadcast %cst_129 : f32 to vector<4x256xf32>
    %142 = arith.cmpf oge, %140, %141 : vector<4x256xf32>
    %143 = vector.broadcast %115 : f32 to vector<4x256xf32>
    %144 = arith.mulf %143, %140 : vector<4x256xf32>
    %145 = arith.select %142, %140, %144 : vector<4x256xi1>, vector<4x256xf32>
    %c1_130 = arith.constant 1 : index
    %c1_131 = arith.constant 1 : index
    %c0_132 = arith.constant 0 : index
    %c0_133 = arith.constant 0 : index
    %146 = vector.load %arg6[%c1_130, %c1_131, %c0_132, %c0_133] : memref<5x5x4x4xf32, #tpu.memory_space<vmem>>, vector<1x1x4x4xf32>
    %147 = vector.shape_cast %146 : vector<1x1x4x4xf32> to vector<4x4xf32>
    %cst_134 = arith.constant dense<0.000000e+00> : vector<4x256xf32>
    %148 = tpu.matmul %147, %145, %cst_134 {dimension_numbers = #tpu.dot_dimension_numbers<[1], [0], [0], [1], [0, 0, 1, 1], [], []>} : vector<4x4xf32>, vector<4x256xf32>, vector<4x256xf32> -> vector<4x256xf32>
    %149 = arith.addf %132, %148 : vector<4x256xf32>
    %c1_135 = arith.constant 1 : index
    %c0_136 = arith.constant 0 : index
    %c0_137 = arith.constant 0 : index
    %150 = vector.load %arg7[%c1_135, %c0_136, %c0_137] : memref<5x4x1xf32, #tpu.memory_space<vmem>>, vector<1x4x1xf32>
    %151 = vector.shape_cast %150 : vector<1x4x1xf32> to vector<4x1xf32>
    %152 = vector.broadcast %151 : vector<4x1xf32> to vector<4x256xf32>
    %153 = arith.addf %149, %152 : vector<4x256xf32>
    %cst_138 = arith.constant 0.000000e+00 : f32
    %154 = vector.broadcast %cst_138 : f32 to vector<4x256xf32>
    %155 = arith.cmpf oge, %153, %154 : vector<4x256xf32>
    %156 = vector.broadcast %116 : f32 to vector<4x256xf32>
    %157 = arith.mulf %156, %153 : vector<4x256xf32>
    %158 = arith.select %155, %153, %157 : vector<4x256xi1>, vector<4x256xf32>
    %c0_139 = arith.constant 0 : index
    %c128_140 = arith.constant 128 : index
    %159 = vector.load %arg11[%c0_139, %c128_140] : memref<4x512xf32, #tpu.memory_space<vmem>>, vector<4x256xf32>
    tpu.vector_store %arg11[%c0_139, %c128_140], %158 {strides = array<i32>} : memref<4x512xf32, #tpu.memory_space<vmem>>, vector<4x256xf32>,
    %c0_141 = arith.constant 0 : index
    %c111_142 = arith.constant 111 : index
    %160 = vector.load %arg11[%c0_141, %c111_142] : memref<4x512xf32, #tpu.memory_space<vmem>>, vector<4x256xf32>
    %161 = vector.broadcast %3 : vector<1x256xf32> to vector<4x256xf32>
    %162 = arith.mulf %160, %161 : vector<4x256xf32>
    %c1_143 = arith.constant 1 : index
    %c0_144 = arith.constant 0 : index
    %c0_145 = arith.constant 0 : index
    %c0_146 = arith.constant 0 : index
    %163 = vector.load %arg8[%c1_143, %c0_144, %c0_145, %c0_146] : memref<5x9x4x4xf32, #tpu.memory_space<vmem>>, vector<1x1x4x4xf32>
    %164 = vector.shape_cast %163 : vector<1x1x4x4xf32> to vector<4x4xf32>
    %cst_147 = arith.constant dense<0.000000e+00> : vector<4x256xf32>
    %165 = tpu.matmul %164, %162, %cst_147 {dimension_numbers = #tpu.dot_dimension_numbers<[1], [0], [0], [1], [0, 0, 1, 1], [], []>} : vector<4x4xf32>, vector<4x256xf32>, vector<4x256xf32> -> vector<4x256xf32>
    %c0_148 = arith.constant 0 : index
    %c112_149 = arith.constant 112 : index
    %166 = vector.load %arg11[%c0_148, %c112_149] : memref<4x512xf32, #tpu.memory_space<vmem>>, vector<4x256xf32>
    %167 = vector.broadcast %5 : vector<1x256xf32> to vector<4x256xf32>
    %168 = arith.mulf %166, %167 : vector<4x256xf32>
    %c1_150 = arith.constant 1 : index
    %c1_151 = arith.constant 1 : index
    %c0_152 = arith.constant 0 : index
    %c0_153 = arith.constant 0 : index
    %169 = vector.load %arg8[%c1_150, %c1_151, %c0_152, %c0_153] : memref<5x9x4x4xf32, #tpu.memory_space<vmem>>, vector<1x1x4x4xf32>
    %170 = vector.shape_cast %169 : vector<1x1x4x4xf32> to vector<4x4xf32>
    %cst_154 = arith.constant dense<0.000000e+00> : vector<4x256xf32>
    %171 = tpu.matmul %170, %168, %cst_154 {dimension_numbers = #tpu.dot_dimension_numbers<[1], [0], [0], [1], [0, 0, 1, 1], [], []>} : vector<4x4xf32>, vector<4x256xf32>, vector<4x256xf32> -> vector<4x256xf32>
    %172 = arith.addf %165, %171 : vector<4x256xf32>
    %c0_155 = arith.constant 0 : index
    %c113_156 = arith.constant 113 : index
    %173 = vector.load %arg11[%c0_155, %c113_156] : memref<4x512xf32, #tpu.memory_space<vmem>>, vector<4x256xf32>
    %174 = vector.broadcast %7 : vector<1x256xf32> to vector<4x256xf32>
    %175 = arith.mulf %173, %174 : vector<4x256xf32>
    %c1_157 = arith.constant 1 : index
    %c2_158 = arith.constant 2 : index
    %c0_159 = arith.constant 0 : index
    %c0_160 = arith.constant 0 : index
    %176 = vector.load %arg8[%c1_157, %c2_158, %c0_159, %c0_160] : memref<5x9x4x4xf32, #tpu.memory_space<vmem>>, vector<1x1x4x4xf32>
    %177 = vector.shape_cast %176 : vector<1x1x4x4xf32> to vector<4x4xf32>
    %cst_161 = arith.constant dense<0.000000e+00> : vector<4x256xf32>
    %178 = tpu.matmul %177, %175, %cst_161 {dimension_numbers = #tpu.dot_dimension_numbers<[1], [0], [0], [1], [0, 0, 1, 1], [], []>} : vector<4x4xf32>, vector<4x256xf32>, vector<4x256xf32> -> vector<4x256xf32>
    %179 = arith.addf %172, %178 : vector<4x256xf32>
    %c0_162 = arith.constant 0 : index
    %c127_163 = arith.constant 127 : index
    %180 = vector.load %arg11[%c0_162, %c127_163] : memref<4x512xf32, #tpu.memory_space<vmem>>, vector<4x256xf32>
    %181 = vector.broadcast %9 : vector<1x256xf32> to vector<4x256xf32>
    %182 = arith.mulf %180, %181 : vector<4x256xf32>
    %c1_164 = arith.constant 1 : index
    %c3_165 = arith.constant 3 : index
    %c0_166 = arith.constant 0 : index
    %c0_167 = arith.constant 0 : index
    %183 = vector.load %arg8[%c1_164, %c3_165, %c0_166, %c0_167] : memref<5x9x4x4xf32, #tpu.memory_space<vmem>>, vector<1x1x4x4xf32>
    %184 = vector.shape_cast %183 : vector<1x1x4x4xf32> to vector<4x4xf32>
    %cst_168 = arith.constant dense<0.000000e+00> : vector<4x256xf32>
    %185 = tpu.matmul %184, %182, %cst_168 {dimension_numbers = #tpu.dot_dimension_numbers<[1], [0], [0], [1], [0, 0, 1, 1], [], []>} : vector<4x4xf32>, vector<4x256xf32>, vector<4x256xf32> -> vector<4x256xf32>
    %186 = arith.addf %179, %185 : vector<4x256xf32>
    %c0_169 = arith.constant 0 : index
    %c128_170 = arith.constant 128 : index
    %187 = vector.load %arg11[%c0_169, %c128_170] : memref<4x512xf32, #tpu.memory_space<vmem>>, vector<4x256xf32>
    %188 = vector.broadcast %11 : vector<1x256xf32> to vector<4x256xf32>
    %189 = arith.mulf %187, %188 : vector<4x256xf32>
    %c1_171 = arith.constant 1 : index
    %c4_172 = arith.constant 4 : index
    %c0_173 = arith.constant 0 : index
    %c0_174 = arith.constant 0 : index
    %190 = vector.load %arg8[%c1_171, %c4_172, %c0_173, %c0_174] : memref<5x9x4x4xf32, #tpu.memory_space<vmem>>, vector<1x1x4x4xf32>
    %191 = vector.shape_cast %190 : vector<1x1x4x4xf32> to vector<4x4xf32>
    %cst_175 = arith.constant dense<0.000000e+00> : vector<4x256xf32>
    %192 = tpu.matmul %191, %189, %cst_175 {dimension_numbers = #tpu.dot_dimension_numbers<[1], [0], [0], [1], [0, 0, 1, 1], [], []>} : vector<4x4xf32>, vector<4x256xf32>, vector<4x256xf32> -> vector<4x256xf32>
    %193 = arith.addf %186, %192 : vector<4x256xf32>
    %c0_176 = arith.constant 0 : index
    %c129_177 = arith.constant 129 : index
    %194 = vector.load %arg11[%c0_176, %c129_177] : memref<4x512xf32, #tpu.memory_space<vmem>>, vector<4x256xf32>
    %195 = vector.broadcast %13 : vector<1x256xf32> to vector<4x256xf32>
    %196 = arith.mulf %194, %195 : vector<4x256xf32>
    %c1_178 = arith.constant 1 : index
    %c5_179 = arith.constant 5 : index
    %c0_180 = arith.constant 0 : index
    %c0_181 = arith.constant 0 : index
    %197 = vector.load %arg8[%c1_178, %c5_179, %c0_180, %c0_181] : memref<5x9x4x4xf32, #tpu.memory_space<vmem>>, vector<1x1x4x4xf32>
    %198 = vector.shape_cast %197 : vector<1x1x4x4xf32> to vector<4x4xf32>
    %cst_182 = arith.constant dense<0.000000e+00> : vector<4x256xf32>
    %199 = tpu.matmul %198, %196, %cst_182 {dimension_numbers = #tpu.dot_dimension_numbers<[1], [0], [0], [1], [0, 0, 1, 1], [], []>} : vector<4x4xf32>, vector<4x256xf32>, vector<4x256xf32> -> vector<4x256xf32>
    %200 = arith.addf %193, %199 : vector<4x256xf32>
    %c0_183 = arith.constant 0 : index
    %c143_184 = arith.constant 143 : index
    %201 = vector.load %arg11[%c0_183, %c143_184] : memref<4x512xf32, #tpu.memory_space<vmem>>, vector<4x256xf32>
    %202 = vector.broadcast %15 : vector<1x256xf32> to vector<4x256xf32>
    %203 = arith.mulf %201, %202 : vector<4x256xf32>
    %c1_185 = arith.constant 1 : index
    %c6_186 = arith.constant 6 : index
    %c0_187 = arith.constant 0 : index
    %c0_188 = arith.constant 0 : index
    %204 = vector.load %arg8[%c1_185, %c6_186, %c0_187, %c0_188] : memref<5x9x4x4xf32, #tpu.memory_space<vmem>>, vector<1x1x4x4xf32>
    %205 = vector.shape_cast %204 : vector<1x1x4x4xf32> to vector<4x4xf32>
    %cst_189 = arith.constant dense<0.000000e+00> : vector<4x256xf32>
    %206 = tpu.matmul %205, %203, %cst_189 {dimension_numbers = #tpu.dot_dimension_numbers<[1], [0], [0], [1], [0, 0, 1, 1], [], []>} : vector<4x4xf32>, vector<4x256xf32>, vector<4x256xf32> -> vector<4x256xf32>
    %207 = arith.addf %200, %206 : vector<4x256xf32>
    %c0_190 = arith.constant 0 : index
    %c144_191 = arith.constant 144 : index
    %208 = vector.load %arg11[%c0_190, %c144_191] : memref<4x512xf32, #tpu.memory_space<vmem>>, vector<4x256xf32>
    %209 = vector.broadcast %17 : vector<1x256xf32> to vector<4x256xf32>
    %210 = arith.mulf %208, %209 : vector<4x256xf32>
    %c1_192 = arith.constant 1 : index
    %c7_193 = arith.constant 7 : index
    %c0_194 = arith.constant 0 : index
    %c0_195 = arith.constant 0 : index
    %211 = vector.load %arg8[%c1_192, %c7_193, %c0_194, %c0_195] : memref<5x9x4x4xf32, #tpu.memory_space<vmem>>, vector<1x1x4x4xf32>
    %212 = vector.shape_cast %211 : vector<1x1x4x4xf32> to vector<4x4xf32>
    %cst_196 = arith.constant dense<0.000000e+00> : vector<4x256xf32>
    %213 = tpu.matmul %212, %210, %cst_196 {dimension_numbers = #tpu.dot_dimension_numbers<[1], [0], [0], [1], [0, 0, 1, 1], [], []>} : vector<4x4xf32>, vector<4x256xf32>, vector<4x256xf32> -> vector<4x256xf32>
    %214 = arith.addf %207, %213 : vector<4x256xf32>
    %c0_197 = arith.constant 0 : index
    %c145_198 = arith.constant 145 : index
    %215 = vector.load %arg11[%c0_197, %c145_198] : memref<4x512xf32, #tpu.memory_space<vmem>>, vector<4x256xf32>
    %216 = vector.broadcast %19 : vector<1x256xf32> to vector<4x256xf32>
    %217 = arith.mulf %215, %216 : vector<4x256xf32>
    %c1_199 = arith.constant 1 : index
    %c8_200 = arith.constant 8 : index
    %c0_201 = arith.constant 0 : index
    %c0_202 = arith.constant 0 : index
    %218 = vector.load %arg8[%c1_199, %c8_200, %c0_201, %c0_202] : memref<5x9x4x4xf32, #tpu.memory_space<vmem>>, vector<1x1x4x4xf32>
    %219 = vector.shape_cast %218 : vector<1x1x4x4xf32> to vector<4x4xf32>
    %cst_203 = arith.constant dense<0.000000e+00> : vector<4x256xf32>
    %220 = tpu.matmul %219, %217, %cst_203 {dimension_numbers = #tpu.dot_dimension_numbers<[1], [0], [0], [1], [0, 0, 1, 1], [], []>} : vector<4x4xf32>, vector<4x256xf32>, vector<4x256xf32> -> vector<4x256xf32>
    %221 = arith.addf %214, %220 : vector<4x256xf32>
    %c1_204 = arith.constant 1 : index
    %c0_205 = arith.constant 0 : index
    %c0_206 = arith.constant 0 : index
    %222 = vector.load %arg9[%c1_204, %c0_205, %c0_206] : memref<5x4x1xf32, #tpu.memory_space<vmem>>, vector<1x4x1xf32>
    %223 = vector.shape_cast %222 : vector<1x4x1xf32> to vector<4x1xf32>
    %224 = vector.broadcast %223 : vector<4x1xf32> to vector<4x256xf32>
    %225 = arith.addf %221, %224 : vector<4x256xf32>
    %c2_207 = arith.constant 2 : index
    %c0_208 = arith.constant 0 : index
    %226 = memref.load %arg1[%c2_207, %c0_208] : memref<5x2xf32, #tpu.memory_space<smem>>
    %c2_209 = arith.constant 2 : index
    %c1_210 = arith.constant 1 : index
    %227 = memref.load %arg1[%c2_209, %c1_210] : memref<5x2xf32, #tpu.memory_space<smem>>
    %c2_211 = arith.constant 2 : index
    %c0_212 = arith.constant 0 : index
    %c0_213 = arith.constant 0 : index
    %c0_214 = arith.constant 0 : index
    %228 = vector.load %arg4[%c2_211, %c0_212, %c0_213, %c0_214] : memref<5x5x4x1xf32, #tpu.memory_space<vmem>>, vector<1x1x4x1xf32>
    %229 = vector.shape_cast %228 : vector<1x1x4x1xf32> to vector<4x1xf32>
    %230 = vector.broadcast %229 : vector<4x1xf32> to vector<4x256xf32>
    %231 = arith.mulf %20, %230 : vector<4x256xf32>
    %c2_215 = arith.constant 2 : index
    %c0_216 = arith.constant 0 : index
    %c0_217 = arith.constant 0 : index
    %c0_218 = arith.constant 0 : index
    %232 = vector.load %arg5[%c2_215, %c0_216, %c0_217, %c0_218] : memref<5x5x4x1xf32, #tpu.memory_space<vmem>>, vector<1x1x4x1xf32>
    %233 = vector.shape_cast %232 : vector<1x1x4x1xf32> to vector<4x1xf32>
    %234 = vector.broadcast %233 : vector<4x1xf32> to vector<4x256xf32>
    %235 = arith.addf %231, %234 : vector<4x256xf32>
    %cst_219 = arith.constant 0.000000e+00 : f32
    %236 = vector.broadcast %cst_219 : f32 to vector<4x256xf32>
    %237 = arith.cmpf oge, %235, %236 : vector<4x256xf32>
    %238 = vector.broadcast %226 : f32 to vector<4x256xf32>
    %239 = arith.mulf %238, %235 : vector<4x256xf32>
    %240 = arith.select %237, %235, %239 : vector<4x256xi1>, vector<4x256xf32>
    %c2_220 = arith.constant 2 : index
    %c0_221 = arith.constant 0 : index
    %c0_222 = arith.constant 0 : index
    %c0_223 = arith.constant 0 : index
    %241 = vector.load %arg6[%c2_220, %c0_221, %c0_222, %c0_223] : memref<5x5x4x4xf32, #tpu.memory_space<vmem>>, vector<1x1x4x4xf32>
    %242 = vector.shape_cast %241 : vector<1x1x4x4xf32> to vector<4x4xf32>
    %cst_224 = arith.constant dense<0.000000e+00> : vector<4x256xf32>
    %243 = tpu.matmul %242, %240, %cst_224 {dimension_numbers = #tpu.dot_dimension_numbers<[1], [0], [0], [1], [0, 0, 1, 1], [], []>} : vector<4x4xf32>, vector<4x256xf32>, vector<4x256xf32> -> vector<4x256xf32>
    %c2_225 = arith.constant 2 : index
    %c1_226 = arith.constant 1 : index
    %c0_227 = arith.constant 0 : index
    %c0_228 = arith.constant 0 : index
    %244 = vector.load %arg4[%c2_225, %c1_226, %c0_227, %c0_228] : memref<5x5x4x1xf32, #tpu.memory_space<vmem>>, vector<1x1x4x1xf32>
    %245 = vector.shape_cast %244 : vector<1x1x4x1xf32> to vector<4x1xf32>
    %246 = vector.broadcast %245 : vector<4x1xf32> to vector<4x256xf32>
    %247 = arith.mulf %114, %246 : vector<4x256xf32>
    %c2_229 = arith.constant 2 : index
    %c1_230 = arith.constant 1 : index
    %c0_231 = arith.constant 0 : index
    %c0_232 = arith.constant 0 : index
    %248 = vector.load %arg5[%c2_229, %c1_230, %c0_231, %c0_232] : memref<5x5x4x1xf32, #tpu.memory_space<vmem>>, vector<1x1x4x1xf32>
    %249 = vector.shape_cast %248 : vector<1x1x4x1xf32> to vector<4x1xf32>
    %250 = vector.broadcast %249 : vector<4x1xf32> to vector<4x256xf32>
    %251 = arith.addf %247, %250 : vector<4x256xf32>
    %cst_233 = arith.constant 0.000000e+00 : f32
    %252 = vector.broadcast %cst_233 : f32 to vector<4x256xf32>
    %253 = arith.cmpf oge, %251, %252 : vector<4x256xf32>
    %254 = vector.broadcast %226 : f32 to vector<4x256xf32>
    %255 = arith.mulf %254, %251 : vector<4x256xf32>
    %256 = arith.select %253, %251, %255 : vector<4x256xi1>, vector<4x256xf32>
    %c2_234 = arith.constant 2 : index
    %c1_235 = arith.constant 1 : index
    %c0_236 = arith.constant 0 : index
    %c0_237 = arith.constant 0 : index
    %257 = vector.load %arg6[%c2_234, %c1_235, %c0_236, %c0_237] : memref<5x5x4x4xf32, #tpu.memory_space<vmem>>, vector<1x1x4x4xf32>
    %258 = vector.shape_cast %257 : vector<1x1x4x4xf32> to vector<4x4xf32>
    %cst_238 = arith.constant dense<0.000000e+00> : vector<4x256xf32>
    %259 = tpu.matmul %258, %256, %cst_238 {dimension_numbers = #tpu.dot_dimension_numbers<[1], [0], [0], [1], [0, 0, 1, 1], [], []>} : vector<4x4xf32>, vector<4x256xf32>, vector<4x256xf32> -> vector<4x256xf32>
    %260 = arith.addf %243, %259 : vector<4x256xf32>
    %c2_239 = arith.constant 2 : index
    %c2_240 = arith.constant 2 : index
    %c0_241 = arith.constant 0 : index
    %c0_242 = arith.constant 0 : index
    %261 = vector.load %arg4[%c2_239, %c2_240, %c0_241, %c0_242] : memref<5x5x4x1xf32, #tpu.memory_space<vmem>>, vector<1x1x4x1xf32>
    %262 = vector.shape_cast %261 : vector<1x1x4x1xf32> to vector<4x1xf32>
    %263 = vector.broadcast %262 : vector<4x1xf32> to vector<4x256xf32>
    %264 = arith.mulf %225, %263 : vector<4x256xf32>
    %c2_243 = arith.constant 2 : index
    %c2_244 = arith.constant 2 : index
    %c0_245 = arith.constant 0 : index
    %c0_246 = arith.constant 0 : index
    %265 = vector.load %arg5[%c2_243, %c2_244, %c0_245, %c0_246] : memref<5x5x4x1xf32, #tpu.memory_space<vmem>>, vector<1x1x4x1xf32>
    %266 = vector.shape_cast %265 : vector<1x1x4x1xf32> to vector<4x1xf32>
    %267 = vector.broadcast %266 : vector<4x1xf32> to vector<4x256xf32>
    %268 = arith.addf %264, %267 : vector<4x256xf32>
    %cst_247 = arith.constant 0.000000e+00 : f32
    %269 = vector.broadcast %cst_247 : f32 to vector<4x256xf32>
    %270 = arith.cmpf oge, %268, %269 : vector<4x256xf32>
    %271 = vector.broadcast %226 : f32 to vector<4x256xf32>
    %272 = arith.mulf %271, %268 : vector<4x256xf32>
    %273 = arith.select %270, %268, %272 : vector<4x256xi1>, vector<4x256xf32>
    %c2_248 = arith.constant 2 : index
    %c2_249 = arith.constant 2 : index
    %c0_250 = arith.constant 0 : index
    %c0_251 = arith.constant 0 : index
    %274 = vector.load %arg6[%c2_248, %c2_249, %c0_250, %c0_251] : memref<5x5x4x4xf32, #tpu.memory_space<vmem>>, vector<1x1x4x4xf32>
    %275 = vector.shape_cast %274 : vector<1x1x4x4xf32> to vector<4x4xf32>
    %cst_252 = arith.constant dense<0.000000e+00> : vector<4x256xf32>
    %276 = tpu.matmul %275, %273, %cst_252 {dimension_numbers = #tpu.dot_dimension_numbers<[1], [0], [0], [1], [0, 0, 1, 1], [], []>} : vector<4x4xf32>, vector<4x256xf32>, vector<4x256xf32> -> vector<4x256xf32>
    %277 = arith.addf %260, %276 : vector<4x256xf32>
    %c2_253 = arith.constant 2 : index
    %c0_254 = arith.constant 0 : index
    %c0_255 = arith.constant 0 : index
    %278 = vector.load %arg7[%c2_253, %c0_254, %c0_255] : memref<5x4x1xf32, #tpu.memory_space<vmem>>, vector<1x4x1xf32>
    %279 = vector.shape_cast %278 : vector<1x4x1xf32> to vector<4x1xf32>
    %280 = vector.broadcast %279 : vector<4x1xf32> to vector<4x256xf32>
    %281 = arith.addf %277, %280 : vector<4x256xf32>
    %cst_256 = arith.constant 0.000000e+00 : f32
    %282 = vector.broadcast %cst_256 : f32 to vector<4x256xf32>
    %283 = arith.cmpf oge, %281, %282 : vector<4x256xf32>
    %284 = vector.broadcast %227 : f32 to vector<4x256xf32>
    %285 = arith.mulf %284, %281 : vector<4x256xf32>
    %286 = arith.select %283, %281, %285 : vector<4x256xi1>, vector<4x256xf32>
    %c0_257 = arith.constant 0 : index
    %c128_258 = arith.constant 128 : index
    %287 = vector.load %arg11[%c0_257, %c128_258] : memref<4x512xf32, #tpu.memory_space<vmem>>, vector<4x256xf32>
    tpu.vector_store %arg11[%c0_257, %c128_258], %286 {strides = array<i32>} : memref<4x512xf32, #tpu.memory_space<vmem>>, vector<4x256xf32>,
    %c0_259 = arith.constant 0 : index
    %c111_260 = arith.constant 111 : index
    %288 = vector.load %arg11[%c0_259, %c111_260] : memref<4x512xf32, #tpu.memory_space<vmem>>, vector<4x256xf32>
    %289 = vector.broadcast %3 : vector<1x256xf32> to vector<4x256xf32>
    %290 = arith.mulf %288, %289 : vector<4x256xf32>
    %c2_261 = arith.constant 2 : index
    %c0_262 = arith.constant 0 : index
    %c0_263 = arith.constant 0 : index
    %c0_264 = arith.constant 0 : index
    %291 = vector.load %arg8[%c2_261, %c0_262, %c0_263, %c0_264] : memref<5x9x4x4xf32, #tpu.memory_space<vmem>>, vector<1x1x4x4xf32>
    %292 = vector.shape_cast %291 : vector<1x1x4x4xf32> to vector<4x4xf32>
    %cst_265 = arith.constant dense<0.000000e+00> : vector<4x256xf32>
    %293 = tpu.matmul %292, %290, %cst_265 {dimension_numbers = #tpu.dot_dimension_numbers<[1], [0], [0], [1], [0, 0, 1, 1], [], []>} : vector<4x4xf32>, vector<4x256xf32>, vector<4x256xf32> -> vector<4x256xf32>
    %c0_266 = arith.constant 0 : index
    %c112_267 = arith.constant 112 : index
    %294 = vector.load %arg11[%c0_266, %c112_267] : memref<4x512xf32, #tpu.memory_space<vmem>>, vector<4x256xf32>
    %295 = vector.broadcast %5 : vector<1x256xf32> to vector<4x256xf32>
    %296 = arith.mulf %294, %295 : vector<4x256xf32>
    %c2_268 = arith.constant 2 : index
    %c1_269 = arith.constant 1 : index
    %c0_270 = arith.constant 0 : index
    %c0_271 = arith.constant 0 : index
    %297 = vector.load %arg8[%c2_268, %c1_269, %c0_270, %c0_271] : memref<5x9x4x4xf32, #tpu.memory_space<vmem>>, vector<1x1x4x4xf32>
    %298 = vector.shape_cast %297 : vector<1x1x4x4xf32> to vector<4x4xf32>
    %cst_272 = arith.constant dense<0.000000e+00> : vector<4x256xf32>
    %299 = tpu.matmul %298, %296, %cst_272 {dimension_numbers = #tpu.dot_dimension_numbers<[1], [0], [0], [1], [0, 0, 1, 1], [], []>} : vector<4x4xf32>, vector<4x256xf32>, vector<4x256xf32> -> vector<4x256xf32>
    %300 = arith.addf %293, %299 : vector<4x256xf32>
    %c0_273 = arith.constant 0 : index
    %c113_274 = arith.constant 113 : index
    %301 = vector.load %arg11[%c0_273, %c113_274] : memref<4x512xf32, #tpu.memory_space<vmem>>, vector<4x256xf32>
    %302 = vector.broadcast %7 : vector<1x256xf32> to vector<4x256xf32>
    %303 = arith.mulf %301, %302 : vector<4x256xf32>
    %c2_275 = arith.constant 2 : index
    %c2_276 = arith.constant 2 : index
    %c0_277 = arith.constant 0 : index
    %c0_278 = arith.constant 0 : index
    %304 = vector.load %arg8[%c2_275, %c2_276, %c0_277, %c0_278] : memref<5x9x4x4xf32, #tpu.memory_space<vmem>>, vector<1x1x4x4xf32>
    %305 = vector.shape_cast %304 : vector<1x1x4x4xf32> to vector<4x4xf32>
    %cst_279 = arith.constant dense<0.000000e+00> : vector<4x256xf32>
    %306 = tpu.matmul %305, %303, %cst_279 {dimension_numbers = #tpu.dot_dimension_numbers<[1], [0], [0], [1], [0, 0, 1, 1], [], []>} : vector<4x4xf32>, vector<4x256xf32>, vector<4x256xf32> -> vector<4x256xf32>
    %307 = arith.addf %300, %306 : vector<4x256xf32>
    %c0_280 = arith.constant 0 : index
    %c127_281 = arith.constant 127 : index
    %308 = vector.load %arg11[%c0_280, %c127_281] : memref<4x512xf32, #tpu.memory_space<vmem>>, vector<4x256xf32>
    %309 = vector.broadcast %9 : vector<1x256xf32> to vector<4x256xf32>
    %310 = arith.mulf %308, %309 : vector<4x256xf32>
    %c2_282 = arith.constant 2 : index
    %c3_283 = arith.constant 3 : index
    %c0_284 = arith.constant 0 : index
    %c0_285 = arith.constant 0 : index
    %311 = vector.load %arg8[%c2_282, %c3_283, %c0_284, %c0_285] : memref<5x9x4x4xf32, #tpu.memory_space<vmem>>, vector<1x1x4x4xf32>
    %312 = vector.shape_cast %311 : vector<1x1x4x4xf32> to vector<4x4xf32>
    %cst_286 = arith.constant dense<0.000000e+00> : vector<4x256xf32>
    %313 = tpu.matmul %312, %310, %cst_286 {dimension_numbers = #tpu.dot_dimension_numbers<[1], [0], [0], [1], [0, 0, 1, 1], [], []>} : vector<4x4xf32>, vector<4x256xf32>, vector<4x256xf32> -> vector<4x256xf32>
    %314 = arith.addf %307, %313 : vector<4x256xf32>
    %c0_287 = arith.constant 0 : index
    %c128_288 = arith.constant 128 : index
    %315 = vector.load %arg11[%c0_287, %c128_288] : memref<4x512xf32, #tpu.memory_space<vmem>>, vector<4x256xf32>
    %316 = vector.broadcast %11 : vector<1x256xf32> to vector<4x256xf32>
    %317 = arith.mulf %315, %316 : vector<4x256xf32>
    %c2_289 = arith.constant 2 : index
    %c4_290 = arith.constant 4 : index
    %c0_291 = arith.constant 0 : index
    %c0_292 = arith.constant 0 : index
    %318 = vector.load %arg8[%c2_289, %c4_290, %c0_291, %c0_292] : memref<5x9x4x4xf32, #tpu.memory_space<vmem>>, vector<1x1x4x4xf32>
    %319 = vector.shape_cast %318 : vector<1x1x4x4xf32> to vector<4x4xf32>
    %cst_293 = arith.constant dense<0.000000e+00> : vector<4x256xf32>
    %320 = tpu.matmul %319, %317, %cst_293 {dimension_numbers = #tpu.dot_dimension_numbers<[1], [0], [0], [1], [0, 0, 1, 1], [], []>} : vector<4x4xf32>, vector<4x256xf32>, vector<4x256xf32> -> vector<4x256xf32>
    %321 = arith.addf %314, %320 : vector<4x256xf32>
    %c0_294 = arith.constant 0 : index
    %c129_295 = arith.constant 129 : index
    %322 = vector.load %arg11[%c0_294, %c129_295] : memref<4x512xf32, #tpu.memory_space<vmem>>, vector<4x256xf32>
    %323 = vector.broadcast %13 : vector<1x256xf32> to vector<4x256xf32>
    %324 = arith.mulf %322, %323 : vector<4x256xf32>
    %c2_296 = arith.constant 2 : index
    %c5_297 = arith.constant 5 : index
    %c0_298 = arith.constant 0 : index
    %c0_299 = arith.constant 0 : index
    %325 = vector.load %arg8[%c2_296, %c5_297, %c0_298, %c0_299] : memref<5x9x4x4xf32, #tpu.memory_space<vmem>>, vector<1x1x4x4xf32>
    %326 = vector.shape_cast %325 : vector<1x1x4x4xf32> to vector<4x4xf32>
    %cst_300 = arith.constant dense<0.000000e+00> : vector<4x256xf32>
    %327 = tpu.matmul %326, %324, %cst_300 {dimension_numbers = #tpu.dot_dimension_numbers<[1], [0], [0], [1], [0, 0, 1, 1], [], []>} : vector<4x4xf32>, vector<4x256xf32>, vector<4x256xf32> -> vector<4x256xf32>
    %328 = arith.addf %321, %327 : vector<4x256xf32>
    %c0_301 = arith.constant 0 : index
    %c143_302 = arith.constant 143 : index
    %329 = vector.load %arg11[%c0_301, %c143_302] : memref<4x512xf32, #tpu.memory_space<vmem>>, vector<4x256xf32>
    %330 = vector.broadcast %15 : vector<1x256xf32> to vector<4x256xf32>
    %331 = arith.mulf %329, %330 : vector<4x256xf32>
    %c2_303 = arith.constant 2 : index
    %c6_304 = arith.constant 6 : index
    %c0_305 = arith.constant 0 : index
    %c0_306 = arith.constant 0 : index
    %332 = vector.load %arg8[%c2_303, %c6_304, %c0_305, %c0_306] : memref<5x9x4x4xf32, #tpu.memory_space<vmem>>, vector<1x1x4x4xf32>
    %333 = vector.shape_cast %332 : vector<1x1x4x4xf32> to vector<4x4xf32>
    %cst_307 = arith.constant dense<0.000000e+00> : vector<4x256xf32>
    %334 = tpu.matmul %333, %331, %cst_307 {dimension_numbers = #tpu.dot_dimension_numbers<[1], [0], [0], [1], [0, 0, 1, 1], [], []>} : vector<4x4xf32>, vector<4x256xf32>, vector<4x256xf32> -> vector<4x256xf32>
    %335 = arith.addf %328, %334 : vector<4x256xf32>
    %c0_308 = arith.constant 0 : index
    %c144_309 = arith.constant 144 : index
    %336 = vector.load %arg11[%c0_308, %c144_309] : memref<4x512xf32, #tpu.memory_space<vmem>>, vector<4x256xf32>
    %337 = vector.broadcast %17 : vector<1x256xf32> to vector<4x256xf32>
    %338 = arith.mulf %336, %337 : vector<4x256xf32>
    %c2_310 = arith.constant 2 : index
    %c7_311 = arith.constant 7 : index
    %c0_312 = arith.constant 0 : index
    %c0_313 = arith.constant 0 : index
    %339 = vector.load %arg8[%c2_310, %c7_311, %c0_312, %c0_313] : memref<5x9x4x4xf32, #tpu.memory_space<vmem>>, vector<1x1x4x4xf32>
    %340 = vector.shape_cast %339 : vector<1x1x4x4xf32> to vector<4x4xf32>
    %cst_314 = arith.constant dense<0.000000e+00> : vector<4x256xf32>
    %341 = tpu.matmul %340, %338, %cst_314 {dimension_numbers = #tpu.dot_dimension_numbers<[1], [0], [0], [1], [0, 0, 1, 1], [], []>} : vector<4x4xf32>, vector<4x256xf32>, vector<4x256xf32> -> vector<4x256xf32>
    %342 = arith.addf %335, %341 : vector<4x256xf32>
    %c0_315 = arith.constant 0 : index
    %c145_316 = arith.constant 145 : index
    %343 = vector.load %arg11[%c0_315, %c145_316] : memref<4x512xf32, #tpu.memory_space<vmem>>, vector<4x256xf32>
    %344 = vector.broadcast %19 : vector<1x256xf32> to vector<4x256xf32>
    %345 = arith.mulf %343, %344 : vector<4x256xf32>
    %c2_317 = arith.constant 2 : index
    %c8_318 = arith.constant 8 : index
    %c0_319 = arith.constant 0 : index
    %c0_320 = arith.constant 0 : index
    %346 = vector.load %arg8[%c2_317, %c8_318, %c0_319, %c0_320] : memref<5x9x4x4xf32, #tpu.memory_space<vmem>>, vector<1x1x4x4xf32>
    %347 = vector.shape_cast %346 : vector<1x1x4x4xf32> to vector<4x4xf32>
    %cst_321 = arith.constant dense<0.000000e+00> : vector<4x256xf32>
    %348 = tpu.matmul %347, %345, %cst_321 {dimension_numbers = #tpu.dot_dimension_numbers<[1], [0], [0], [1], [0, 0, 1, 1], [], []>} : vector<4x4xf32>, vector<4x256xf32>, vector<4x256xf32> -> vector<4x256xf32>
    %349 = arith.addf %342, %348 : vector<4x256xf32>
    %c2_322 = arith.constant 2 : index
    %c0_323 = arith.constant 0 : index
    %c0_324 = arith.constant 0 : index
    %350 = vector.load %arg9[%c2_322, %c0_323, %c0_324] : memref<5x4x1xf32, #tpu.memory_space<vmem>>, vector<1x4x1xf32>
    %351 = vector.shape_cast %350 : vector<1x4x1xf32> to vector<4x1xf32>
    %352 = vector.broadcast %351 : vector<4x1xf32> to vector<4x256xf32>
    %353 = arith.addf %349, %352 : vector<4x256xf32>
    %c3_325 = arith.constant 3 : index
    %c0_326 = arith.constant 0 : index
    %354 = memref.load %arg1[%c3_325, %c0_326] : memref<5x2xf32, #tpu.memory_space<smem>>
    %c3_327 = arith.constant 3 : index
    %c1_328 = arith.constant 1 : index
    %355 = memref.load %arg1[%c3_327, %c1_328] : memref<5x2xf32, #tpu.memory_space<smem>>
    %c3_329 = arith.constant 3 : index
    %c0_330 = arith.constant 0 : index
    %c0_331 = arith.constant 0 : index
    %c0_332 = arith.constant 0 : index
    %356 = vector.load %arg4[%c3_329, %c0_330, %c0_331, %c0_332] : memref<5x5x4x1xf32, #tpu.memory_space<vmem>>, vector<1x1x4x1xf32>
    %357 = vector.shape_cast %356 : vector<1x1x4x1xf32> to vector<4x1xf32>
    %358 = vector.broadcast %357 : vector<4x1xf32> to vector<4x256xf32>
    %359 = arith.mulf %20, %358 : vector<4x256xf32>
    %c3_333 = arith.constant 3 : index
    %c0_334 = arith.constant 0 : index
    %c0_335 = arith.constant 0 : index
    %c0_336 = arith.constant 0 : index
    %360 = vector.load %arg5[%c3_333, %c0_334, %c0_335, %c0_336] : memref<5x5x4x1xf32, #tpu.memory_space<vmem>>, vector<1x1x4x1xf32>
    %361 = vector.shape_cast %360 : vector<1x1x4x1xf32> to vector<4x1xf32>
    %362 = vector.broadcast %361 : vector<4x1xf32> to vector<4x256xf32>
    %363 = arith.addf %359, %362 : vector<4x256xf32>
    %cst_337 = arith.constant 0.000000e+00 : f32
    %364 = vector.broadcast %cst_337 : f32 to vector<4x256xf32>
    %365 = arith.cmpf oge, %363, %364 : vector<4x256xf32>
    %366 = vector.broadcast %354 : f32 to vector<4x256xf32>
    %367 = arith.mulf %366, %363 : vector<4x256xf32>
    %368 = arith.select %365, %363, %367 : vector<4x256xi1>, vector<4x256xf32>
    %c3_338 = arith.constant 3 : index
    %c0_339 = arith.constant 0 : index
    %c0_340 = arith.constant 0 : index
    %c0_341 = arith.constant 0 : index
    %369 = vector.load %arg6[%c3_338, %c0_339, %c0_340, %c0_341] : memref<5x5x4x4xf32, #tpu.memory_space<vmem>>, vector<1x1x4x4xf32>
    %370 = vector.shape_cast %369 : vector<1x1x4x4xf32> to vector<4x4xf32>
    %cst_342 = arith.constant dense<0.000000e+00> : vector<4x256xf32>
    %371 = tpu.matmul %370, %368, %cst_342 {dimension_numbers = #tpu.dot_dimension_numbers<[1], [0], [0], [1], [0, 0, 1, 1], [], []>} : vector<4x4xf32>, vector<4x256xf32>, vector<4x256xf32> -> vector<4x256xf32>
    %c3_343 = arith.constant 3 : index
    %c1_344 = arith.constant 1 : index
    %c0_345 = arith.constant 0 : index
    %c0_346 = arith.constant 0 : index
    %372 = vector.load %arg4[%c3_343, %c1_344, %c0_345, %c0_346] : memref<5x5x4x1xf32, #tpu.memory_space<vmem>>, vector<1x1x4x1xf32>
    %373 = vector.shape_cast %372 : vector<1x1x4x1xf32> to vector<4x1xf32>
    %374 = vector.broadcast %373 : vector<4x1xf32> to vector<4x256xf32>
    %375 = arith.mulf %114, %374 : vector<4x256xf32>
    %c3_347 = arith.constant 3 : index
    %c1_348 = arith.constant 1 : index
    %c0_349 = arith.constant 0 : index
    %c0_350 = arith.constant 0 : index
    %376 = vector.load %arg5[%c3_347, %c1_348, %c0_349, %c0_350] : memref<5x5x4x1xf32, #tpu.memory_space<vmem>>, vector<1x1x4x1xf32>
    %377 = vector.shape_cast %376 : vector<1x1x4x1xf32> to vector<4x1xf32>
    %378 = vector.broadcast %377 : vector<4x1xf32> to vector<4x256xf32>
    %379 = arith.addf %375, %378 : vector<4x256xf32>
    %cst_351 = arith.constant 0.000000e+00 : f32
    %380 = vector.broadcast %cst_351 : f32 to vector<4x256xf32>
    %381 = arith.cmpf oge, %379, %380 : vector<4x256xf32>
    %382 = vector.broadcast %354 : f32 to vector<4x256xf32>
    %383 = arith.mulf %382, %379 : vector<4x256xf32>
    %384 = arith.select %381, %379, %383 : vector<4x256xi1>, vector<4x256xf32>
    %c3_352 = arith.constant 3 : index
    %c1_353 = arith.constant 1 : index
    %c0_354 = arith.constant 0 : index
    %c0_355 = arith.constant 0 : index
    %385 = vector.load %arg6[%c3_352, %c1_353, %c0_354, %c0_355] : memref<5x5x4x4xf32, #tpu.memory_space<vmem>>, vector<1x1x4x4xf32>
    %386 = vector.shape_cast %385 : vector<1x1x4x4xf32> to vector<4x4xf32>
    %cst_356 = arith.constant dense<0.000000e+00> : vector<4x256xf32>
    %387 = tpu.matmul %386, %384, %cst_356 {dimension_numbers = #tpu.dot_dimension_numbers<[1], [0], [0], [1], [0, 0, 1, 1], [], []>} : vector<4x4xf32>, vector<4x256xf32>, vector<4x256xf32> -> vector<4x256xf32>
    %388 = arith.addf %371, %387 : vector<4x256xf32>
    %c3_357 = arith.constant 3 : index
    %c2_358 = arith.constant 2 : index
    %c0_359 = arith.constant 0 : index
    %c0_360 = arith.constant 0 : index
    %389 = vector.load %arg4[%c3_357, %c2_358, %c0_359, %c0_360] : memref<5x5x4x1xf32, #tpu.memory_space<vmem>>, vector<1x1x4x1xf32>
    %390 = vector.shape_cast %389 : vector<1x1x4x1xf32> to vector<4x1xf32>
    %391 = vector.broadcast %390 : vector<4x1xf32> to vector<4x256xf32>
    %392 = arith.mulf %225, %391 : vector<4x256xf32>
    %c3_361 = arith.constant 3 : index
    %c2_362 = arith.constant 2 : index
    %c0_363 = arith.constant 0 : index
    %c0_364 = arith.constant 0 : index
    %393 = vector.load %arg5[%c3_361, %c2_362, %c0_363, %c0_364] : memref<5x5x4x1xf32, #tpu.memory_space<vmem>>, vector<1x1x4x1xf32>
    %394 = vector.shape_cast %393 : vector<1x1x4x1xf32> to vector<4x1xf32>
    %395 = vector.broadcast %394 : vector<4x1xf32> to vector<4x256xf32>
    %396 = arith.addf %392, %395 : vector<4x256xf32>
    %cst_365 = arith.constant 0.000000e+00 : f32
    %397 = vector.broadcast %cst_365 : f32 to vector<4x256xf32>
    %398 = arith.cmpf oge, %396, %397 : vector<4x256xf32>
    %399 = vector.broadcast %354 : f32 to vector<4x256xf32>
    %400 = arith.mulf %399, %396 : vector<4x256xf32>
    %401 = arith.select %398, %396, %400 : vector<4x256xi1>, vector<4x256xf32>
    %c3_366 = arith.constant 3 : index
    %c2_367 = arith.constant 2 : index
    %c0_368 = arith.constant 0 : index
    %c0_369 = arith.constant 0 : index
    %402 = vector.load %arg6[%c3_366, %c2_367, %c0_368, %c0_369] : memref<5x5x4x4xf32, #tpu.memory_space<vmem>>, vector<1x1x4x4xf32>
    %403 = vector.shape_cast %402 : vector<1x1x4x4xf32> to vector<4x4xf32>
    %cst_370 = arith.constant dense<0.000000e+00> : vector<4x256xf32>
    %404 = tpu.matmul %403, %401, %cst_370 {dimension_numbers = #tpu.dot_dimension_numbers<[1], [0], [0], [1], [0, 0, 1, 1], [], []>} : vector<4x4xf32>, vector<4x256xf32>, vector<4x256xf32> -> vector<4x256xf32>
    %405 = arith.addf %388, %404 : vector<4x256xf32>
    %c3_371 = arith.constant 3 : index
    %c3_372 = arith.constant 3 : index
    %c0_373 = arith.constant 0 : index
    %c0_374 = arith.constant 0 : index
    %406 = vector.load %arg4[%c3_371, %c3_372, %c0_373, %c0_374] : memref<5x5x4x1xf32, #tpu.memory_space<vmem>>, vector<1x1x4x1xf32>
    %407 = vector.shape_cast %406 : vector<1x1x4x1xf32> to vector<4x1xf32>
    %408 = vector.broadcast %407 : vector<4x1xf32> to vector<4x256xf32>
    %409 = arith.mulf %353, %408 : vector<4x256xf32>
    %c3_375 = arith.constant 3 : index
    %c3_376 = arith.constant 3 : index
    %c0_377 = arith.constant 0 : index
    %c0_378 = arith.constant 0 : index
    %410 = vector.load %arg5[%c3_375, %c3_376, %c0_377, %c0_378] : memref<5x5x4x1xf32, #tpu.memory_space<vmem>>, vector<1x1x4x1xf32>
    %411 = vector.shape_cast %410 : vector<1x1x4x1xf32> to vector<4x1xf32>
    %412 = vector.broadcast %411 : vector<4x1xf32> to vector<4x256xf32>
    %413 = arith.addf %409, %412 : vector<4x256xf32>
    %cst_379 = arith.constant 0.000000e+00 : f32
    %414 = vector.broadcast %cst_379 : f32 to vector<4x256xf32>
    %415 = arith.cmpf oge, %413, %414 : vector<4x256xf32>
    %416 = vector.broadcast %354 : f32 to vector<4x256xf32>
    %417 = arith.mulf %416, %413 : vector<4x256xf32>
    %418 = arith.select %415, %413, %417 : vector<4x256xi1>, vector<4x256xf32>
    %c3_380 = arith.constant 3 : index
    %c3_381 = arith.constant 3 : index
    %c0_382 = arith.constant 0 : index
    %c0_383 = arith.constant 0 : index
    %419 = vector.load %arg6[%c3_380, %c3_381, %c0_382, %c0_383] : memref<5x5x4x4xf32, #tpu.memory_space<vmem>>, vector<1x1x4x4xf32>
    %420 = vector.shape_cast %419 : vector<1x1x4x4xf32> to vector<4x4xf32>
    %cst_384 = arith.constant dense<0.000000e+00> : vector<4x256xf32>
    %421 = tpu.matmul %420, %418, %cst_384 {dimension_numbers = #tpu.dot_dimension_numbers<[1], [0], [0], [1], [0, 0, 1, 1], [], []>} : vector<4x4xf32>, vector<4x256xf32>, vector<4x256xf32> -> vector<4x256xf32>
    %422 = arith.addf %405, %421 : vector<4x256xf32>
    %c3_385 = arith.constant 3 : index
    %c0_386 = arith.constant 0 : index
    %c0_387 = arith.constant 0 : index
    %423 = vector.load %arg7[%c3_385, %c0_386, %c0_387] : memref<5x4x1xf32, #tpu.memory_space<vmem>>, vector<1x4x1xf32>
    %424 = vector.shape_cast %423 : vector<1x4x1xf32> to vector<4x1xf32>
    %425 = vector.broadcast %424 : vector<4x1xf32> to vector<4x256xf32>
    %426 = arith.addf %422, %425 : vector<4x256xf32>
    %cst_388 = arith.constant 0.000000e+00 : f32
    %427 = vector.broadcast %cst_388 : f32 to vector<4x256xf32>
    %428 = arith.cmpf oge, %426, %427 : vector<4x256xf32>
    %429 = vector.broadcast %355 : f32 to vector<4x256xf32>
    %430 = arith.mulf %429, %426 : vector<4x256xf32>
    %431 = arith.select %428, %426, %430 : vector<4x256xi1>, vector<4x256xf32>
    %c0_389 = arith.constant 0 : index
    %c128_390 = arith.constant 128 : index
    %432 = vector.load %arg11[%c0_389, %c128_390] : memref<4x512xf32, #tpu.memory_space<vmem>>, vector<4x256xf32>
    tpu.vector_store %arg11[%c0_389, %c128_390], %431 {strides = array<i32>} : memref<4x512xf32, #tpu.memory_space<vmem>>, vector<4x256xf32>,
    %c0_391 = arith.constant 0 : index
    %c111_392 = arith.constant 111 : index
    %433 = vector.load %arg11[%c0_391, %c111_392] : memref<4x512xf32, #tpu.memory_space<vmem>>, vector<4x256xf32>
    %434 = vector.broadcast %3 : vector<1x256xf32> to vector<4x256xf32>
    %435 = arith.mulf %433, %434 : vector<4x256xf32>
    %c3_393 = arith.constant 3 : index
    %c0_394 = arith.constant 0 : index
    %c0_395 = arith.constant 0 : index
    %c0_396 = arith.constant 0 : index
    %436 = vector.load %arg8[%c3_393, %c0_394, %c0_395, %c0_396] : memref<5x9x4x4xf32, #tpu.memory_space<vmem>>, vector<1x1x4x4xf32>
    %437 = vector.shape_cast %436 : vector<1x1x4x4xf32> to vector<4x4xf32>
    %cst_397 = arith.constant dense<0.000000e+00> : vector<4x256xf32>
    %438 = tpu.matmul %437, %435, %cst_397 {dimension_numbers = #tpu.dot_dimension_numbers<[1], [0], [0], [1], [0, 0, 1, 1], [], []>} : vector<4x4xf32>, vector<4x256xf32>, vector<4x256xf32> -> vector<4x256xf32>
    %c0_398 = arith.constant 0 : index
    %c112_399 = arith.constant 112 : index
    %439 = vector.load %arg11[%c0_398, %c112_399] : memref<4x512xf32, #tpu.memory_space<vmem>>, vector<4x256xf32>
    %440 = vector.broadcast %5 : vector<1x256xf32> to vector<4x256xf32>
    %441 = arith.mulf %439, %440 : vector<4x256xf32>
    %c3_400 = arith.constant 3 : index
    %c1_401 = arith.constant 1 : index
    %c0_402 = arith.constant 0 : index
    %c0_403 = arith.constant 0 : index
    %442 = vector.load %arg8[%c3_400, %c1_401, %c0_402, %c0_403] : memref<5x9x4x4xf32, #tpu.memory_space<vmem>>, vector<1x1x4x4xf32>
    %443 = vector.shape_cast %442 : vector<1x1x4x4xf32> to vector<4x4xf32>
    %cst_404 = arith.constant dense<0.000000e+00> : vector<4x256xf32>
    %444 = tpu.matmul %443, %441, %cst_404 {dimension_numbers = #tpu.dot_dimension_numbers<[1], [0], [0], [1], [0, 0, 1, 1], [], []>} : vector<4x4xf32>, vector<4x256xf32>, vector<4x256xf32> -> vector<4x256xf32>
    %445 = arith.addf %438, %444 : vector<4x256xf32>
    %c0_405 = arith.constant 0 : index
    %c113_406 = arith.constant 113 : index
    %446 = vector.load %arg11[%c0_405, %c113_406] : memref<4x512xf32, #tpu.memory_space<vmem>>, vector<4x256xf32>
    %447 = vector.broadcast %7 : vector<1x256xf32> to vector<4x256xf32>
    %448 = arith.mulf %446, %447 : vector<4x256xf32>
    %c3_407 = arith.constant 3 : index
    %c2_408 = arith.constant 2 : index
    %c0_409 = arith.constant 0 : index
    %c0_410 = arith.constant 0 : index
    %449 = vector.load %arg8[%c3_407, %c2_408, %c0_409, %c0_410] : memref<5x9x4x4xf32, #tpu.memory_space<vmem>>, vector<1x1x4x4xf32>
    %450 = vector.shape_cast %449 : vector<1x1x4x4xf32> to vector<4x4xf32>
    %cst_411 = arith.constant dense<0.000000e+00> : vector<4x256xf32>
    %451 = tpu.matmul %450, %448, %cst_411 {dimension_numbers = #tpu.dot_dimension_numbers<[1], [0], [0], [1], [0, 0, 1, 1], [], []>} : vector<4x4xf32>, vector<4x256xf32>, vector<4x256xf32> -> vector<4x256xf32>
    %452 = arith.addf %445, %451 : vector<4x256xf32>
    %c0_412 = arith.constant 0 : index
    %c127_413 = arith.constant 127 : index
    %453 = vector.load %arg11[%c0_412, %c127_413] : memref<4x512xf32, #tpu.memory_space<vmem>>, vector<4x256xf32>
    %454 = vector.broadcast %9 : vector<1x256xf32> to vector<4x256xf32>
    %455 = arith.mulf %453, %454 : vector<4x256xf32>
    %c3_414 = arith.constant 3 : index
    %c3_415 = arith.constant 3 : index
    %c0_416 = arith.constant 0 : index
    %c0_417 = arith.constant 0 : index
    %456 = vector.load %arg8[%c3_414, %c3_415, %c0_416, %c0_417] : memref<5x9x4x4xf32, #tpu.memory_space<vmem>>, vector<1x1x4x4xf32>
    %457 = vector.shape_cast %456 : vector<1x1x4x4xf32> to vector<4x4xf32>
    %cst_418 = arith.constant dense<0.000000e+00> : vector<4x256xf32>
    %458 = tpu.matmul %457, %455, %cst_418 {dimension_numbers = #tpu.dot_dimension_numbers<[1], [0], [0], [1], [0, 0, 1, 1], [], []>} : vector<4x4xf32>, vector<4x256xf32>, vector<4x256xf32> -> vector<4x256xf32>
    %459 = arith.addf %452, %458 : vector<4x256xf32>
    %c0_419 = arith.constant 0 : index
    %c128_420 = arith.constant 128 : index
    %460 = vector.load %arg11[%c0_419, %c128_420] : memref<4x512xf32, #tpu.memory_space<vmem>>, vector<4x256xf32>
    %461 = vector.broadcast %11 : vector<1x256xf32> to vector<4x256xf32>
    %462 = arith.mulf %460, %461 : vector<4x256xf32>
    %c3_421 = arith.constant 3 : index
    %c4_422 = arith.constant 4 : index
    %c0_423 = arith.constant 0 : index
    %c0_424 = arith.constant 0 : index
    %463 = vector.load %arg8[%c3_421, %c4_422, %c0_423, %c0_424] : memref<5x9x4x4xf32, #tpu.memory_space<vmem>>, vector<1x1x4x4xf32>
    %464 = vector.shape_cast %463 : vector<1x1x4x4xf32> to vector<4x4xf32>
    %cst_425 = arith.constant dense<0.000000e+00> : vector<4x256xf32>
    %465 = tpu.matmul %464, %462, %cst_425 {dimension_numbers = #tpu.dot_dimension_numbers<[1], [0], [0], [1], [0, 0, 1, 1], [], []>} : vector<4x4xf32>, vector<4x256xf32>, vector<4x256xf32> -> vector<4x256xf32>
    %466 = arith.addf %459, %465 : vector<4x256xf32>
    %c0_426 = arith.constant 0 : index
    %c129_427 = arith.constant 129 : index
    %467 = vector.load %arg11[%c0_426, %c129_427] : memref<4x512xf32, #tpu.memory_space<vmem>>, vector<4x256xf32>
    %468 = vector.broadcast %13 : vector<1x256xf32> to vector<4x256xf32>
    %469 = arith.mulf %467, %468 : vector<4x256xf32>
    %c3_428 = arith.constant 3 : index
    %c5_429 = arith.constant 5 : index
    %c0_430 = arith.constant 0 : index
    %c0_431 = arith.constant 0 : index
    %470 = vector.load %arg8[%c3_428, %c5_429, %c0_430, %c0_431] : memref<5x9x4x4xf32, #tpu.memory_space<vmem>>, vector<1x1x4x4xf32>
    %471 = vector.shape_cast %470 : vector<1x1x4x4xf32> to vector<4x4xf32>
    %cst_432 = arith.constant dense<0.000000e+00> : vector<4x256xf32>
    %472 = tpu.matmul %471, %469, %cst_432 {dimension_numbers = #tpu.dot_dimension_numbers<[1], [0], [0], [1], [0, 0, 1, 1], [], []>} : vector<4x4xf32>, vector<4x256xf32>, vector<4x256xf32> -> vector<4x256xf32>
    %473 = arith.addf %466, %472 : vector<4x256xf32>
    %c0_433 = arith.constant 0 : index
    %c143_434 = arith.constant 143 : index
    %474 = vector.load %arg11[%c0_433, %c143_434] : memref<4x512xf32, #tpu.memory_space<vmem>>, vector<4x256xf32>
    %475 = vector.broadcast %15 : vector<1x256xf32> to vector<4x256xf32>
    %476 = arith.mulf %474, %475 : vector<4x256xf32>
    %c3_435 = arith.constant 3 : index
    %c6_436 = arith.constant 6 : index
    %c0_437 = arith.constant 0 : index
    %c0_438 = arith.constant 0 : index
    %477 = vector.load %arg8[%c3_435, %c6_436, %c0_437, %c0_438] : memref<5x9x4x4xf32, #tpu.memory_space<vmem>>, vector<1x1x4x4xf32>
    %478 = vector.shape_cast %477 : vector<1x1x4x4xf32> to vector<4x4xf32>
    %cst_439 = arith.constant dense<0.000000e+00> : vector<4x256xf32>
    %479 = tpu.matmul %478, %476, %cst_439 {dimension_numbers = #tpu.dot_dimension_numbers<[1], [0], [0], [1], [0, 0, 1, 1], [], []>} : vector<4x4xf32>, vector<4x256xf32>, vector<4x256xf32> -> vector<4x256xf32>
    %480 = arith.addf %473, %479 : vector<4x256xf32>
    %c0_440 = arith.constant 0 : index
    %c144_441 = arith.constant 144 : index
    %481 = vector.load %arg11[%c0_440, %c144_441] : memref<4x512xf32, #tpu.memory_space<vmem>>, vector<4x256xf32>
    %482 = vector.broadcast %17 : vector<1x256xf32> to vector<4x256xf32>
    %483 = arith.mulf %481, %482 : vector<4x256xf32>
    %c3_442 = arith.constant 3 : index
    %c7_443 = arith.constant 7 : index
    %c0_444 = arith.constant 0 : index
    %c0_445 = arith.constant 0 : index
    %484 = vector.load %arg8[%c3_442, %c7_443, %c0_444, %c0_445] : memref<5x9x4x4xf32, #tpu.memory_space<vmem>>, vector<1x1x4x4xf32>
    %485 = vector.shape_cast %484 : vector<1x1x4x4xf32> to vector<4x4xf32>
    %cst_446 = arith.constant dense<0.000000e+00> : vector<4x256xf32>
    %486 = tpu.matmul %485, %483, %cst_446 {dimension_numbers = #tpu.dot_dimension_numbers<[1], [0], [0], [1], [0, 0, 1, 1], [], []>} : vector<4x4xf32>, vector<4x256xf32>, vector<4x256xf32> -> vector<4x256xf32>
    %487 = arith.addf %480, %486 : vector<4x256xf32>
    %c0_447 = arith.constant 0 : index
    %c145_448 = arith.constant 145 : index
    %488 = vector.load %arg11[%c0_447, %c145_448] : memref<4x512xf32, #tpu.memory_space<vmem>>, vector<4x256xf32>
    %489 = vector.broadcast %19 : vector<1x256xf32> to vector<4x256xf32>
    %490 = arith.mulf %488, %489 : vector<4x256xf32>
    %c3_449 = arith.constant 3 : index
    %c8_450 = arith.constant 8 : index
    %c0_451 = arith.constant 0 : index
    %c0_452 = arith.constant 0 : index
    %491 = vector.load %arg8[%c3_449, %c8_450, %c0_451, %c0_452] : memref<5x9x4x4xf32, #tpu.memory_space<vmem>>, vector<1x1x4x4xf32>
    %492 = vector.shape_cast %491 : vector<1x1x4x4xf32> to vector<4x4xf32>
    %cst_453 = arith.constant dense<0.000000e+00> : vector<4x256xf32>
    %493 = tpu.matmul %492, %490, %cst_453 {dimension_numbers = #tpu.dot_dimension_numbers<[1], [0], [0], [1], [0, 0, 1, 1], [], []>} : vector<4x4xf32>, vector<4x256xf32>, vector<4x256xf32> -> vector<4x256xf32>
    %494 = arith.addf %487, %493 : vector<4x256xf32>
    %c3_454 = arith.constant 3 : index
    %c0_455 = arith.constant 0 : index
    %c0_456 = arith.constant 0 : index
    %495 = vector.load %arg9[%c3_454, %c0_455, %c0_456] : memref<5x4x1xf32, #tpu.memory_space<vmem>>, vector<1x4x1xf32>
    %496 = vector.shape_cast %495 : vector<1x4x1xf32> to vector<4x1xf32>
    %497 = vector.broadcast %496 : vector<4x1xf32> to vector<4x256xf32>
    %498 = arith.addf %494, %497 : vector<4x256xf32>
    %c4_457 = arith.constant 4 : index
    %c0_458 = arith.constant 0 : index
    %499 = memref.load %arg1[%c4_457, %c0_458] : memref<5x2xf32, #tpu.memory_space<smem>>
    %c4_459 = arith.constant 4 : index
    %c1_460 = arith.constant 1 : index
    %500 = memref.load %arg1[%c4_459, %c1_460] : memref<5x2xf32, #tpu.memory_space<smem>>
    %c4_461 = arith.constant 4 : index
    %c0_462 = arith.constant 0 : index
    %c0_463 = arith.constant 0 : index
    %c0_464 = arith.constant 0 : index
    %501 = vector.load %arg4[%c4_461, %c0_462, %c0_463, %c0_464] : memref<5x5x4x1xf32, #tpu.memory_space<vmem>>, vector<1x1x4x1xf32>
    %502 = vector.shape_cast %501 : vector<1x1x4x1xf32> to vector<4x1xf32>
    %503 = vector.broadcast %502 : vector<4x1xf32> to vector<4x256xf32>
    %504 = arith.mulf %20, %503 : vector<4x256xf32>
    %c4_465 = arith.constant 4 : index
    %c0_466 = arith.constant 0 : index
    %c0_467 = arith.constant 0 : index
    %c0_468 = arith.constant 0 : index
    %505 = vector.load %arg5[%c4_465, %c0_466, %c0_467, %c0_468] : memref<5x5x4x1xf32, #tpu.memory_space<vmem>>, vector<1x1x4x1xf32>
    %506 = vector.shape_cast %505 : vector<1x1x4x1xf32> to vector<4x1xf32>
    %507 = vector.broadcast %506 : vector<4x1xf32> to vector<4x256xf32>
    %508 = arith.addf %504, %507 : vector<4x256xf32>
    %cst_469 = arith.constant 0.000000e+00 : f32
    %509 = vector.broadcast %cst_469 : f32 to vector<4x256xf32>
    %510 = arith.cmpf oge, %508, %509 : vector<4x256xf32>
    %511 = vector.broadcast %499 : f32 to vector<4x256xf32>
    %512 = arith.mulf %511, %508 : vector<4x256xf32>
    %513 = arith.select %510, %508, %512 : vector<4x256xi1>, vector<4x256xf32>
    %c4_470 = arith.constant 4 : index
    %c0_471 = arith.constant 0 : index
    %c0_472 = arith.constant 0 : index
    %c0_473 = arith.constant 0 : index
    %514 = vector.load %arg6[%c4_470, %c0_471, %c0_472, %c0_473] : memref<5x5x4x4xf32, #tpu.memory_space<vmem>>, vector<1x1x4x4xf32>
    %515 = vector.shape_cast %514 : vector<1x1x4x4xf32> to vector<4x4xf32>
    %cst_474 = arith.constant dense<0.000000e+00> : vector<4x256xf32>
    %516 = tpu.matmul %515, %513, %cst_474 {dimension_numbers = #tpu.dot_dimension_numbers<[1], [0], [0], [1], [0, 0, 1, 1], [], []>} : vector<4x4xf32>, vector<4x256xf32>, vector<4x256xf32> -> vector<4x256xf32>
    %c4_475 = arith.constant 4 : index
    %c1_476 = arith.constant 1 : index
    %c0_477 = arith.constant 0 : index
    %c0_478 = arith.constant 0 : index
    %517 = vector.load %arg4[%c4_475, %c1_476, %c0_477, %c0_478] : memref<5x5x4x1xf32, #tpu.memory_space<vmem>>, vector<1x1x4x1xf32>
    %518 = vector.shape_cast %517 : vector<1x1x4x1xf32> to vector<4x1xf32>
    %519 = vector.broadcast %518 : vector<4x1xf32> to vector<4x256xf32>
    %520 = arith.mulf %114, %519 : vector<4x256xf32>
    %c4_479 = arith.constant 4 : index
    %c1_480 = arith.constant 1 : index
    %c0_481 = arith.constant 0 : index
    %c0_482 = arith.constant 0 : index
    %521 = vector.load %arg5[%c4_479, %c1_480, %c0_481, %c0_482] : memref<5x5x4x1xf32, #tpu.memory_space<vmem>>, vector<1x1x4x1xf32>
    %522 = vector.shape_cast %521 : vector<1x1x4x1xf32> to vector<4x1xf32>
    %523 = vector.broadcast %522 : vector<4x1xf32> to vector<4x256xf32>
    %524 = arith.addf %520, %523 : vector<4x256xf32>
    %cst_483 = arith.constant 0.000000e+00 : f32
    %525 = vector.broadcast %cst_483 : f32 to vector<4x256xf32>
    %526 = arith.cmpf oge, %524, %525 : vector<4x256xf32>
    %527 = vector.broadcast %499 : f32 to vector<4x256xf32>
    %528 = arith.mulf %527, %524 : vector<4x256xf32>
    %529 = arith.select %526, %524, %528 : vector<4x256xi1>, vector<4x256xf32>
    %c4_484 = arith.constant 4 : index
    %c1_485 = arith.constant 1 : index
    %c0_486 = arith.constant 0 : index
    %c0_487 = arith.constant 0 : index
    %530 = vector.load %arg6[%c4_484, %c1_485, %c0_486, %c0_487] : memref<5x5x4x4xf32, #tpu.memory_space<vmem>>, vector<1x1x4x4xf32>
    %531 = vector.shape_cast %530 : vector<1x1x4x4xf32> to vector<4x4xf32>
    %cst_488 = arith.constant dense<0.000000e+00> : vector<4x256xf32>
    %532 = tpu.matmul %531, %529, %cst_488 {dimension_numbers = #tpu.dot_dimension_numbers<[1], [0], [0], [1], [0, 0, 1, 1], [], []>} : vector<4x4xf32>, vector<4x256xf32>, vector<4x256xf32> -> vector<4x256xf32>
    %533 = arith.addf %516, %532 : vector<4x256xf32>
    %c4_489 = arith.constant 4 : index
    %c2_490 = arith.constant 2 : index
    %c0_491 = arith.constant 0 : index
    %c0_492 = arith.constant 0 : index
    %534 = vector.load %arg4[%c4_489, %c2_490, %c0_491, %c0_492] : memref<5x5x4x1xf32, #tpu.memory_space<vmem>>, vector<1x1x4x1xf32>
    %535 = vector.shape_cast %534 : vector<1x1x4x1xf32> to vector<4x1xf32>
    %536 = vector.broadcast %535 : vector<4x1xf32> to vector<4x256xf32>
    %537 = arith.mulf %225, %536 : vector<4x256xf32>
    %c4_493 = arith.constant 4 : index
    %c2_494 = arith.constant 2 : index
    %c0_495 = arith.constant 0 : index
    %c0_496 = arith.constant 0 : index
    %538 = vector.load %arg5[%c4_493, %c2_494, %c0_495, %c0_496] : memref<5x5x4x1xf32, #tpu.memory_space<vmem>>, vector<1x1x4x1xf32>
    %539 = vector.shape_cast %538 : vector<1x1x4x1xf32> to vector<4x1xf32>
    %540 = vector.broadcast %539 : vector<4x1xf32> to vector<4x256xf32>
    %541 = arith.addf %537, %540 : vector<4x256xf32>
    %cst_497 = arith.constant 0.000000e+00 : f32
    %542 = vector.broadcast %cst_497 : f32 to vector<4x256xf32>
    %543 = arith.cmpf oge, %541, %542 : vector<4x256xf32>
    %544 = vector.broadcast %499 : f32 to vector<4x256xf32>
    %545 = arith.mulf %544, %541 : vector<4x256xf32>
    %546 = arith.select %543, %541, %545 : vector<4x256xi1>, vector<4x256xf32>
    %c4_498 = arith.constant 4 : index
    %c2_499 = arith.constant 2 : index
    %c0_500 = arith.constant 0 : index
    %c0_501 = arith.constant 0 : index
    %547 = vector.load %arg6[%c4_498, %c2_499, %c0_500, %c0_501] : memref<5x5x4x4xf32, #tpu.memory_space<vmem>>, vector<1x1x4x4xf32>
    %548 = vector.shape_cast %547 : vector<1x1x4x4xf32> to vector<4x4xf32>
    %cst_502 = arith.constant dense<0.000000e+00> : vector<4x256xf32>
    %549 = tpu.matmul %548, %546, %cst_502 {dimension_numbers = #tpu.dot_dimension_numbers<[1], [0], [0], [1], [0, 0, 1, 1], [], []>} : vector<4x4xf32>, vector<4x256xf32>, vector<4x256xf32> -> vector<4x256xf32>
    %550 = arith.addf %533, %549 : vector<4x256xf32>
    %c4_503 = arith.constant 4 : index
    %c3_504 = arith.constant 3 : index
    %c0_505 = arith.constant 0 : index
    %c0_506 = arith.constant 0 : index
    %551 = vector.load %arg4[%c4_503, %c3_504, %c0_505, %c0_506] : memref<5x5x4x1xf32, #tpu.memory_space<vmem>>, vector<1x1x4x1xf32>
    %552 = vector.shape_cast %551 : vector<1x1x4x1xf32> to vector<4x1xf32>
    %553 = vector.broadcast %552 : vector<4x1xf32> to vector<4x256xf32>
    %554 = arith.mulf %353, %553 : vector<4x256xf32>
    %c4_507 = arith.constant 4 : index
    %c3_508 = arith.constant 3 : index
    %c0_509 = arith.constant 0 : index
    %c0_510 = arith.constant 0 : index
    %555 = vector.load %arg5[%c4_507, %c3_508, %c0_509, %c0_510] : memref<5x5x4x1xf32, #tpu.memory_space<vmem>>, vector<1x1x4x1xf32>
    %556 = vector.shape_cast %555 : vector<1x1x4x1xf32> to vector<4x1xf32>
    %557 = vector.broadcast %556 : vector<4x1xf32> to vector<4x256xf32>
    %558 = arith.addf %554, %557 : vector<4x256xf32>
    %cst_511 = arith.constant 0.000000e+00 : f32
    %559 = vector.broadcast %cst_511 : f32 to vector<4x256xf32>
    %560 = arith.cmpf oge, %558, %559 : vector<4x256xf32>
    %561 = vector.broadcast %499 : f32 to vector<4x256xf32>
    %562 = arith.mulf %561, %558 : vector<4x256xf32>
    %563 = arith.select %560, %558, %562 : vector<4x256xi1>, vector<4x256xf32>
    %c4_512 = arith.constant 4 : index
    %c3_513 = arith.constant 3 : index
    %c0_514 = arith.constant 0 : index
    %c0_515 = arith.constant 0 : index
    %564 = vector.load %arg6[%c4_512, %c3_513, %c0_514, %c0_515] : memref<5x5x4x4xf32, #tpu.memory_space<vmem>>, vector<1x1x4x4xf32>
    %565 = vector.shape_cast %564 : vector<1x1x4x4xf32> to vector<4x4xf32>
    %cst_516 = arith.constant dense<0.000000e+00> : vector<4x256xf32>
    %566 = tpu.matmul %565, %563, %cst_516 {dimension_numbers = #tpu.dot_dimension_numbers<[1], [0], [0], [1], [0, 0, 1, 1], [], []>} : vector<4x4xf32>, vector<4x256xf32>, vector<4x256xf32> -> vector<4x256xf32>
    %567 = arith.addf %550, %566 : vector<4x256xf32>
    %c4_517 = arith.constant 4 : index
    %c4_518 = arith.constant 4 : index
    %c0_519 = arith.constant 0 : index
    %c0_520 = arith.constant 0 : index
    %568 = vector.load %arg4[%c4_517, %c4_518, %c0_519, %c0_520] : memref<5x5x4x1xf32, #tpu.memory_space<vmem>>, vector<1x1x4x1xf32>
    %569 = vector.shape_cast %568 : vector<1x1x4x1xf32> to vector<4x1xf32>
    %570 = vector.broadcast %569 : vector<4x1xf32> to vector<4x256xf32>
    %571 = arith.mulf %498, %570 : vector<4x256xf32>
    %c4_521 = arith.constant 4 : index
    %c4_522 = arith.constant 4 : index
    %c0_523 = arith.constant 0 : index
    %c0_524 = arith.constant 0 : index
    %572 = vector.load %arg5[%c4_521, %c4_522, %c0_523, %c0_524] : memref<5x5x4x1xf32, #tpu.memory_space<vmem>>, vector<1x1x4x1xf32>
    %573 = vector.shape_cast %572 : vector<1x1x4x1xf32> to vector<4x1xf32>
    %574 = vector.broadcast %573 : vector<4x1xf32> to vector<4x256xf32>
    %575 = arith.addf %571, %574 : vector<4x256xf32>
    %cst_525 = arith.constant 0.000000e+00 : f32
    %576 = vector.broadcast %cst_525 : f32 to vector<4x256xf32>
    %577 = arith.cmpf oge, %575, %576 : vector<4x256xf32>
    %578 = vector.broadcast %499 : f32 to vector<4x256xf32>
    %579 = arith.mulf %578, %575 : vector<4x256xf32>
    %580 = arith.select %577, %575, %579 : vector<4x256xi1>, vector<4x256xf32>
    %c4_526 = arith.constant 4 : index
    %c4_527 = arith.constant 4 : index
    %c0_528 = arith.constant 0 : index
    %c0_529 = arith.constant 0 : index
    %581 = vector.load %arg6[%c4_526, %c4_527, %c0_528, %c0_529] : memref<5x5x4x4xf32, #tpu.memory_space<vmem>>, vector<1x1x4x4xf32>
    %582 = vector.shape_cast %581 : vector<1x1x4x4xf32> to vector<4x4xf32>
    %cst_530 = arith.constant dense<0.000000e+00> : vector<4x256xf32>
    %583 = tpu.matmul %582, %580, %cst_530 {dimension_numbers = #tpu.dot_dimension_numbers<[1], [0], [0], [1], [0, 0, 1, 1], [], []>} : vector<4x4xf32>, vector<4x256xf32>, vector<4x256xf32> -> vector<4x256xf32>
    %584 = arith.addf %567, %583 : vector<4x256xf32>
    %c4_531 = arith.constant 4 : index
    %c0_532 = arith.constant 0 : index
    %c0_533 = arith.constant 0 : index
    %585 = vector.load %arg7[%c4_531, %c0_532, %c0_533] : memref<5x4x1xf32, #tpu.memory_space<vmem>>, vector<1x4x1xf32>
    %586 = vector.shape_cast %585 : vector<1x4x1xf32> to vector<4x1xf32>
    %587 = vector.broadcast %586 : vector<4x1xf32> to vector<4x256xf32>
    %588 = arith.addf %584, %587 : vector<4x256xf32>
    %cst_534 = arith.constant 0.000000e+00 : f32
    %589 = vector.broadcast %cst_534 : f32 to vector<4x256xf32>
    %590 = arith.cmpf oge, %588, %589 : vector<4x256xf32>
    %591 = vector.broadcast %500 : f32 to vector<4x256xf32>
    %592 = arith.mulf %591, %588 : vector<4x256xf32>
    %593 = arith.select %590, %588, %592 : vector<4x256xi1>, vector<4x256xf32>
    %c0_535 = arith.constant 0 : index
    %c128_536 = arith.constant 128 : index
    %594 = vector.load %arg11[%c0_535, %c128_536] : memref<4x512xf32, #tpu.memory_space<vmem>>, vector<4x256xf32>
    tpu.vector_store %arg11[%c0_535, %c128_536], %593 {strides = array<i32>} : memref<4x512xf32, #tpu.memory_space<vmem>>, vector<4x256xf32>,
    %c0_537 = arith.constant 0 : index
    %c111_538 = arith.constant 111 : index
    %595 = vector.load %arg11[%c0_537, %c111_538] : memref<4x512xf32, #tpu.memory_space<vmem>>, vector<4x256xf32>
    %596 = vector.broadcast %3 : vector<1x256xf32> to vector<4x256xf32>
    %597 = arith.mulf %595, %596 : vector<4x256xf32>
    %c4_539 = arith.constant 4 : index
    %c0_540 = arith.constant 0 : index
    %c0_541 = arith.constant 0 : index
    %c0_542 = arith.constant 0 : index
    %598 = vector.load %arg8[%c4_539, %c0_540, %c0_541, %c0_542] : memref<5x9x4x4xf32, #tpu.memory_space<vmem>>, vector<1x1x4x4xf32>
    %599 = vector.shape_cast %598 : vector<1x1x4x4xf32> to vector<4x4xf32>
    %cst_543 = arith.constant dense<0.000000e+00> : vector<4x256xf32>
    %600 = tpu.matmul %599, %597, %cst_543 {dimension_numbers = #tpu.dot_dimension_numbers<[1], [0], [0], [1], [0, 0, 1, 1], [], []>} : vector<4x4xf32>, vector<4x256xf32>, vector<4x256xf32> -> vector<4x256xf32>
    %c0_544 = arith.constant 0 : index
    %c112_545 = arith.constant 112 : index
    %601 = vector.load %arg11[%c0_544, %c112_545] : memref<4x512xf32, #tpu.memory_space<vmem>>, vector<4x256xf32>
    %602 = vector.broadcast %5 : vector<1x256xf32> to vector<4x256xf32>
    %603 = arith.mulf %601, %602 : vector<4x256xf32>
    %c4_546 = arith.constant 4 : index
    %c1_547 = arith.constant 1 : index
    %c0_548 = arith.constant 0 : index
    %c0_549 = arith.constant 0 : index
    %604 = vector.load %arg8[%c4_546, %c1_547, %c0_548, %c0_549] : memref<5x9x4x4xf32, #tpu.memory_space<vmem>>, vector<1x1x4x4xf32>
    %605 = vector.shape_cast %604 : vector<1x1x4x4xf32> to vector<4x4xf32>
    %cst_550 = arith.constant dense<0.000000e+00> : vector<4x256xf32>
    %606 = tpu.matmul %605, %603, %cst_550 {dimension_numbers = #tpu.dot_dimension_numbers<[1], [0], [0], [1], [0, 0, 1, 1], [], []>} : vector<4x4xf32>, vector<4x256xf32>, vector<4x256xf32> -> vector<4x256xf32>
    %607 = arith.addf %600, %606 : vector<4x256xf32>
    %c0_551 = arith.constant 0 : index
    %c113_552 = arith.constant 113 : index
    %608 = vector.load %arg11[%c0_551, %c113_552] : memref<4x512xf32, #tpu.memory_space<vmem>>, vector<4x256xf32>
    %609 = vector.broadcast %7 : vector<1x256xf32> to vector<4x256xf32>
    %610 = arith.mulf %608, %609 : vector<4x256xf32>
    %c4_553 = arith.constant 4 : index
    %c2_554 = arith.constant 2 : index
    %c0_555 = arith.constant 0 : index
    %c0_556 = arith.constant 0 : index
    %611 = vector.load %arg8[%c4_553, %c2_554, %c0_555, %c0_556] : memref<5x9x4x4xf32, #tpu.memory_space<vmem>>, vector<1x1x4x4xf32>
    %612 = vector.shape_cast %611 : vector<1x1x4x4xf32> to vector<4x4xf32>
    %cst_557 = arith.constant dense<0.000000e+00> : vector<4x256xf32>
    %613 = tpu.matmul %612, %610, %cst_557 {dimension_numbers = #tpu.dot_dimension_numbers<[1], [0], [0], [1], [0, 0, 1, 1], [], []>} : vector<4x4xf32>, vector<4x256xf32>, vector<4x256xf32> -> vector<4x256xf32>
    %614 = arith.addf %607, %613 : vector<4x256xf32>
    %c0_558 = arith.constant 0 : index
    %c127_559 = arith.constant 127 : index
    %615 = vector.load %arg11[%c0_558, %c127_559] : memref<4x512xf32, #tpu.memory_space<vmem>>, vector<4x256xf32>
    %616 = vector.broadcast %9 : vector<1x256xf32> to vector<4x256xf32>
    %617 = arith.mulf %615, %616 : vector<4x256xf32>
    %c4_560 = arith.constant 4 : index
    %c3_561 = arith.constant 3 : index
    %c0_562 = arith.constant 0 : index
    %c0_563 = arith.constant 0 : index
    %618 = vector.load %arg8[%c4_560, %c3_561, %c0_562, %c0_563] : memref<5x9x4x4xf32, #tpu.memory_space<vmem>>, vector<1x1x4x4xf32>
    %619 = vector.shape_cast %618 : vector<1x1x4x4xf32> to vector<4x4xf32>
    %cst_564 = arith.constant dense<0.000000e+00> : vector<4x256xf32>
    %620 = tpu.matmul %619, %617, %cst_564 {dimension_numbers = #tpu.dot_dimension_numbers<[1], [0], [0], [1], [0, 0, 1, 1], [], []>} : vector<4x4xf32>, vector<4x256xf32>, vector<4x256xf32> -> vector<4x256xf32>
    %621 = arith.addf %614, %620 : vector<4x256xf32>
    %c0_565 = arith.constant 0 : index
    %c128_566 = arith.constant 128 : index
    %622 = vector.load %arg11[%c0_565, %c128_566] : memref<4x512xf32, #tpu.memory_space<vmem>>, vector<4x256xf32>
    %623 = vector.broadcast %11 : vector<1x256xf32> to vector<4x256xf32>
    %624 = arith.mulf %622, %623 : vector<4x256xf32>
    %c4_567 = arith.constant 4 : index
    %c4_568 = arith.constant 4 : index
    %c0_569 = arith.constant 0 : index
    %c0_570 = arith.constant 0 : index
    %625 = vector.load %arg8[%c4_567, %c4_568, %c0_569, %c0_570] : memref<5x9x4x4xf32, #tpu.memory_space<vmem>>, vector<1x1x4x4xf32>
    %626 = vector.shape_cast %625 : vector<1x1x4x4xf32> to vector<4x4xf32>
    %cst_571 = arith.constant dense<0.000000e+00> : vector<4x256xf32>
    %627 = tpu.matmul %626, %624, %cst_571 {dimension_numbers = #tpu.dot_dimension_numbers<[1], [0], [0], [1], [0, 0, 1, 1], [], []>} : vector<4x4xf32>, vector<4x256xf32>, vector<4x256xf32> -> vector<4x256xf32>
    %628 = arith.addf %621, %627 : vector<4x256xf32>
    %c0_572 = arith.constant 0 : index
    %c129_573 = arith.constant 129 : index
    %629 = vector.load %arg11[%c0_572, %c129_573] : memref<4x512xf32, #tpu.memory_space<vmem>>, vector<4x256xf32>
    %630 = vector.broadcast %13 : vector<1x256xf32> to vector<4x256xf32>
    %631 = arith.mulf %629, %630 : vector<4x256xf32>
    %c4_574 = arith.constant 4 : index
    %c5_575 = arith.constant 5 : index
    %c0_576 = arith.constant 0 : index
    %c0_577 = arith.constant 0 : index
    %632 = vector.load %arg8[%c4_574, %c5_575, %c0_576, %c0_577] : memref<5x9x4x4xf32, #tpu.memory_space<vmem>>, vector<1x1x4x4xf32>
    %633 = vector.shape_cast %632 : vector<1x1x4x4xf32> to vector<4x4xf32>
    %cst_578 = arith.constant dense<0.000000e+00> : vector<4x256xf32>
    %634 = tpu.matmul %633, %631, %cst_578 {dimension_numbers = #tpu.dot_dimension_numbers<[1], [0], [0], [1], [0, 0, 1, 1], [], []>} : vector<4x4xf32>, vector<4x256xf32>, vector<4x256xf32> -> vector<4x256xf32>
    %635 = arith.addf %628, %634 : vector<4x256xf32>
    %c0_579 = arith.constant 0 : index
    %c143_580 = arith.constant 143 : index
    %636 = vector.load %arg11[%c0_579, %c143_580] : memref<4x512xf32, #tpu.memory_space<vmem>>, vector<4x256xf32>
    %637 = vector.broadcast %15 : vector<1x256xf32> to vector<4x256xf32>
    %638 = arith.mulf %636, %637 : vector<4x256xf32>
    %c4_581 = arith.constant 4 : index
    %c6_582 = arith.constant 6 : index
    %c0_583 = arith.constant 0 : index
    %c0_584 = arith.constant 0 : index
    %639 = vector.load %arg8[%c4_581, %c6_582, %c0_583, %c0_584] : memref<5x9x4x4xf32, #tpu.memory_space<vmem>>, vector<1x1x4x4xf32>
    %640 = vector.shape_cast %639 : vector<1x1x4x4xf32> to vector<4x4xf32>
    %cst_585 = arith.constant dense<0.000000e+00> : vector<4x256xf32>
    %641 = tpu.matmul %640, %638, %cst_585 {dimension_numbers = #tpu.dot_dimension_numbers<[1], [0], [0], [1], [0, 0, 1, 1], [], []>} : vector<4x4xf32>, vector<4x256xf32>, vector<4x256xf32> -> vector<4x256xf32>
    %642 = arith.addf %635, %641 : vector<4x256xf32>
    %c0_586 = arith.constant 0 : index
    %c144_587 = arith.constant 144 : index
    %643 = vector.load %arg11[%c0_586, %c144_587] : memref<4x512xf32, #tpu.memory_space<vmem>>, vector<4x256xf32>
    %644 = vector.broadcast %17 : vector<1x256xf32> to vector<4x256xf32>
    %645 = arith.mulf %643, %644 : vector<4x256xf32>
    %c4_588 = arith.constant 4 : index
    %c7_589 = arith.constant 7 : index
    %c0_590 = arith.constant 0 : index
    %c0_591 = arith.constant 0 : index
    %646 = vector.load %arg8[%c4_588, %c7_589, %c0_590, %c0_591] : memref<5x9x4x4xf32, #tpu.memory_space<vmem>>, vector<1x1x4x4xf32>
    %647 = vector.shape_cast %646 : vector<1x1x4x4xf32> to vector<4x4xf32>
    %cst_592 = arith.constant dense<0.000000e+00> : vector<4x256xf32>
    %648 = tpu.matmul %647, %645, %cst_592 {dimension_numbers = #tpu.dot_dimension_numbers<[1], [0], [0], [1], [0, 0, 1, 1], [], []>} : vector<4x4xf32>, vector<4x256xf32>, vector<4x256xf32> -> vector<4x256xf32>
    %649 = arith.addf %642, %648 : vector<4x256xf32>
    %c0_593 = arith.constant 0 : index
    %c145_594 = arith.constant 145 : index
    %650 = vector.load %arg11[%c0_593, %c145_594] : memref<4x512xf32, #tpu.memory_space<vmem>>, vector<4x256xf32>
    %651 = vector.broadcast %19 : vector<1x256xf32> to vector<4x256xf32>
    %652 = arith.mulf %650, %651 : vector<4x256xf32>
    %c4_595 = arith.constant 4 : index
    %c8_596 = arith.constant 8 : index
    %c0_597 = arith.constant 0 : index
    %c0_598 = arith.constant 0 : index
    %653 = vector.load %arg8[%c4_595, %c8_596, %c0_597, %c0_598] : memref<5x9x4x4xf32, #tpu.memory_space<vmem>>, vector<1x1x4x4xf32>
    %654 = vector.shape_cast %653 : vector<1x1x4x4xf32> to vector<4x4xf32>
    %cst_599 = arith.constant dense<0.000000e+00> : vector<4x256xf32>
    %655 = tpu.matmul %654, %652, %cst_599 {dimension_numbers = #tpu.dot_dimension_numbers<[1], [0], [0], [1], [0, 0, 1, 1], [], []>} : vector<4x4xf32>, vector<4x256xf32>, vector<4x256xf32> -> vector<4x256xf32>
    %656 = arith.addf %649, %655 : vector<4x256xf32>
    %c4_600 = arith.constant 4 : index
    %c0_601 = arith.constant 0 : index
    %c0_602 = arith.constant 0 : index
    %657 = vector.load %arg9[%c4_600, %c0_601, %c0_602] : memref<5x4x1xf32, #tpu.memory_space<vmem>>, vector<1x4x1xf32>
    %658 = vector.shape_cast %657 : vector<1x4x1xf32> to vector<4x1xf32>
    %659 = vector.broadcast %658 : vector<4x1xf32> to vector<4x256xf32>
    %660 = arith.addf %656, %659 : vector<4x256xf32>
    %c0_603 = arith.constant 0 : index
    %c0_604 = arith.constant 0 : index
    %661 = vector.load %arg10[%c0_603, %c0_604] : memref<4x256xf32, #tpu.memory_space<vmem>>, vector<4x256xf32>
    tpu.vector_store %arg10[%c0_603, %c0_604], %660 {strides = array<i32>} : memref<4x256xf32, #tpu.memory_space<vmem>>, vector<4x256xf32>,
    return
  }
  func.func @transform_0(%arg0: i32) -> (i32, i32) {
    %c0_i32 = arith.constant 0 : i32
    %c0_i32_0 = arith.constant 0 : i32
    %c0_i32_1 = arith.constant 0 : i32
    return %c0_i32, %c0_i32_0 : i32, i32
  }
  func.func @transform_1(%arg0: i32) -> (i32, i32, i32) {
    %c0_i32 = arith.constant 0 : i32
    %c0_i32_0 = arith.constant 0 : i32
    %c0_i32_1 = arith.constant 0 : i32
    %c0_i32_2 = arith.constant 0 : i32
    return %c0_i32, %c0_i32_0, %c0_i32_1 : i32, i32, i32
  }
  func.func @transform_2(%arg0: i32) -> (i32, i32) {
    %c0_i32 = arith.constant 0 : i32
    %c0_i32_0 = arith.constant 0 : i32
    return %c0_i32, %arg0 : i32, i32
  }
  func.func @transform_3(%arg0: i32) -> (i32, i32, i32, i32) {
    %c0_i32 = arith.constant 0 : i32
    %c0_i32_0 = arith.constant 0 : i32
    %c0_i32_1 = arith.constant 0 : i32
    %c0_i32_2 = arith.constant 0 : i32
    %c0_i32_3 = arith.constant 0 : i32
    return %c0_i32, %c0_i32_0, %c0_i32_1, %c0_i32_2 : i32, i32, i32, i32
  }
  func.func @transform_4(%arg0: i32) -> (i32, i32, i32, i32) {
    %c0_i32 = arith.constant 0 : i32
    %c0_i32_0 = arith.constant 0 : i32
    %c0_i32_1 = arith.constant 0 : i32
    %c0_i32_2 = arith.constant 0 : i32
    %c0_i32_3 = arith.constant 0 : i32
    return %c0_i32, %c0_i32_0, %c0_i32_1, %c0_i32_2 : i32, i32, i32, i32
  }
  func.func @transform_5(%arg0: i32) -> (i32, i32, i32, i32) {
    %c0_i32 = arith.constant 0 : i32
    %c0_i32_0 = arith.constant 0 : i32
    %c0_i32_1 = arith.constant 0 : i32
    %c0_i32_2 = arith.constant 0 : i32
    %c0_i32_3 = arith.constant 0 : i32
    return %c0_i32, %c0_i32_0, %c0_i32_1, %c0_i32_2 : i32, i32, i32, i32
  }
  func.func @transform_6(%arg0: i32) -> (i32, i32, i32) {
    %c0_i32 = arith.constant 0 : i32
    %c0_i32_0 = arith.constant 0 : i32
    %c0_i32_1 = arith.constant 0 : i32
    %c0_i32_2 = arith.constant 0 : i32
    return %c0_i32, %c0_i32_0, %c0_i32_1 : i32, i32, i32
  }
  func.func @transform_7(%arg0: i32) -> (i32, i32, i32, i32) {
    %c0_i32 = arith.constant 0 : i32
    %c0_i32_0 = arith.constant 0 : i32
    %c0_i32_1 = arith.constant 0 : i32
    %c0_i32_2 = arith.constant 0 : i32
    %c0_i32_3 = arith.constant 0 : i32
    return %c0_i32, %c0_i32_0, %c0_i32_1, %c0_i32_2 : i32, i32, i32, i32
  }
  func.func @transform_8(%arg0: i32) -> (i32, i32, i32) {
    %c0_i32 = arith.constant 0 : i32
    %c0_i32_0 = arith.constant 0 : i32
    %c0_i32_1 = arith.constant 0 : i32
    %c0_i32_2 = arith.constant 0 : i32
    return %c0_i32, %c0_i32_0, %c0_i32_1 : i32, i32, i32
  }
  func.func @transform_9(%arg0: i32) -> (i32, i32) {
    %c0_i32 = arith.constant 0 : i32
    %c0_i32_0 = arith.constant 0 : i32
    return %c0_i32, %arg0 : i32, i32
  }
}

</mosaic_0001>

<bundles_post_ra>
// kernel: dense_block_forward.1
= control target key start
LH: loop header
LB: loop body
LE: loop exit
PB: predicated region body
PF: predicated region fallthrough
CT: control target
= control target key end

     0   :  { %14 = vsyncpa [#allocation4], 0  ;;  %s5455_s30 = smov 0   ;;  %s6564_s0 = inlined_call_operand.vmem [shape: f32[5,2], index: 0, kind: input, shape index: {}]   ;;  %s6565_s1 = inlined_call_operand.vmem [shape: f32[9,1,256], index: 1, kind: input, shape index: {}]   ;;  %s6566_s2 = inlined_call_operand.vmem [shape: f32[4,512], index: 2, kind: input, shape index: {}]   ;;  %s6567_s3 = inlined_call_operand.vmem [shape: f32[5,5,4,1], index: 3, kind: input, shape index: {}]   ;;  %s6568_s4 = inlined_call_operand.vmem [shape: f32[5,5,4,1], index: 4, kind: input, shape index: {}]   ;;  %s6569_s5 = inlined_call_operand.vmem [shape: f32[5,5,4,4], index: 5, kind: input, shape index: {}]   ;;  %s6570_s6 = inlined_call_operand.vmem [shape: f32[5,4,1], index: 6, kind: input, shape index: {}]   ;;  %s6571_s7 = inlined_call_operand.vmem [shape: f32[5,9,4,4], index: 7, kind: input, shape index: {}]   ;;  %s6572_s8 = inlined_call_operand.vmem [shape: f32[5,4,1], index: 8, kind: input, shape index: {}]   ;;  %s6573_s9 = inlined_call_operand.vmem [shape: f32[4,512], index: 9, kind: output, shape index: {}]  }
   0x1 LB: > { %s4967_s10 = sadd.s32 4294967295, %s5391_s30   ;;  %p4969_p0 = scmp.ge.s32.totalorder %s5391_s30, 1  ;;  %s5391_s30 = sphi %s5455_s30, %s20_s30  }
   0x2   : > { %p245_p1 = scmp.lt.s32.totalorder %s5391_s30, 3  ;;  %s257_s13 = sshll.u32 %s6564_s0, 4  ;;  %s258_s13 = int_to_ptr.vmem [resolvable:$true] %s257_s13 }
   0x3   : > { %p5339_p3 = scmp.eq.s32.totalorder %s4967_s10, 0  ;;  %s5393_s14 = smov [#allocation3]  }
   0x4   : > { %p246_p2 = pnand %p4969_p0, %p245_p1 }
   0x6   : > { %p5335_p4 = pneg %p246_p2  ;;  %300 = sbr.rel (%p246_p2) target bundleno = 2556 (0x9fc), region = 56 }
   0x8   : > { %p5336_p5 = pnand %p5339_p3, %p5335_p4 }
   0xa   : > { %5338 = dma.vmem_to_smem (!%p5336_p5), %s258_s13, 128, %s5393_s14, [#allocation4]  }
   0xb   : > { %5386 = dma.done.wait (%p5339_p3), [#allocation4], 128  }
   0xc   : > { %5388 = vsyncadd (%p5339_p3), [#allocation4], 4294967168 }
   0xd   : > { %307 = sfence }
   0xe   : > { %v372_v0 = vld [vmem:[%s6567_s3] sm:$0xf]  ;;  %v5394_v1 = vmov 0   ;;  %s4974_s21 = sshll.u32 %s4967_s10, 1  ;;  %vm413_vm0 = vcmask 1043456   ;;  %s5395_s24 = smov 112  }
   0xf   : > { %5361 = vset.pattern.permute.xlu0 %v5394_v1  ;;  %5362 = vset.pattern.permute.xlu1 %v5394_v1  ;;  %v383_v2 = vld [vmem:[%s6568_s4] sm:$0xf]  ;;  %p339_p6 = scmp.lt.s32.totalorder %s4974_s21, 3  ;;  %v4980_v9 = vld [vmem:[%s6565_s1 + $0x6] sm:$0x3]  ;;  %s5397_s17 = smov 127  }
  0x10   : > { %375 = vperm.xlu0 %5361, %v372_v0   ;;  %5363 = vset.pattern.permute.xlu2 %v5394_v1  ;;  %v399_v3 = vld [vmem:[%s6570_s6] sm:$0xf]  ;;  %v4982_v10 = vld [vmem:[%s6565_s1 + $0xa] sm:$0x3]  ;;  %v4984_v11 = vld [vmem:[%s6565_s1 + $0xe] sm:$0x3] }
  0x11   : > { %402 = vperm.xlu1 %5362, %v399_v3   ;;  %v4978_v4 = vld [vmem:[%s6565_s1 + $0x2] sm:$0x3]  ;;  %s6577_s21 = smov (!%p339_p6, %s4974_s21), 3  ;;  %v719_v12 = vperm.slane %v4980_v9, 0  ;;  %v720_v13 = vperm.slane %v4980_v9, 1  ;;  %v866_v14 = vperm.slane %v4982_v10, 0 }
  0x12   : > { %v490_v5 = vperm.slane %v4978_v4, 1  ;;  %v489_v6 = vperm.slane %v4978_v4, 0  ;;  %v867_v15 = vperm.slane %v4982_v10, 1  ;;  %v4985_v16 = vld [vmem:[%s6565_s1 + $0x10] sm:$0x3]  ;;  %v1031_v17 = vperm.slane %v4984_v11, 1 }
  0x13   : > { %v352_v18 = vld [vmem:[%s6565_s1] sm:$0x3]  ;;  %v721_v19 = vrot.slane %v720_v13, 4  ;;  %v4979_v23 = vld [vmem:[%s6565_s1 + $0x4] sm:$0x3]  ;;  %v1113_v26 = vperm.slane %v4985_v16, 1 }
  0x14   : > { %v491_v7 = vrot.slane %v490_v5, 4  ;;  %v868_v20 = vrot.slane %v867_v15, 4  ;;  %v474_v21 = vperm.slane %v352_v18, 0  ;;  %v475_v22 = vperm.slane %v352_v18, 1  ;;  %s6574_s18 = sshll.u32 %s6577_s21, 2  ;;  %s5398_s19 = smov 1  }
  0x15   : > { %v5396_v24 = vmov 839922192   ;;  %v722_v27 = vsel %vm413_vm0, %v719_v12, %v721_v19  ;;  %v636_v30 = vperm.slane %v4979_v23, 1  ;;  %v1030_v32 = vperm.slane %v4984_v11, 0  ;;  %s5399_s20 = smov 111   ;;  %s370_s22 = sld [smem:[#allocation3]] }
  0x16   : > { %v492_v8 = vsel %vm413_vm0, %v489_v6, %v491_v7  ;;  %v378_v25 = vunpack.c.l.s4 %v5396_v24  ;;  %v869_v28 = vsel %vm413_vm0, %v866_v14, %v868_v20  ;;  %v476_v29 = vrot.slane %v475_v22, 4  ;;  %s5514_s26 = scalar_lea.vmem %s6566_s2, %s6574_s18  ;;  %v4983_v40 = vld [vmem:[%s6565_s1 + $0xc] sm:$0x3]  ;;  %s5400_s29 = smov 16   ;;  %v398_v57 = vld [vmem:[%s6569_s5] sm:$0xf] }
  0x17   : > { %v1032_v33 = vrot.slane %v1031_v17, 4  ;;  %v1112_v36 = vperm.slane %v4985_v16, 0  ;;  %v1114_v37 = vrot.slane %v1113_v26, 4  ;;  %v635_v38 = vperm.slane %v4979_v23, 0  ;;  %v5522_v43 = vld [vmem:[%s5514_s26] sm:$0xff]  ;;  %s5401_s10 = smov 17  }
  0x18   : > { %386 = vperm.xlu0 %5361, %v383_v2   ;;  %v477_v34 = vsel %vm413_vm0, %v474_v21, %v476_v29  ;;  %v5505_v35 = vunpack.c.0.s8 %v378_v25  ;;  %v637_v39 = vrot.slane %v636_v30, 4  ;;  %v949_v46 = vperm.slane %v4983_v40, 1  ;;  %s5402_s11 = smov 113   ;;  %s5403_s12 = smov 15   ;;  %v4981_v29 = vld [vmem:[%s6565_s1 + $0x8] sm:$0x3] }
  0x19   : > { %493 = vrot.lane.b32.xlu1 %v492_v8, %s5395_s24  ;;  %478 = vrot.lane.b32.xlu2 %v477_v34, %s5399_s20  ;;  %v1033_v41 = vsel %vm413_vm0, %v1030_v32, %v1032_v33  ;;  %v1115_v44 = vsel %vm413_vm0, %v1112_v36, %v1114_v37  ;;  %v948_v51 = vperm.slane %v4983_v40, 0  ;;  %vm409_vm2 = vcmask 31744   ;;  %s4986_s15 = sld [smem:[#allocation3 + $0x1]] }
  0x1a   : > { %v638_v45 = vsel %vm413_vm0, %v635_v38, %v637_v39  ;;  %v950_v52 = vrot.slane %v949_v46, 4  ;;  %v5404_v60 = vmov 0.0   ;;  %vm496_vm5 = vcmask 916480   ;;  %s5035_s28 = sld [smem:[#allocation3 + $0x80]] }
  0x1b   : > { %v395_v50 = vstv %s370_s22  ;;  %350 = vst [vmem:[#allocation2] sm:$0xff] %v5404_v60  ;;  %vm481_vm6 = vcmask 908288   ;;  %vm642_vm7 = vcmask 924672   ;;  %vm726_vm8 = vcmask 1039360   ;;  %s5036_s22 = sld [smem:[#allocation3 + $0x81]] }
  0x1c   : > { %v951_v55 = vsel %vm413_vm0, %v948_v51, %v950_v52  ;;  %351 = vst [vmem:[#allocation2 + $0x8] sm:$0xff] %v5404_v60  ;;  %v803_v37 = vperm.slane %v4981_v29, 1  ;;  %v802_v40 = vperm.slane %v4981_v29, 0  ;;  %vm748_vm9 = vcmask 7168   ;;  %s5098_s13 = sld [smem:[#allocation3 + $0x100]] }
  0x1d   : > { %vm664_vm10 = vcmask 121856   ;;  %vm518_vm11 = vcmask 130048   ;;  %vm582_vm12 = vcmask 138240   ;;  %s5099_s25 = sld [smem:[#allocation3 + $0x101]] }
  0x1e   : > { %s5168_s23 = sld [smem:[#allocation3 + $0x180]] }
  0x1f   : > { %v460_v63 = vstv %s4986_s15  ;;  %s5245_s27 = sld [smem:[#allocation3 + $0x200]] }
  0x20   : > { %723 = vrot.lane.b32.xlu0 %v722_v27, %s5397_s17 }
  0x21   : > { %870 = vrot.lane.b32.xlu1 %v869_v28, %s5398_s19  ;;  %639 = vrot.lane.b32.xlu2 %v638_v45, %s5402_s11 }
  0x28   : > { %1034 = vrot.lane.b32.xlu0 %v1033_v41, %s5400_s29  ;;  %v804_v41 = vrot.slane %v803_v37, 4  ;;  %v5037_v37 = vld [vmem:[%s6567_s3 + $0x14] sm:$0xf] }
  0x29   : > { %1116 = vrot.lane.b32.xlu1 %v1115_v44, %s5401_s10  ;;  %952 = vrot.lane.b32.xlu2 %v951_v55, %s5403_s12 }
  0x73   : > { %v479_v11 = vpop.permute.xlu2 %478 }
  0x74   : > { %v5551_v16 = vrot.slane %v479_v11, 4 }
  0x76   : > { %v5556_v18 = vsel %vm481_vm6, %v5551_v16, %v479_v11 }
  0x7b   : > { %v640_v19 = vpop.permute.xlu2 %639 }
  0x7c   : > { %v5559_v21 = vrot.slane %v640_v19, 4 }
  0x7e   : > { %v5567_v26 = vsel %vm642_vm7, %v5559_v21, %v640_v19 }
  0x82   : > { %v376_v31 = vpop.permute.xlu0 %375 }
  0x83   : > { %v380_v42 = vperm.slane %v376_v31, %v5505_v35  ;;  %v403_v61 = vpop.permute.xlu1 %402 }
  0x85   : > { %v382_v48 = vmul.f32 %v380_v42, %v5522_v43 }
  0x8a   : > { %v387_v47 = vpop.permute.xlu0 %386 }
  0x8b   : > { %v391_v49 = vperm.slane %v387_v47, %v5505_v35  ;;  %v494_v9 = vpop.permute.xlu1 %493 }
  0x8c   : > { %v5544_v10 = vrot.slane %v494_v9, 4 }
  0x8d   : > { %v393_v53 = vadd.f32 %v391_v49, %v382_v48  ;;  %v864_v49 = vld [vmem:[#allocation2 + $0xc] sm:$0xf] }
  0x8e   : > { %v5548_v12 = vsel %vm496_vm5, %v5544_v10, %v494_v9 }
  0x8f   : > { %vm394_vm1 = vcmp.ge.f32.partialorder %v393_v53, 0.0  ;;  %v396_v54 = vmul.f32 %v395_v50, %v393_v53  ;;  %v5589_v50 = vsel %vm413_vm0, %v802_v40, %v804_v41  ;;  %v5051_v40 = vld [vmem:[%s6570_s6 + $0x4] sm:$0xf] }
  0x91   : > { %v397_v56 = vsel %vm394_vm1, %v393_v53, %v396_v54 }
  0x92   : > { %406 = vst [vmem:[#allocation1] ss:$2 sm:$0xff] %v397_v56  ;;  %v724_v28 = vpop.permute.xlu0 %723 }
  0x93   : > { %v5572_v30 = vrot.slane %v724_v28, 4  ;;  %v871_v48 = vpop.permute.xlu1 %870 }
  0x94   : > { %v5591_v51 = vrot.slane %v871_v48, 4 }
  0x95   : > { %v5581_v38 = vsel %vm726_vm8, %v5572_v30, %v724_v28 }
  0x96   : > { %v877_v52 = vmul.f32 %v5591_v51, %v864_v49 }
  0x99   : > { %v407_v58 = vld.sshfl [vmem:[#allocation1] sm:$0xff pattern:$0x75316420]  ;;  %v408_v59 = vld.sshfl [vmem:[#allocation1 + $0x8] sm:$0xff pattern:$0x75316420] }
  0x9a   : > { %4987 = vmatpush.msk.msra.mxu0 %vm413_vm0, %v407_v58  ;;  %4989 = vmatpush.msk.msra.mxu1 %vm413_vm0, %v408_v59  ;;  %v946_v58 = vld [vmem:[#allocation2 + $0xc] sm:$0xf]  ;;  %v5601_v59 = vsel %vm748_vm9, %v5591_v51, %v871_v48 }
  0x9b   : > { %4988 = vmatmul.msk.f32.vlgmr.msra.gmra.mxu0 %vm409_vm2, %v398_v57  ;;  %4990 = vmatmul.msk.f32.vlgmr.msra.gmra.mxu1 %vm409_vm2, %v398_v57  ;;  %v953_v57 = vpop.permute.xlu2 %952 }
  0x9c   : > { %v5603_v60 = vrot.slane %v953_v57, 4 }
 0x118   : > { %v435_v62 = vpop.f32.mrf.mxu0  ;;  %v455_v0 = vpop.f32.mrf.mxu1 }
 0x119   : > { %v436_v1 = vadd.f32 %v435_v62, %v403_v61  ;;  %v456_v2 = vadd.f32 %v455_v0, %v403_v61  ;;  %v959_v61 = vmul.f32 %v5603_v60, %v946_v58 }
 0x11b   : > { %v461_v3 = vmul.f32 %v460_v63, %v436_v1  ;;  %vm459_vm3 = vcmp.ge.f32.partialorder %v456_v2, 0.0  ;;  %v462_v4 = vmul.f32 %v460_v63, %v456_v2  ;;  %vm458_vm4 = vcmp.ge.f32.partialorder %v436_v1, 0.0 }
 0x11d   : > { %v464_v5 = vsel %vm459_vm3, %v456_v2, %v462_v4  ;;  %v463_v7 = vsel %vm458_vm4, %v436_v1, %v461_v3  ;;  %v1035_v2 = vpop.permute.xlu0 %1034  ;;  %v1028_v3 = vld [vmem:[#allocation2 + $0xc] sm:$0xf] }
 0x11e   : > { %v467_v6 = vrot.slane %v464_v5, 4  ;;  %v5613_v4 = vrot.slane %v1035_v2, 4  ;;  %v5617_v5 = vsel %vm664_vm10, %v5603_v60, %v953_v57 }
 0x120   : > { %v5541_v8 = vsel %vm413_vm0, %v463_v7, %v467_v6  ;;  %v1041_v6 = vmul.f32 %v5613_v4, %v1028_v3 }
 0x121   : > { %470 = vst [vmem:[#allocation2 + $0x4] sm:$0xff] %v5541_v8  ;;  %v807_v53 = vmul.f32 %v5589_v50, %v5541_v8  ;;  %v876_v62 = vmul.f32 %v5601_v59, %v5541_v8  ;;  %v958_v7 = vmul.f32 %v5617_v5, %v5541_v8 }
 0x128   : > { %v471_v13 = vld [vmem:[#allocation2] sm:$0xff]  ;;  %v472_v14 = vld [vmem:[#allocation2 + $0x8] sm:$0xf] }
 0x129   : > { %v500_v15 = vmul.f32 %v5548_v12, %v471_v13  ;;  %v501_v17 = vmul.f32 %v5544_v10, %v472_v14  ;;  %v485_v20 = vmul.f32 %v5556_v18, %v471_v13  ;;  %v486_v24 = vmul.f32 %v5551_v16, %v472_v14  ;;  %v633_v27 = vld [vmem:[#allocation2 + $0x8] sm:$0xf] }
 0x12a   : > { %v646_v31 = vmul.f32 %v5567_v26, %v471_v13  ;;  %v647_v34 = vmul.f32 %v5559_v21, %v633_v27  ;;  %v717_v39 = vld [vmem:[#allocation2 + $0x8] sm:$0xf]  ;;  %v730_v42 = vmul.f32 %v5581_v38, %v471_v13  ;;  %v1117_v13 = vpop.permute.xlu1 %1116 }
 0x12b   : > { %506 = vst [vmem:[#allocation1] ss:$2 sm:$0xff] %v500_v15  ;;  %v731_v44 = vmul.f32 %v5572_v30, %v717_v39  ;;  %v1110_v15 = vld [vmem:[#allocation2 + $0xc] sm:$0xf]  ;;  %v5629_v19 = vrot.slane %v1117_v13, 4 }
 0x12c   : > { %508 = vst [vmem:[#allocation1 + $0x10] ss:$2 sm:$0xff] %v501_v17  ;;  %v5627_v17 = vsel %vm518_vm11, %v5613_v4, %v1035_v2  ;;  %v5041_v39 = vld [vmem:[%s6568_s4 + $0x18] sm:$0xf] }
 0x12d   : > { %v5638_v27 = vsel %vm582_vm12, %v5629_v19, %v1117_v13 }
 0x12e   : > { %v1122_v28 = vmul.f32 %v5638_v27, %v5541_v8 }
 0x132   : > { %v509_v22 = vld.sshfl [vmem:[#allocation1] sm:$0xff pattern:$0x75316420]  ;;  %v510_v23 = vld.sshfl [vmem:[#allocation1 + $0x8] sm:$0xff pattern:$0x75316420] }
 0x133   : > { %570 = vst [vmem:[#allocation1] ss:$2 sm:$0xff] %v485_v20  ;;  %v511_v25 = vld.sshfl [vmem:[#allocation1 + $0x10] sm:$0xff pattern:$0x75316420]  ;;  %514 = vrot.lane.b32.xlu2 %v510_v23, %s5400_s29  ;;  %512 = vrot.lane.b32.xlu1 %v509_v22, %s5400_s29  ;;  %v1123_v20 = vmul.f32 %v5629_v19, %v1110_v15  ;;  %v1040_v22 = vmul.f32 %v5627_v17, %v5541_v8 }
 0x134   : > { %572 = vst [vmem:[#allocation1 + $0x10] ss:$2 sm:$0xff] %v486_v24  ;;  %516 = vrot.lane.b32.xlu0 %v511_v25, %s5400_s29  ;;  %v1191_v8 = vld [vmem:[%s6572_s8] sm:$0xf] }
 0x13a   : > { %v573_v32 = vld.sshfl [vmem:[#allocation1] sm:$0xff pattern:$0x75316420]  ;;  %v574_v33 = vld.sshfl [vmem:[#allocation1 + $0x8] sm:$0xff pattern:$0x75316420] }
 0x13b   : > { %v575_v36 = vld.sshfl [vmem:[#allocation1 + $0x10] sm:$0xff pattern:$0x75316420]  ;;  %652 = vst [vmem:[#allocation1] ss:$2 sm:$0xff] %v646_v31  ;;  %578 = vrot.lane.b32.xlu2 %v574_v33, %s5401_s10  ;;  %576 = vrot.lane.b32.xlu1 %v573_v32, %s5401_s10 }
 0x13c   : > { %654 = vst [vmem:[#allocation1 + $0x10] ss:$2 sm:$0xff] %v647_v34  ;;  %580 = vrot.lane.b32.xlu0 %v575_v36, %s5401_s10  ;;  %v5038_v36 = vld [vmem:[%s6568_s4 + $0x14] sm:$0xf] }
 0x142   : > { %v655_v45 = vld.sshfl [vmem:[#allocation1] sm:$0xff pattern:$0x75316420]  ;;  %v656_v46 = vld.sshfl [vmem:[#allocation1 + $0x8] sm:$0xff pattern:$0x75316420] }
 0x143   : > { %v657_v47 = vld.sshfl [vmem:[#allocation1 + $0x10] sm:$0xff pattern:$0x75316420]  ;;  %736 = vst [vmem:[#allocation1] ss:$2 sm:$0xff] %v730_v42  ;;  %660 = vrot.lane.b32.xlu2 %v656_v46, %s5403_s12  ;;  %658 = vrot.lane.b32.xlu1 %v655_v45, %s5403_s12 }
 0x144   : > { %738 = vst [vmem:[#allocation1 + $0x10] ss:$2 sm:$0xff] %v731_v44  ;;  %662 = vrot.lane.b32.xlu0 %v657_v47, %s5403_s12  ;;  %v4991_v44 = vld [vmem:[%s6571_s7 + $0x4] sm:$0xf] }
 0x14a   : > { %v739_v54 = vld.sshfl [vmem:[#allocation1] sm:$0xff pattern:$0x75316420]  ;;  %v740_v55 = vld.sshfl [vmem:[#allocation1 + $0x8] sm:$0xff pattern:$0x75316420] }
 0x14b   : > { %v741_v56 = vld.sshfl [vmem:[#allocation1 + $0x10] sm:$0xff pattern:$0x75316420]  ;;  %811 = vst [vmem:[#allocation1] ss:$2 sm:$0xff] %v807_v53  ;;  %744 = vrot.lane.b32.xlu2 %v740_v55, %s5398_s19  ;;  %742 = vrot.lane.b32.xlu1 %v739_v54, %s5398_s19 }
 0x14c   : > { %884 = vst [vmem:[#allocation1 + $0x10] ss:$2 sm:$0xff] %v877_v52  ;;  %746 = vrot.lane.b32.xlu0 %v741_v56, %s5398_s19  ;;  %v487_v54 = vld [vmem:[%s6571_s7] sm:$0xf] }
 0x152   : > { %v5608_v63 = vld.sshfl [vmem:[#allocation1] sm:$0xff pattern:$0x75316420]  ;;  %v5610_v0 = vld.sshfl [vmem:[#allocation1 + $0x8] sm:$0xff pattern:$0x75316420] }
 0x153   : > { %882 = vst [vmem:[#allocation1] ss:$2 sm:$0xff] %v876_v62  ;;  %v887_v1 = vld.sshfl [vmem:[#allocation1 + $0x10] sm:$0xff pattern:$0x75316420] }
 0x154   : > { %966 = vst [vmem:[#allocation1 + $0x10] ss:$2 sm:$0xff] %v959_v61  ;;  %892 = vrot.lane.b32.xlu0 %v887_v1, %s5397_s17  ;;  %v5000_v1 = vld [vmem:[%s6571_s7 + $0x8] sm:$0xf] }
 0x15a   : > { %v885_v9 = vld.sshfl [vmem:[#allocation1] sm:$0xff pattern:$0x75316420]  ;;  %v886_v11 = vld.sshfl [vmem:[#allocation1 + $0x8] sm:$0xff pattern:$0x75316420] }
 0x15b   : > { %964 = vst [vmem:[#allocation1] ss:$2 sm:$0xff] %v958_v7  ;;  %v969_v14 = vld.sshfl [vmem:[#allocation1 + $0x10] sm:$0xff pattern:$0x75316420]  ;;  %890 = vrot.lane.b32.xlu2 %v886_v11, %s5397_s17  ;;  %888 = vrot.lane.b32.xlu1 %v885_v9, %s5397_s17 }
 0x15c   : > { %1048 = vst [vmem:[#allocation1 + $0x10] ss:$2 sm:$0xff] %v1041_v6  ;;  %974 = vrot.lane.b32.xlu0 %v969_v14, %s5402_s11  ;;  %v5005_v9 = vld [vmem:[%s6571_s7 + $0xc] sm:$0xf]  ;;  %v5015_v14 = vld [vmem:[%s6571_s7 + $0x14] sm:$0xf] }
 0x162   : > { %v967_v23 = vld.sshfl [vmem:[#allocation1] sm:$0xff pattern:$0x75316420]  ;;  %v968_v24 = vld.sshfl [vmem:[#allocation1 + $0x8] sm:$0xff pattern:$0x75316420] }
 0x163   : > { %1046 = vst [vmem:[#allocation1] ss:$2 sm:$0xff] %v1040_v22  ;;  %v1051_v25 = vld.sshfl [vmem:[#allocation1 + $0x10] sm:$0xff pattern:$0x75316420]  ;;  %972 = vrot.lane.b32.xlu2 %v968_v24, %s5402_s11  ;;  %970 = vrot.lane.b32.xlu1 %v967_v23, %s5402_s11 }
 0x164   : > { %1130 = vst [vmem:[#allocation1 + $0x10] ss:$2 sm:$0xff] %v1123_v20 }
 0x16a   : > { %v1049_v29 = vld.sshfl [vmem:[#allocation1] sm:$0xff pattern:$0x75316420]  ;;  %v1050_v31 = vld.sshfl [vmem:[#allocation1 + $0x8] sm:$0xff pattern:$0x75316420] }
 0x16b   : > { %1128 = vst [vmem:[#allocation1] ss:$2 sm:$0xff] %v1122_v28  ;;  %v1133_v32 = vld.sshfl [vmem:[#allocation1 + $0x10] sm:$0xff pattern:$0x75316420] }
 0x16c   : > { %1138 = vrot.lane.b32.xlu0 %v1133_v32, %s5399_s20 }
 0x172   : > { %v1131_v33 = vld.sshfl [vmem:[#allocation1] sm:$0xff pattern:$0x75316420]  ;;  %v1132_v34 = vld.sshfl [vmem:[#allocation1 + $0x8] sm:$0xff pattern:$0x75316420] }
 0x173   : > { %1136 = vrot.lane.b32.xlu2 %v1132_v34, %s5399_s20  ;;  %1134 = vrot.lane.b32.xlu1 %v1131_v33, %s5399_s20 }
 0x174   : > { %1056 = vrot.lane.b32.xlu0 %v1051_v25, %s5395_s24  ;;  %v5020_v25 = vld [vmem:[%s6571_s7 + $0x18] sm:$0xf] }
 0x17b   : > { %1054 = vrot.lane.b32.xlu2 %v1050_v31, %s5395_s24  ;;  %1052 = vrot.lane.b32.xlu1 %v1049_v29, %s5395_s24 }
 0x17c   : > { %1217 = vperm.xlu0 %5361, %v5038_v36   ;;  %v5030_v36 = vld [vmem:[%s6571_s7 + $0x20] sm:$0xf] }
 0x183   : > { %1194 = vperm.xlu1 %5362, %v1191_v8   ;;  %1205 = vperm.xlu2 %5363, %v5037_v37   ;;  %v5040_v8 = vld [vmem:[%s6567_s3 + $0x18] sm:$0xf] }
 0x184   : > { %1244 = vperm.xlu0 %5361, %v5041_v39  }
 0x18b   : > { %1361 = vperm.xlu1 %5362, %v5051_v40   ;;  %1235 = vperm.xlu2 %5363, %v5040_v8  }
 0x18d   : > { %v515_v41 = vpop.permute.xlu2 %514 }
 0x195   : > { %v579_v45 = vpop.permute.xlu2 %578 }
 0x19d   : > { %v661_v56 = vpop.permute.xlu2 %660 }
 0x1a5   : > { %v513_v42 = vpop.permute.xlu1 %512  ;;  %v745_v2 = vpop.permute.xlu2 %744 }
 0x1a6   : > { %v517_v46 = vpop.permute.xlu0 %516  ;;  %v519_v47 = vsel %vm518_vm11, %v513_v42, %v515_v41  ;;  %v5025_v42 = vld [vmem:[%s6571_s7 + $0x1c] sm:$0xf] }
 0x1a7   : > { %4992 = vmatpush.msk.msra.mxu2 %vm413_vm0, %v519_v47  ;;  %v520_v48 = vsel %vm518_vm11, %v515_v41, %v517_v46 }
 0x1a8   : > { %4994 = vmatpush.msk.msra.mxu3 %vm413_vm0, %v520_v48  ;;  %4993 = vmatmul.msk.f32.vlgmr.msra.gmra.mxu2 %vm409_vm2, %v4991_v44 }
 0x1a9   : > { %4995 = vmatmul.msk.f32.vlgmr.msra.gmra.mxu3 %vm409_vm2, %v4991_v44 }
 0x1ad   : > { %v577_v49 = vpop.permute.xlu1 %576 }
 0x1ae   : > { %v581_v52 = vpop.permute.xlu0 %580  ;;  %v583_v53 = vsel %vm582_vm12, %v577_v49, %v579_v45 }
 0x1af   : > { %4996 = vmatpush.msk.msrb.mxu0 %vm413_vm0, %v583_v53  ;;  %v584_v55 = vsel %vm582_vm12, %v579_v45, %v581_v52 }
 0x1b0   : > { %4998 = vmatpush.msk.msrb.mxu1 %vm413_vm0, %v584_v55  ;;  %4997 = vmatmul.msk.f32.vlgmr.msrb.gmra.mxu0 %vm409_vm2, %v487_v54 }
 0x1b1   : > { %4999 = vmatmul.msk.f32.vlgmr.msrb.gmra.mxu1 %vm409_vm2, %v487_v54  ;;  %v5749_v54 = vstv %s5035_s28 }
 0x1b5   : > { %v659_v57 = vpop.permute.xlu1 %658 }
 0x1b6   : > { %v663_v58 = vpop.permute.xlu0 %662  ;;  %v665_v61 = vsel %vm664_vm10, %v659_v57, %v661_v56 }
 0x1b7   : > { %5001 = vmatpush.msk.msrb.mxu2 %vm413_vm0, %v665_v61  ;;  %v666_v62 = vsel %vm664_vm10, %v661_v56, %v663_v58 }
 0x1b8   : > { %5003 = vmatpush.msk.msrb.mxu3 %vm413_vm0, %v666_v62  ;;  %5002 = vmatmul.msk.f32.vlgmr.msrb.gmra.mxu2 %vm409_vm2, %v5000_v1 }
 0x1b9   : > { %5011 = vmatpush.msk.msra.mxu2 %vm413_vm0, %v5608_v63  ;;  %5004 = vmatmul.msk.f32.vlgmr.msrb.gmra.mxu3 %vm409_vm2, %v5000_v1  ;;  %v5010_v63 = vld [vmem:[%s6571_s7 + $0x10] sm:$0xf] }
 0x1ba   : > { %5013 = vmatpush.msk.msra.mxu3 %vm413_vm0, %v5610_v0  ;;  %v891_v0 = vpop.permute.xlu2 %890 }
 0x1bd   : > { %v743_v3 = vpop.permute.xlu1 %742 }
 0x1be   : > { %v747_v6 = vpop.permute.xlu0 %746  ;;  %v749_v7 = vsel %vm748_vm9, %v743_v3, %v745_v2  ;;  %v5039_v3 = vld [vmem:[%s6569_s5 + $0x14] sm:$0xf] }
 0x1bf   : > { %v750_v11 = vsel %vm748_vm9, %v745_v2, %v747_v6  ;;  %5006 = vmatpush.msk.msra.mxu0 %vm413_vm0, %v749_v7 }
 0x1c0   : > { %5008 = vmatpush.msk.msra.mxu1 %vm413_vm0, %v750_v11  ;;  %5007 = vmatmul.msk.f32.vlgmr.msra.gmra.mxu0 %vm409_vm2, %v5005_v9 }
 0x1c1   : > { %5009 = vmatmul.msk.f32.vlgmr.msra.gmra.mxu1 %vm409_vm2, %v5005_v9  ;;  %5012 = vmatmul.msk.f32.vlgmr.msra.gmra.mxu2 %vm409_vm2, %v5010_v63 }
 0x1c2   : > { %5014 = vmatmul.msk.f32.vlgmr.msra.gmra.mxu3 %vm409_vm2, %v5010_v63  ;;  %v973_v20 = vpop.permute.xlu2 %972 }
 0x1c6   : > { %v893_v13 = vpop.permute.xlu0 %892 }
 0x1c7   : > { %v895_v15 = vsel %vm726_vm8, %v891_v0, %v893_v13 }
 0x1c8   : > { %5018 = vmatpush.msk.msrb.mxu1 %vm413_vm0, %v895_v15 }
 0x1c9   : > { %5019 = vmatmul.msk.f32.vlgmr.msrb.gmra.mxu1 %vm409_vm2, %v5015_v14 }
 0x1cd   : > { %v889_v22 = vpop.permute.xlu1 %888  ;;  %v1137_v29 = vpop.permute.xlu2 %1136 }
 0x1ce   : > { %v975_v23 = vpop.permute.xlu0 %974  ;;  %v894_v24 = vsel %vm726_vm8, %v889_v22, %v891_v0 }
 0x1cf   : > { %v977_v28 = vsel %vm642_vm7, %v973_v20, %v975_v23  ;;  %5016 = vmatpush.msk.msrb.mxu0 %vm413_vm0, %v894_v24 }
 0x1d0   : > { %5023 = vmatpush.msk.msrb.mxu3 %vm413_vm0, %v977_v28  ;;  %5017 = vmatmul.msk.f32.vlgmr.msrb.gmra.mxu0 %vm409_vm2, %v5015_v14 }
 0x1d1   : > { %5024 = vmatmul.msk.f32.vlgmr.msrb.gmra.mxu3 %vm409_vm2, %v5020_v25 }
 0x1d5   : > { %v971_v31 = vpop.permute.xlu1 %970  ;;  %v1055_v33 = vpop.permute.xlu2 %1054 }
 0x1d6   : > { %v976_v32 = vsel %vm642_vm7, %v971_v31, %v973_v20 }
 0x1d7   : > { %5021 = vmatpush.msk.msrb.mxu2 %vm413_vm0, %v976_v32 }
 0x1d8   : > { %5022 = vmatmul.msk.f32.vlgmr.msrb.gmra.mxu2 %vm409_vm2, %v5020_v25 }
 0x1dd   : > { %v1206_v44 = vpop.permute.xlu2 %1205 }
 0x1de   : > { %v1139_v34 = vpop.permute.xlu0 %1138  ;;  %v1210_v46 = vperm.slane %v1206_v44, %v5505_v35 }
 0x1df   : > { %v1141_v37 = vsel %vm481_vm6, %v1137_v29, %v1139_v34 }
 0x1e0   : > { %5033 = vmatpush.msk.msra.mxu3 %vm413_vm0, %v1141_v37  ;;  %v1212_v47 = vmul.f32 %v1210_v46, %v5522_v43 }
 0x1e1   : > { %5034 = vmatmul.msk.f32.vlgmr.msra.gmra.mxu3 %vm409_vm2, %v5030_v36 }
 0x1e5   : > { %v1135_v39 = vpop.permute.xlu1 %1134 }
 0x1e6   : > { %v1057_v40 = vpop.permute.xlu0 %1056  ;;  %v1140_v41 = vsel %vm481_vm6, %v1135_v39, %v1137_v29 }
 0x1e7   : > { %v1059_v45 = vsel %vm496_vm5, %v1055_v33, %v1057_v40  ;;  %5031 = vmatpush.msk.msra.mxu2 %vm413_vm0, %v1140_v41 }
 0x1e8   : > { %5028 = vmatpush.msk.msra.mxu1 %vm413_vm0, %v1059_v45  ;;  %5032 = vmatmul.msk.f32.vlgmr.msra.gmra.mxu2 %vm409_vm2, %v5030_v36  ;;  %v1236_v45 = vpop.permute.xlu2 %1235 }
 0x1e9   : > { %5029 = vmatmul.msk.f32.vlgmr.msra.gmra.mxu1 %vm409_vm2, %v5025_v42 }
 0x1ed   : > { %v1053_v48 = vpop.permute.xlu1 %1052 }
 0x1ee   : > { %v1218_v49 = vpop.permute.xlu0 %1217  ;;  %v1058_v52 = vsel %vm496_vm5, %v1053_v48, %v1055_v33 }
 0x1ef   : > { %v1222_v53 = vperm.slane %v1218_v49, %v5505_v35  ;;  %5026 = vmatpush.msk.msra.mxu0 %vm413_vm0, %v1058_v52 }
 0x1f0   : > { %5027 = vmatmul.msk.f32.vlgmr.msra.gmra.mxu0 %vm409_vm2, %v5025_v42 }
 0x1f1   : > { %v1224_v55 = vadd.f32 %v1222_v53, %v1212_v47 }
 0x1f3   : > { %vm1225_vm13 = vcmp.ge.f32.partialorder %v1224_v55, 0.0  ;;  %v1227_v56 = vmul.f32 %v5749_v54, %v1224_v55 }
 0x1f5   : > { %v1228_v57 = vsel %vm1225_vm13, %v1224_v55, %v1227_v56  ;;  %v1195_v40 = vpop.permute.xlu1 %1194 }
 0x1f6   : > { %1307 = vst [vmem:[#allocation1] ss:$2 sm:$0xff] %v1228_v57  ;;  %v1245_v49 = vpop.permute.xlu0 %1244 }
 0x1fd   : > { %v1308_v58 = vld.sshfl [vmem:[#allocation1] sm:$0xff pattern:$0x75316420]  ;;  %v1309_v43 = vld.sshfl [vmem:[#allocation1 + $0x8] sm:$0xff pattern:$0x75316420] }
 0x1fe   : > { %5047 = vmatpush.msk.msrb.mxu2 %vm413_vm0, %v1308_v58  ;;  %5049 = vmatpush.msk.msrb.mxu3 %vm413_vm0, %v1309_v43  ;;  %v5042_v58 = vld [vmem:[%s6569_s5 + $0x18] sm:$0xf] }
 0x1ff   : > { %5050 = vmatmul.msk.f32.vlgmr.msrb.gmra.mxu3 %vm409_vm2, %v5039_v3  ;;  %5048 = vmatmul.msk.f32.vlgmr.msrb.gmra.mxu2 %vm409_vm2, %v5039_v3 }
 0x22b   : > { %v545_v62 = vpop.f32.mrf.mxu2 }
 0x22c   : > { %v565_v61 = vpop.f32.mrf.mxu3 }
 0x22d   : > { %v609_v7 = vpop.f32.mrf.mxu0 }
 0x22e   : > { %v629_v1 = vpop.f32.mrf.mxu1  ;;  %v610_v14 = vadd.f32 %v609_v7, %v545_v62 }
 0x22f   : > { %v630_v6 = vadd.f32 %v629_v1, %v565_v61 }
 0x23b   : > { %v691_v9 = vpop.f32.mrf.mxu2 }
 0x23c   : > { %v711_v2 = vpop.f32.mrf.mxu3  ;;  %v714_v23 = vadd.f32 %v691_v9, %v610_v14  ;;  %v1362_v9 = vpop.permute.xlu1 %1361 }
 0x23d   : > { %v715_v0 = vadd.f32 %v711_v2, %v630_v6  ;;  %v775_v15 = vpop.f32.mrf.mxu0 }
 0x23e   : > { %v795_v11 = vpop.f32.mrf.mxu1  ;;  %v798_v29 = vadd.f32 %v775_v15, %v714_v23 }
 0x23f   : > { %v799_v13 = vadd.f32 %v795_v11, %v715_v0 }
 0x244   : > { %v838_v20 = vpop.f32.mrf.mxu2 }
 0x245   : > { %v858_v63 = vpop.f32.mrf.mxu3  ;;  %v861_v34 = vadd.f32 %v838_v20, %v798_v29 }
 0x246   : > { %v862_v22 = vadd.f32 %v858_v63, %v799_v13  ;;  %v940_v24 = vpop.f32.mrf.mxu1  ;;  %v1368_v63 = vstv %s5036_s22  ;;  %s5169_s22 = sld [smem:[#allocation3 + $0x181]] }
 0x248   : > { %v944_v28 = vadd.f32 %v940_v24, %v862_v22 }
 0x24d   : > { %v920_v31 = vpop.f32.mrf.mxu0 }
 0x24e   : > { %v943_v41 = vadd.f32 %v920_v31, %v861_v34 }
 0x254   : > { %v1022_v25 = vpop.f32.mrf.mxu3 }
 0x255   : > { %v1026_v32 = vadd.f32 %v1022_v25, %v944_v28 }
 0x25b   : > { %v1002_v33 = vpop.f32.mrf.mxu2 }
 0x25c   : > { %v1025_v44 = vadd.f32 %v1002_v33, %v943_v41 }
 0x264   : > { %v1186_v8 = vpop.f32.mrf.mxu3 }
 0x266   : > { %v1104_v36 = vpop.f32.mrf.mxu1 }
 0x267   : > { %v1108_v37 = vadd.f32 %v1104_v36, %v1026_v32 }
 0x269   : > { %v1190_v39 = vadd.f32 %v1186_v8, %v1108_v37 }
 0x26b   : > { %v5760_v42 = vadd.f32 %v1195_v40, %v1190_v39  ;;  %v1166_v48 = vpop.f32.mrf.mxu2 }
 0x26d   : > { %v1239_v46 = vmul.f32 %v1236_v45, %v5760_v42  ;;  %v1084_v47 = vpop.f32.mrf.mxu0 }
 0x26e   : > { %v1107_v52 = vadd.f32 %v1084_v47, %v1025_v44 }
 0x26f   : > { %v1248_v53 = vadd.f32 %v1245_v49, %v1239_v46 }
 0x270   : > { %v1189_v55 = vadd.f32 %v1166_v48, %v1107_v52 }
 0x271   : > { %vm1250_vm14 = vcmp.ge.f32.partialorder %v1248_v53, 0.0  ;;  %v1252_v56 = vmul.f32 %v1248_v53, %v5749_v54 }
 0x272   : > { %v5764_v57 = vadd.f32 %v1195_v40, %v1189_v55 }
 0x273   : > { %v1254_v43 = vsel %vm1250_vm14, %v1248_v53, %v1252_v56  ;;  %v1715_v56 = vld [vmem:[#allocation2 + $0xc] sm:$0xf] }
 0x274   : > { %v1238_v61 = vmul.f32 %v1236_v45, %v5764_v57  ;;  %5045 = vmatpush.msk.msrb.mxu1 %vm413_vm0, %v1254_v43  ;;  %v1717_v43 = vmul.f32 %v1715_v56, %v5591_v51 }
 0x275   : > { %5046 = vmatmul.msk.f32.vlgmr.msrb.gmra.mxu1 %vm409_vm2, %v5042_v58 }
 0x276   : > { %v1247_v62 = vadd.f32 %v1245_v49, %v1238_v61 }
 0x278   : > { %vm1249_vm15 = vcmp.ge.f32.partialorder %v1247_v62, 0.0  ;;  %v1251_v1 = vmul.f32 %v1247_v62, %v5749_v54 }
 0x27a   : > { %v1253_v2 = vsel %vm1249_vm15, %v1247_v62, %v1251_v1 }
 0x27b   : > { %5043 = vmatpush.msk.msrb.mxu0 %vm413_vm0, %v1253_v2  ;;  %v1786_v2 = vld [vmem:[#allocation2 + $0xc] sm:$0xf] }
 0x27c   : > { %5044 = vmatmul.msk.f32.vlgmr.msrb.gmra.mxu0 %vm409_vm2, %v5042_v58 }
 0x282   : > { %v1354_v3 = vpop.f32.mrf.mxu3  ;;  %v1334_v0 = vpop.f32.mrf.mxu2 }
 0x2f2   : > { %v1303_v6 = vpop.f32.mrf.mxu1 }
 0x2f3   : > { %v1355_v7 = vadd.f32 %v1354_v3, %v1303_v6  ;;  %v1788_v6 = vmul.f32 %v1786_v2, %v5603_v60 }
 0x2f5   : > { %v1365_v11 = vadd.f32 %v1362_v9, %v1355_v7 }
 0x2f7   : > { %v1370_v13 = vmul.f32 %v1368_v63, %v1365_v11  ;;  %vm1367_vm1 = vcmp.ge.f32.partialorder %v1365_v11, 0.0 }
 0x2f9   : > { %v1283_v14 = vpop.f32.mrf.mxu0  ;;  %v1372_v20 = vsel %vm1367_vm1, %v1365_v11, %v1370_v13 }
 0x2fa   : > { %v1335_v15 = vadd.f32 %v1334_v0, %v1283_v14  ;;  %v1375_v23 = vrot.slane %v1372_v20, 4 }
 0x2fc   : > { %v1364_v22 = vadd.f32 %v1362_v9, %v1335_v15 }
 0x2fe   : > { %vm1366_vm3 = vcmp.ge.f32.partialorder %v1364_v22, 0.0  ;;  %v1369_v54 = vmul.f32 %v1368_v63, %v1364_v22  ;;  %v1857_v63 = vld [vmem:[#allocation2 + $0xc] sm:$0xf] }
 0x2ff   : > { %v1859_v13 = vmul.f32 %v1857_v63, %v5613_v4 }
 0x300   : > { %v1371_v24 = vsel %vm1366_vm3, %v1364_v22, %v1369_v54  ;;  %v1928_v22 = vld [vmem:[#allocation2 + $0xc] sm:$0xf] }
 0x301   : > { %v5776_v25 = vsel %vm413_vm0, %v1371_v24, %v1375_v23  ;;  %v1930_v23 = vmul.f32 %v1928_v22, %v5629_v19 }
 0x302   : > { %1378 = vst [vmem:[#allocation2 + $0x4] sm:$0xff] %v5776_v25  ;;  %v1658_v58 = vmul.f32 %v5776_v25, %v5589_v50  ;;  %v1716_v3 = vmul.f32 %v5776_v25, %v5601_v59  ;;  %v1787_v0 = vmul.f32 %v5776_v25, %v5617_v5  ;;  %v1858_v54 = vmul.f32 %v5776_v25, %v5627_v17 }
 0x309   : > { %v1379_v28 = vld [vmem:[#allocation2] sm:$0xff]  ;;  %v1380_v29 = vld [vmem:[#allocation2 + $0x8] sm:$0xf] }
 0x30a   : > { %v1385_v31 = vmul.f32 %v1379_v28, %v5548_v12  ;;  %v1386_v32 = vmul.f32 %v1380_v29, %v5544_v10  ;;  %v1381_v33 = vmul.f32 %v1379_v28, %v5556_v18  ;;  %v1382_v34 = vmul.f32 %v1380_v29, %v5551_v16  ;;  %v1516_v39 = vld [vmem:[#allocation2 + $0x8] sm:$0xf] }
 0x30b   : > { %v1517_v40 = vmul.f32 %v1379_v28, %v5567_v26  ;;  %v1518_v41 = vmul.f32 %v1516_v39, %v5559_v21  ;;  %v1587_v47 = vld [vmem:[#allocation2 + $0x8] sm:$0xf]  ;;  %v1588_v48 = vmul.f32 %v1379_v28, %v5581_v38 }
 0x30c   : > { %1391 = vst [vmem:[#allocation1] ss:$2 sm:$0xff] %v1385_v31  ;;  %v1589_v49 = vmul.f32 %v1587_v47, %v5572_v30  ;;  %v1929_v31 = vmul.f32 %v5776_v25, %v5638_v27  ;;  %v5103_v25 = vld [vmem:[%s6567_s3 + $0x2c] sm:$0xf] }
 0x30d   : > { %1393 = vst [vmem:[#allocation1 + $0x10] ss:$2 sm:$0xff] %v1386_v32 }
 0x313   : > { %v1395_v36 = vld.sshfl [vmem:[#allocation1 + $0x8] sm:$0xff pattern:$0x75316420]  ;;  %v1394_v8 = vld.sshfl [vmem:[#allocation1] sm:$0xff pattern:$0x75316420] }
 0x314   : > { %v1396_v37 = vld.sshfl [vmem:[#allocation1 + $0x10] sm:$0xff pattern:$0x75316420]  ;;  %1399 = vrot.lane.b32.xlu2 %v1395_v36, %s5400_s29  ;;  %1454 = vst [vmem:[#allocation1] ss:$2 sm:$0xff] %v1381_v33 }
 0x315   : > { %1456 = vst [vmem:[#allocation1 + $0x10] ss:$2 sm:$0xff] %v1382_v34  ;;  %1401 = vrot.lane.b32.xlu0 %v1396_v37, %s5400_s29  ;;  %v5100_v36 = vld [vmem:[%s6567_s3 + $0x28] sm:$0xf]  ;;  %v5097_v37 = vld [vmem:[%s6572_s8 + $0x4] sm:$0xf] }
 0x31b   : > { %v1458_v44 = vld.sshfl [vmem:[#allocation1 + $0x8] sm:$0xff pattern:$0x75316420]  ;;  %v1457_v45 = vld.sshfl [vmem:[#allocation1] sm:$0xff pattern:$0x75316420] }
 0x31c   : > { %v1459_v46 = vld.sshfl [vmem:[#allocation1 + $0x10] sm:$0xff pattern:$0x75316420]  ;;  %1462 = vrot.lane.b32.xlu1 %v1458_v44, %s5401_s10  ;;  %1523 = vst [vmem:[#allocation1] ss:$2 sm:$0xff] %v1517_v40 }
 0x31d   : > { %1525 = vst [vmem:[#allocation1 + $0x10] ss:$2 sm:$0xff] %v1518_v41  ;;  %1464 = vrot.lane.b32.xlu2 %v1459_v46, %s5401_s10  ;;  %1397 = vrot.lane.b32.xlu0 %v1394_v8, %s5400_s29  ;;  %v5101_v40 = vld [vmem:[%s6568_s4 + $0x28] sm:$0xf]  ;;  %v5104_v41 = vld [vmem:[%s6568_s4 + $0x2c] sm:$0xf] }
 0x31e   : > { %v5121_v44 = vld [vmem:[%s6570_s6 + $0x8] sm:$0xf]  ;;  %v5114_v46 = vld [vmem:[%s6567_s3 + $0x30] sm:$0xf] }
 0x323   : > { %v1527_v52 = vld.sshfl [vmem:[#allocation1 + $0x8] sm:$0xff pattern:$0x75316420]  ;;  %v1526_v53 = vld.sshfl [vmem:[#allocation1] sm:$0xff pattern:$0x75316420] }
 0x324   : > { %v1528_v55 = vld.sshfl [vmem:[#allocation1 + $0x10] sm:$0xff pattern:$0x75316420]  ;;  %1460 = vrot.lane.b32.xlu1 %v1457_v45, %s5401_s10  ;;  %1594 = vst [vmem:[#allocation1] ss:$2 sm:$0xff] %v1588_v48 }
 0x325   : > { %1596 = vst [vmem:[#allocation1 + $0x10] ss:$2 sm:$0xff] %v1589_v49  ;;  %1533 = vrot.lane.b32.xlu0 %v1528_v55, %s5403_s12  ;;  %1531 = vrot.lane.b32.xlu2 %v1527_v52, %s5403_s12  ;;  %v5115_v45 = vld [vmem:[%s6568_s4 + $0x30] sm:$0xf] }
 0x32b   : > { %v1598_v61 = vld.sshfl [vmem:[#allocation1 + $0x8] sm:$0xff pattern:$0x75316420]  ;;  %v1597_v62 = vld.sshfl [vmem:[#allocation1] sm:$0xff pattern:$0x75316420] }
 0x32c   : > { %v1599_v1 = vld.sshfl [vmem:[#allocation1 + $0x10] sm:$0xff pattern:$0x75316420]  ;;  %1602 = vrot.lane.b32.xlu1 %v1598_v61, %s5398_s19  ;;  %1662 = vst [vmem:[#allocation1] ss:$2 sm:$0xff] %v1658_v58 }
 0x32d   : > { %1724 = vst [vmem:[#allocation1 + $0x10] ss:$2 sm:$0xff] %v1717_v43  ;;  %1604 = vrot.lane.b32.xlu2 %v1599_v1, %s5398_s19  ;;  %1529 = vrot.lane.b32.xlu0 %v1526_v53, %s5403_s12  ;;  %v5053_v53 = vld [vmem:[%s6571_s7 + $0x28] sm:$0xf]  ;;  %v5052_v43 = vld [vmem:[%s6571_s7 + $0x24] sm:$0xf] }
 0x333   : > { %v5804_v7 = vld.sshfl [vmem:[#allocation1] sm:$0xff pattern:$0x75316420]  ;;  %v5806_v9 = vld.sshfl [vmem:[#allocation1 + $0x8] sm:$0xff pattern:$0x75316420] }
 0x334   : > { %v1727_v11 = vld.sshfl [vmem:[#allocation1 + $0x10] sm:$0xff pattern:$0x75316420]  ;;  %1600 = vrot.lane.b32.xlu1 %v1597_v62, %s5398_s19  ;;  %1722 = vst [vmem:[#allocation1] ss:$2 sm:$0xff] %v1716_v3 }
 0x335   : > { %1732 = vrot.lane.b32.xlu0 %v1727_v11, %s5397_s17  ;;  %1795 = vst [vmem:[#allocation1 + $0x10] ss:$2 sm:$0xff] %v1788_v6 }
 0x33b   : > { %v1726_v14 = vld.sshfl [vmem:[#allocation1 + $0x8] sm:$0xff pattern:$0x75316420]  ;;  %v1725_v15 = vld.sshfl [vmem:[#allocation1] sm:$0xff pattern:$0x75316420] }
 0x33c   : > { %v1798_v20 = vld.sshfl [vmem:[#allocation1 + $0x10] sm:$0xff pattern:$0x75316420]  ;;  %1730 = vrot.lane.b32.xlu2 %v1726_v14, %s5397_s17  ;;  %1728 = vrot.lane.b32.xlu1 %v1725_v15, %s5397_s17  ;;  %1793 = vst [vmem:[#allocation1] ss:$2 sm:$0xff] %v1787_v0 }
 0x33d   : > { %1803 = vrot.lane.b32.xlu0 %v1798_v20, %s5402_s11  ;;  %1866 = vst [vmem:[#allocation1 + $0x10] ss:$2 sm:$0xff] %v1859_v13  ;;  %v5062_v0 = vld [vmem:[%s6571_s7 + $0x2c] sm:$0xf]  ;;  %v5067_v14 = vld [vmem:[%s6571_s7 + $0x30] sm:$0xf] }
 0x343   : > { %v1797_v24 = vld.sshfl [vmem:[#allocation1 + $0x8] sm:$0xff pattern:$0x75316420]  ;;  %v1796_v28 = vld.sshfl [vmem:[#allocation1] sm:$0xff pattern:$0x75316420] }
 0x344   : > { %1801 = vrot.lane.b32.xlu2 %v1797_v24, %s5402_s11  ;;  %1864 = vst [vmem:[#allocation1] ss:$2 sm:$0xff] %v1858_v54  ;;  %v1869_v29 = vld.sshfl [vmem:[#allocation1 + $0x10] sm:$0xff pattern:$0x75316420] }
 0x345   : > { %1799 = vrot.lane.b32.xlu0 %v1796_v28, %s5402_s11  ;;  %1937 = vst [vmem:[#allocation1 + $0x10] ss:$2 sm:$0xff] %v1930_v23  ;;  %v5072_v23 = vld [vmem:[%s6571_s7 + $0x34] sm:$0xf] }
 0x34b   : > { %v1868_v32 = vld.sshfl [vmem:[#allocation1 + $0x8] sm:$0xff pattern:$0x75316420]  ;;  %v1867_v33 = vld.sshfl [vmem:[#allocation1] sm:$0xff pattern:$0x75316420] }
 0x34c   : > { %1874 = vrot.lane.b32.xlu2 %v1869_v29, %s5395_s24  ;;  %v1940_v34 = vld.sshfl [vmem:[#allocation1 + $0x10] sm:$0xff pattern:$0x75316420]  ;;  %1872 = vrot.lane.b32.xlu1 %v1868_v32, %s5395_s24  ;;  %1935 = vst [vmem:[#allocation1] ss:$2 sm:$0xff] %v1929_v31 }
 0x34d   : > { %1945 = vrot.lane.b32.xlu0 %v1940_v34, %s5399_s20  ;;  %v5077_v29 = vld [vmem:[%s6571_s7 + $0x38] sm:$0xf] }
 0x353   : > { %v1939_v8 = vld.sshfl [vmem:[#allocation1 + $0x8] sm:$0xff pattern:$0x75316420]  ;;  %v1938_v39 = vld.sshfl [vmem:[#allocation1] sm:$0xff pattern:$0x75316420] }
 0x354   : > { %1870 = vrot.lane.b32.xlu1 %v1867_v33, %s5395_s24  ;;  %1943 = vrot.lane.b32.xlu2 %v1939_v8, %s5399_s20 }
 0x355   : > { %2013 = vperm.xlu0 %5361, %v5100_v36   ;;  %v5082_v36 = vld [vmem:[%s6571_s7 + $0x3c] sm:$0xf] }
 0x35c   : > { %2043 = vperm.xlu2 %5363, %v5103_v25   ;;  %1941 = vrot.lane.b32.xlu1 %v1938_v39, %s5399_s20 }
 0x35d   : > { %2002 = vperm.xlu0 %5361, %v5097_v37  }
 0x364   : > { %2025 = vperm.xlu2 %5363, %v5101_v40   ;;  %2052 = vperm.xlu1 %5362, %v5104_v41  }
 0x365   : > { %2246 = vperm.xlu0 %5361, %v5121_v44   ;;  %v5087_v44 = vld [vmem:[%s6571_s7 + $0x40] sm:$0xf] }
 0x36c   : > { %2178 = vperm.xlu2 %5363, %v5115_v45   ;;  %2169 = vperm.xlu1 %5362, %v5114_v46  }
 0x36e   : > { %v1400_v47 = vpop.permute.xlu2 %1399 }
 0x377   : > { %v1465_v48 = vpop.permute.xlu2 %1464 }
 0x37f   : > { %v1532_v49 = vpop.permute.xlu2 %1531 }
 0x387   : > { %v1402_v52 = vpop.permute.xlu0 %1401  ;;  %v1605_v56 = vpop.permute.xlu2 %1604 }
 0x388   : > { %v1404_v55 = vsel %vm518_vm11, %v1400_v47, %v1402_v52 }
 0x389   : > { %5056 = vmatpush.msk.msra.mxu1 %vm413_vm0, %v1404_v55 }
 0x38a   : > { %5057 = vmatmul.msk.f32.vlgmr.msra.gmra.mxu1 %vm409_vm2, %v5053_v53 }
 0x38e   : > { %v1463_v58 = vpop.permute.xlu1 %1462 }
 0x38f   : > { %v1398_v61 = vpop.permute.xlu0 %1397  ;;  %v1467_v62 = vsel %vm582_vm12, %v1463_v58, %v1465_v48 }
 0x390   : > { %v1403_v1 = vsel %vm518_vm11, %v1398_v61, %v1400_v47  ;;  %5060 = vmatpush.msk.msra.mxu3 %vm413_vm0, %v1467_v62  ;;  %v5092_v47 = vld [vmem:[%s6571_s7 + $0x44] sm:$0xf]  ;;  %v5937_v62 = vstv %s5098_s13 }
 0x391   : > { %5054 = vmatpush.msk.msra.mxu0 %vm413_vm0, %v1403_v1  ;;  %5061 = vmatmul.msk.f32.vlgmr.msra.gmra.mxu3 %vm409_vm2, %v5052_v43 }
 0x392   : > { %5055 = vmatmul.msk.f32.vlgmr.msra.gmra.mxu0 %vm409_vm2, %v5053_v53 }
 0x396   : > { %v1461_v2 = vpop.permute.xlu1 %1460  ;;  %v1731_v3 = vpop.permute.xlu2 %1730 }
 0x397   : > { %v1534_v6 = vpop.permute.xlu0 %1533  ;;  %v1466_v11 = vsel %vm582_vm12, %v1461_v2, %v1463_v58 }
 0x398   : > { %v1536_v63 = vsel %vm664_vm10, %v1532_v49, %v1534_v6  ;;  %5058 = vmatpush.msk.msra.mxu2 %vm413_vm0, %v1466_v11 }
 0x399   : > { %5065 = vmatpush.msk.msrb.mxu1 %vm413_vm0, %v1536_v63  ;;  %5059 = vmatmul.msk.f32.vlgmr.msra.gmra.mxu2 %vm409_vm2, %v5052_v43  ;;  %v5934_v43 = vld [vmem:[%s5514_s26] sm:$0xff] }
 0x39a   : > { %5066 = vmatmul.msk.f32.vlgmr.msrb.gmra.mxu1 %vm409_vm2, %v5062_v0 }
 0x39b   : > { %5075 = vmatpush.msk.msra.mxu1 %vm413_vm0, %v5806_v9 }
 0x39e   : > { %v1603_v13 = vpop.permute.xlu1 %1602  ;;  %v1802_v22 = vpop.permute.xlu2 %1801 }
 0x39f   : > { %v1530_v15 = vpop.permute.xlu0 %1529  ;;  %v1607_v20 = vsel %vm748_vm9, %v1603_v13, %v1605_v56 }
 0x3a0   : > { %v1535_v54 = vsel %vm664_vm10, %v1530_v15, %v1532_v49  ;;  %5070 = vmatpush.msk.msrb.mxu3 %vm413_vm0, %v1607_v20 }
 0x3a1   : > { %5063 = vmatpush.msk.msrb.mxu0 %vm413_vm0, %v1535_v54  ;;  %5071 = vmatmul.msk.f32.vlgmr.msrb.gmra.mxu3 %vm409_vm2, %v5067_v14 }
 0x3a2   : > { %5064 = vmatmul.msk.f32.vlgmr.msrb.gmra.mxu0 %vm409_vm2, %v5062_v0  ;;  %5076 = vmatmul.msk.f32.vlgmr.msra.gmra.mxu1 %vm409_vm2, %v5072_v23 }
 0x3a3   : > { %5073 = vmatpush.msk.msra.mxu0 %vm413_vm0, %v5804_v7 }
 0x3a6   : > { %v1601_v9 = vpop.permute.xlu1 %1600  ;;  %v1875_v32 = vpop.permute.xlu2 %1874 }
 0x3a7   : > { %v1733_v24 = vpop.permute.xlu0 %1732  ;;  %v1606_v28 = vsel %vm748_vm9, %v1601_v9, %v1603_v13 }
 0x3a8   : > { %v1735_v31 = vsel %vm726_vm8, %v1731_v3, %v1733_v24  ;;  %5068 = vmatpush.msk.msrb.mxu2 %vm413_vm0, %v1606_v28 }
 0x3a9   : > { %5080 = vmatpush.msk.msra.mxu3 %vm413_vm0, %v1735_v31  ;;  %5069 = vmatmul.msk.f32.vlgmr.msrb.gmra.mxu2 %vm409_vm2, %v5067_v14 }
 0x3aa   : > { %5081 = vmatmul.msk.f32.vlgmr.msra.gmra.mxu3 %vm409_vm2, %v5077_v29  ;;  %5074 = vmatmul.msk.f32.vlgmr.msra.gmra.mxu0 %vm409_vm2, %v5072_v23 }
 0x3ae   : > { %v1729_v7 = vpop.permute.xlu1 %1728  ;;  %v1944_v25 = vpop.permute.xlu2 %1943 }
 0x3af   : > { %v1804_v33 = vpop.permute.xlu0 %1803  ;;  %v1734_v34 = vsel %vm726_vm8, %v1729_v7, %v1731_v3  ;;  %v5105_v7 = vld [vmem:[%s6569_s5 + $0x2c] sm:$0xf] }
 0x3b0   : > { %v1806_v8 = vsel %vm642_vm7, %v1802_v22, %v1804_v33  ;;  %5078 = vmatpush.msk.msra.mxu2 %vm413_vm0, %v1734_v34 }
 0x3b1   : > { %5085 = vmatpush.msk.msrb.mxu1 %vm413_vm0, %v1806_v8  ;;  %5079 = vmatmul.msk.f32.vlgmr.msra.gmra.mxu2 %vm409_vm2, %v5077_v29 }
 0x3b2   : > { %5086 = vmatmul.msk.f32.vlgmr.msrb.gmra.mxu1 %vm409_vm2, %v5082_v36 }
 0x3b6   : > { %v2044_v40 = vpop.permute.xlu2 %2043 }
 0x3b7   : > { %v1800_v37 = vpop.permute.xlu0 %1799  ;;  %v2046_v63 = vmul.f32 %v2044_v40, %v5764_v57  ;;  %v2047_v0 = vmul.f32 %v2044_v40, %v5760_v42 }
 0x3b8   : > { %v1805_v39 = vsel %vm642_vm7, %v1800_v37, %v1802_v22 }
 0x3b9   : > { %5083 = vmatpush.msk.msrb.mxu0 %vm413_vm0, %v1805_v39  ;;  %v5102_v39 = vld [vmem:[%s6569_s5 + $0x28] sm:$0xf] }
 0x3ba   : > { %5084 = vmatmul.msk.f32.vlgmr.msrb.gmra.mxu0 %vm409_vm2, %v5082_v36 }
 0x3be   : > { %v1873_v41 = vpop.permute.xlu1 %1872  ;;  %v2026_v52 = vpop.permute.xlu2 %2025 }
 0x3bf   : > { %v1946_v45 = vpop.permute.xlu0 %1945  ;;  %v1877_v46 = vsel %vm496_vm5, %v1873_v41, %v1875_v32  ;;  %v2030_v58 = vperm.slane %v2026_v52, %v5505_v35 }
 0x3c0   : > { %v1948_v48 = vsel %vm481_vm6, %v1944_v25, %v1946_v45  ;;  %5090 = vmatpush.msk.msrb.mxu3 %vm413_vm0, %v1877_v46 }
 0x3c1   : > { %5095 = vmatpush.msk.msra.mxu1 %vm413_vm0, %v1948_v48  ;;  %5091 = vmatmul.msk.f32.vlgmr.msrb.gmra.mxu3 %vm409_vm2, %v5087_v44 }
 0x3c2   : > { %5096 = vmatmul.msk.f32.vlgmr.msra.gmra.mxu1 %vm409_vm2, %v5092_v47 }
 0x3c6   : > { %v1871_v49 = vpop.permute.xlu1 %1870 }
 0x3c7   : > { %v2014_v53 = vpop.permute.xlu0 %2013  ;;  %v1876_v55 = vsel %vm496_vm5, %v1871_v49, %v1873_v41 }
 0x3c8   : > { %v2018_v56 = vperm.slane %v2014_v53, %v5505_v35  ;;  %5088 = vmatpush.msk.msrb.mxu2 %vm413_vm0, %v1876_v55 }
 0x3c9   : > { %5089 = vmatmul.msk.f32.vlgmr.msrb.gmra.mxu2 %vm409_vm2, %v5087_v44 }
 0x3ca   : > { %v2020_v61 = vmul.f32 %v5934_v43, %v2018_v56 }
 0x3cc   : > { %v2032_v1 = vadd.f32 %v2030_v58, %v2020_v61 }
 0x3ce   : > { %vm2033_vm4 = vcmp.ge.f32.partialorder %v2032_v1, 0.0  ;;  %v2035_v2 = vmul.f32 %v5937_v62, %v2032_v1  ;;  %v1942_v3 = vpop.permute.xlu1 %1941 }
 0x3cf   : > { %v1947_v6 = vsel %vm481_vm6, %v1942_v3, %v1944_v25 }
 0x3d0   : > { %v2036_v11 = vsel %vm2033_vm4, %v2032_v1, %v2035_v2  ;;  %5093 = vmatpush.msk.msra.mxu0 %vm413_vm0, %v1947_v6 }
 0x3d1   : > { %2115 = vst [vmem:[#allocation1] ss:$2 sm:$0xff] %v2036_v11  ;;  %5094 = vmatmul.msk.f32.vlgmr.msra.gmra.mxu0 %vm409_vm2, %v5092_v47 }
 0x3d6   : > { %v2053_v13 = vpop.permute.xlu1 %2052 }
 0x3d7   : > { %v2055_v14 = vadd.f32 %v2053_v13, %v2046_v63  ;;  %v2056_v15 = vadd.f32 %v2053_v13, %v2047_v0  ;;  %v2003_v63 = vpop.permute.xlu0 %2002 }
 0x3d8   : > { %v2116_v20 = vld.sshfl [vmem:[#allocation1] sm:$0xff pattern:$0x75316420]  ;;  %v2117_v22 = vld.sshfl [vmem:[#allocation1 + $0x8] sm:$0xff pattern:$0x75316420] }
 0x3d9   : > { %vm2057_vm13 = vcmp.ge.f32.partialorder %v2055_v14, 0.0  ;;  %vm2058_vm14 = vcmp.ge.f32.partialorder %v2056_v15, 0.0  ;;  %v2059_v54 = vmul.f32 %v2055_v14, %v5937_v62  ;;  %v2060_v23 = vmul.f32 %v2056_v15, %v5937_v62  ;;  %5110 = vmatpush.msk.msrb.mxu0 %vm413_vm0, %v2116_v20  ;;  %5112 = vmatpush.msk.msrb.mxu1 %vm413_vm0, %v2117_v22  ;;  %v2179_v20 = vpop.permute.xlu2 %2178 }
 0x3da   : > { %5113 = vmatmul.msk.f32.vlgmr.msrb.gmra.mxu1 %vm409_vm2, %v5102_v39  ;;  %5111 = vmatmul.msk.f32.vlgmr.msrb.gmra.mxu0 %vm409_vm2, %v5102_v39 }
 0x3db   : > { %v2061_v9 = vsel %vm2057_vm13, %v2055_v14, %v2059_v54  ;;  %v2062_v24 = vsel %vm2058_vm14, %v2056_v15, %v2060_v23 }
 0x3dc   : > { %5106 = vmatpush.msk.msra.mxu2 %vm413_vm0, %v2061_v9  ;;  %5108 = vmatpush.msk.msra.mxu3 %vm413_vm0, %v2062_v24 }
 0x3dd   : > { %5109 = vmatmul.msk.f32.vlgmr.msra.gmra.mxu3 %vm409_vm2, %v5105_v7  ;;  %5107 = vmatmul.msk.f32.vlgmr.msra.gmra.mxu2 %vm409_vm2, %v5105_v7 }
 0x3de   : > { %v2170_v13 = vpop.permute.xlu1 %2169 }
 0x407   : > { %v1449_v28 = vpop.f32.mrf.mxu1 }
 0x40f   : > { %v1429_v29 = vpop.f32.mrf.mxu0 }
 0x414   : > { %v1512_v31 = vpop.f32.mrf.mxu3 }
 0x415   : > { %v1513_v33 = vadd.f32 %v1512_v31, %v1449_v28 }
 0x417   : > { %v1581_v32 = vpop.f32.mrf.mxu1 }
 0x418   : > { %v1585_v37 = vadd.f32 %v1581_v32, %v1513_v33 }
 0x41c   : > { %v1492_v34 = vpop.f32.mrf.mxu2 }
 0x41d   : > { %v1493_v40 = vadd.f32 %v1492_v34, %v1429_v29  ;;  %v5116_v29 = vld [vmem:[%s6569_s5 + $0x30] sm:$0xf] }
 0x41f   : > { %v1561_v36 = vpop.f32.mrf.mxu0  ;;  %v1709_v25 = vpop.f32.mrf.mxu1 }
 0x420   : > { %v1584_v45 = vadd.f32 %v1561_v36, %v1493_v40 }
 0x424   : > { %v1652_v8 = vpop.f32.mrf.mxu3 }
 0x425   : > { %v1656_v41 = vadd.f32 %v1652_v8, %v1585_v37 }
 0x427   : > { %v1713_v46 = vadd.f32 %v1709_v25, %v1656_v41  ;;  %v1689_v47 = vpop.f32.mrf.mxu0 }
 0x42c   : > { %v1632_v44 = vpop.f32.mrf.mxu2 }
 0x42d   : > { %v1780_v48 = vpop.f32.mrf.mxu3  ;;  %v1655_v52 = vadd.f32 %v1632_v44, %v1584_v45  ;;  %v2247_v44 = vpop.permute.xlu0 %2246 }
 0x42e   : > { %v1784_v53 = vadd.f32 %v1780_v48, %v1713_v46 }
 0x42f   : > { %v1851_v49 = vpop.f32.mrf.mxu1  ;;  %v1712_v55 = vadd.f32 %v1689_v47, %v1655_v52  ;;  %v2253_v47 = vstv %s5099_s25 }
 0x430   : > { %v1855_v58 = vadd.f32 %v1851_v49, %v1784_v53 }
 0x434   : > { %v1760_v56 = vpop.f32.mrf.mxu2 }
 0x435   : > { %v1783_v6 = vadd.f32 %v1760_v56, %v1712_v55 }
 0x437   : > { %v1831_v3 = vpop.f32.mrf.mxu0 }
 0x438   : > { %v1854_v14 = vadd.f32 %v1831_v3, %v1783_v6 }
 0x43f   : > { %v1993_v1 = vpop.f32.mrf.mxu1 }
 0x444   : > { %v1922_v61 = vpop.f32.mrf.mxu3 }
 0x445   : > { %v1926_v2 = vadd.f32 %v1922_v61, %v1855_v58 }
 0x447   : > { %v1997_v11 = vadd.f32 %v1993_v1, %v1926_v2 }
 0x449   : > { %v5961_v0 = vadd.f32 %v2003_v63, %v1997_v11 }
 0x44b   : > { %v2173_v15 = vmul.f32 %v2170_v13, %v5961_v0 }
 0x44c   : > { %v1902_v22 = vpop.f32.mrf.mxu2 }
 0x44d   : > { %v2182_v54 = vadd.f32 %v2179_v20, %v2173_v15  ;;  %v1925_v23 = vadd.f32 %v1902_v22, %v1854_v14 }
 0x44e   : > { %v1973_v9 = vpop.f32.mrf.mxu0 }
 0x44f   : > { %v1996_v24 = vadd.f32 %v1973_v9, %v1925_v23  ;;  %vm2184_vm15 = vcmp.ge.f32.partialorder %v2182_v54, 0.0  ;;  %v2186_v28 = vmul.f32 %v2182_v54, %v5937_v62 }
 0x451   : > { %v5968_v31 = vadd.f32 %v2003_v63, %v1996_v24  ;;  %v2188_v32 = vsel %vm2184_vm15, %v2182_v54, %v2186_v28 }
 0x452   : > { %5119 = vmatpush.msk.msrb.mxu3 %vm413_vm0, %v2188_v32 }
 0x453   : > { %v2172_v7 = vmul.f32 %v2170_v13, %v5968_v31  ;;  %5120 = vmatmul.msk.f32.vlgmr.msrb.gmra.mxu3 %vm409_vm2, %v5116_v29 }
 0x455   : > { %v2181_v33 = vadd.f32 %v2179_v20, %v2172_v7 }
 0x457   : > { %vm2183_vm1 = vcmp.ge.f32.partialorder %v2181_v33, 0.0  ;;  %v2185_v34 = vmul.f32 %v2181_v33, %v5937_v62  ;;  %v2162_v25 = vpop.f32.mrf.mxu1  ;;  %v2142_v46 = vpop.f32.mrf.mxu0 }
 0x459   : > { %v2187_v36 = vsel %vm2183_vm1, %v2181_v33, %v2185_v34 }
 0x45a   : > { %5117 = vmatpush.msk.msrb.mxu2 %vm413_vm0, %v2187_v36 }
 0x45b   : > { %5118 = vmatmul.msk.f32.vlgmr.msrb.gmra.mxu2 %vm409_vm2, %v5116_v29 }
 0x460   : > { %v2111_v8 = vpop.f32.mrf.mxu3  ;;  %v2091_v39 = vpop.f32.mrf.mxu2 }
 0x461   : > { %v2163_v37 = vadd.f32 %v2162_v25, %v2111_v8  ;;  %v2143_v48 = vadd.f32 %v2142_v46, %v2091_v39  ;;  %v2600_v8 = vld [vmem:[#allocation2 + $0xc] sm:$0xf] }
 0x4d6   : > { %v2237_v40 = vpop.f32.mrf.mxu3 }
 0x4d7   : > { %v2241_v41 = vadd.f32 %v2237_v40, %v2163_v37  ;;  %v2602_v37 = vmul.f32 %v2600_v8, %v5591_v51 }
 0x4d9   : > { %v2250_v45 = vadd.f32 %v2247_v44, %v2241_v41 }
 0x4db   : > { %v2255_v49 = vmul.f32 %v2253_v47, %v2250_v45  ;;  %vm2252_vm3 = vcmp.ge.f32.partialorder %v2250_v45, 0.0 }
 0x4dd   : > { %v2257_v53 = vsel %vm2252_vm3, %v2250_v45, %v2255_v49 }
 0x4de   : > { %v2217_v62 = vpop.f32.mrf.mxu2  ;;  %v2260_v58 = vrot.slane %v2257_v53, 4 }
 0x4df   : > { %v2240_v52 = vadd.f32 %v2217_v62, %v2143_v48  ;;  %v2742_v62 = vld [vmem:[#allocation2 + $0xc] sm:$0xf] }
 0x4e0   : > { %v2744_v53 = vmul.f32 %v2742_v62, %v5613_v4 }
 0x4e1   : > { %v2249_v55 = vadd.f32 %v2247_v44, %v2240_v52  ;;  %v2671_v44 = vld [vmem:[#allocation2 + $0xc] sm:$0xf] }
 0x4e2   : > { %v2673_v46 = vmul.f32 %v2671_v44, %v5603_v60 }
 0x4e3   : > { %vm2251_vm4 = vcmp.ge.f32.partialorder %v2249_v55, 0.0  ;;  %v2254_v56 = vmul.f32 %v2253_v47, %v2249_v55 }
 0x4e5   : > { %v2256_v61 = vsel %vm2251_vm4, %v2249_v55, %v2254_v56 }
 0x4e6   : > { %v5977_v1 = vsel %vm413_vm0, %v2256_v61, %v2260_v58  ;;  %v2813_v61 = vld [vmem:[#allocation2 + $0xc] sm:$0xf] }
 0x4e7   : > { %2263 = vst [vmem:[#allocation2 + $0x4] sm:$0xff] %v5977_v1  ;;  %v2543_v25 = vmul.f32 %v5977_v1, %v5589_v50  ;;  %v2601_v45 = vmul.f32 %v5977_v1, %v5601_v59  ;;  %v2672_v52 = vmul.f32 %v5977_v1, %v5617_v5 }
 0x4ee   : > { %v2264_v2 = vld [vmem:[#allocation2] sm:$0xff]  ;;  %v2265_v3 = vld [vmem:[#allocation2 + $0x8] sm:$0xf] }
 0x4ef   : > { %v2270_v6 = vmul.f32 %v2264_v2, %v5548_v12  ;;  %v2271_v11 = vmul.f32 %v2265_v3, %v5544_v10  ;;  %v2266_v63 = vmul.f32 %v2264_v2, %v5556_v18  ;;  %v2267_v13 = vmul.f32 %v2265_v3, %v5551_v16  ;;  %v2401_v22 = vld [vmem:[#allocation2 + $0x8] sm:$0xf] }
 0x4f0   : > { %v2402_v54 = vmul.f32 %v2264_v2, %v5567_v26  ;;  %v2403_v23 = vmul.f32 %v2401_v22, %v5559_v21  ;;  %v2472_v29 = vld [vmem:[#allocation2 + $0x8] sm:$0xf]  ;;  %v2473_v32 = vmul.f32 %v2264_v2, %v5581_v38  ;;  %v2743_v2 = vmul.f32 %v5977_v1, %v5627_v17  ;;  %v5171_v22 = vld [vmem:[%s6568_s4 + $0x3c] sm:$0xf] }
 0x4f1   : > { %2276 = vst [vmem:[#allocation1] ss:$2 sm:$0xff] %v2270_v6  ;;  %v2474_v7 = vmul.f32 %v2472_v29, %v5572_v30  ;;  %v2815_v3 = vmul.f32 %v2813_v61, %v5629_v19  ;;  %v5191_v29 = vld [vmem:[%s6567_s3 + $0x48] sm:$0xf]  ;;  %v5132_v61 = vld [vmem:[%s6571_s7 + $0x50] sm:$0xf] }
 0x4f2   : > { %2278 = vst [vmem:[#allocation1 + $0x10] ss:$2 sm:$0xff] %v2271_v11 }
 0x4f8   : > { %v2280_v14 = vld.sshfl [vmem:[#allocation1 + $0x8] sm:$0xff pattern:$0x75316420]  ;;  %v2279_v15 = vld.sshfl [vmem:[#allocation1] sm:$0xff pattern:$0x75316420] }
 0x4f9   : > { %v2281_v20 = vld.sshfl [vmem:[#allocation1 + $0x10] sm:$0xff pattern:$0x75316420]  ;;  %2284 = vrot.lane.b32.xlu1 %v2280_v14, %s5400_s29  ;;  %2339 = vst [vmem:[#allocation1] ss:$2 sm:$0xff] %v2266_v63 }
 0x4fa   : > { %2286 = vrot.lane.b32.xlu2 %v2281_v20, %s5400_s29  ;;  %2341 = vst [vmem:[#allocation1 + $0x10] ss:$2 sm:$0xff] %v2267_v13  ;;  %v2814_v13 = vmul.f32 %v5977_v1, %v5638_v27  ;;  %v5170_v1 = vld [vmem:[%s6567_s3 + $0x3c] sm:$0xf] }
 0x500   : > { %v2343_v9 = vld.sshfl [vmem:[#allocation1 + $0x8] sm:$0xff pattern:$0x75316420]  ;;  %v2342_v24 = vld.sshfl [vmem:[#allocation1] sm:$0xff pattern:$0x75316420] }
 0x501   : > { %v2344_v28 = vld.sshfl [vmem:[#allocation1 + $0x10] sm:$0xff pattern:$0x75316420]  ;;  %2347 = vrot.lane.b32.xlu0 %v2343_v9, %s5401_s10  ;;  %2408 = vst [vmem:[#allocation1] ss:$2 sm:$0xff] %v2402_v54 }
 0x502   : > { %2349 = vrot.lane.b32.xlu1 %v2344_v28, %s5401_s10  ;;  %2410 = vst [vmem:[#allocation1 + $0x10] ss:$2 sm:$0xff] %v2403_v23  ;;  %2282 = vrot.lane.b32.xlu2 %v2279_v15, %s5400_s29  ;;  %v5184_v23 = vld [vmem:[%s6567_s3 + $0x44] sm:$0xf]  ;;  %v5173_v28 = vld [vmem:[%s6567_s3 + $0x40] sm:$0xf] }
 0x508   : > { %v2412_v33 = vld.sshfl [vmem:[#allocation1 + $0x8] sm:$0xff pattern:$0x75316420]  ;;  %v2411_v34 = vld.sshfl [vmem:[#allocation1] sm:$0xff pattern:$0x75316420] }
 0x509   : > { %v2413_v36 = vld.sshfl [vmem:[#allocation1 + $0x10] sm:$0xff pattern:$0x75316420]  ;;  %2345 = vrot.lane.b32.xlu0 %v2342_v24, %s5401_s10  ;;  %2479 = vst [vmem:[#allocation1] ss:$2 sm:$0xff] %v2473_v32 }
 0x50a   : > { %2418 = vrot.lane.b32.xlu2 %v2413_v36, %s5403_s12  ;;  %2481 = vst [vmem:[#allocation1 + $0x10] ss:$2 sm:$0xff] %v2474_v7  ;;  %2416 = vrot.lane.b32.xlu1 %v2412_v33, %s5403_s12  ;;  %v5174_v24 = vld [vmem:[%s6568_s4 + $0x40] sm:$0xf]  ;;  %v5167_v32 = vld [vmem:[%s6572_s8 + $0x8] sm:$0xf] }
 0x50b   : > { %v5185_v7 = vld [vmem:[%s6568_s4 + $0x44] sm:$0xf]  ;;  %v5198_v33 = vld [vmem:[%s6570_s6 + $0xc] sm:$0xf] }
 0x510   : > { %v2483_v39 = vld.sshfl [vmem:[#allocation1 + $0x8] sm:$0xff pattern:$0x75316420]  ;;  %v2482_v40 = vld.sshfl [vmem:[#allocation1] sm:$0xff pattern:$0x75316420] }
 0x511   : > { %v2484_v41 = vld.sshfl [vmem:[#allocation1 + $0x10] sm:$0xff pattern:$0x75316420]  ;;  %2487 = vrot.lane.b32.xlu0 %v2483_v39, %s5398_s19  ;;  %2547 = vst [vmem:[#allocation1] ss:$2 sm:$0xff] %v2543_v25 }
 0x512   : > { %2489 = vrot.lane.b32.xlu1 %v2484_v41, %s5398_s19  ;;  %2609 = vst [vmem:[#allocation1 + $0x10] ss:$2 sm:$0xff] %v2602_v37  ;;  %2414 = vrot.lane.b32.xlu2 %v2411_v34, %s5403_s12  ;;  %v5192_v34 = vld [vmem:[%s6568_s4 + $0x48] sm:$0xf]  ;;  %v5123_v37 = vld [vmem:[%s6571_s7 + $0x4c] sm:$0xf] }
 0x518   : > { %v6005_v47 = vld.sshfl [vmem:[#allocation1] sm:$0xff pattern:$0x75316420]  ;;  %v6007_v48 = vld.sshfl [vmem:[#allocation1 + $0x8] sm:$0xff pattern:$0x75316420] }
 0x519   : > { %v2612_v49 = vld.sshfl [vmem:[#allocation1 + $0x10] sm:$0xff pattern:$0x75316420]  ;;  %2485 = vrot.lane.b32.xlu0 %v2482_v40, %s5398_s19  ;;  %2607 = vst [vmem:[#allocation1] ss:$2 sm:$0xff] %v2601_v45 }
 0x51a   : > { %2617 = vrot.lane.b32.xlu2 %v2612_v49, %s5397_s17  ;;  %2680 = vst [vmem:[#allocation1 + $0x10] ss:$2 sm:$0xff] %v2673_v46  ;;  %v5122_v46 = vld [vmem:[%s6571_s7 + $0x48] sm:$0xf] }
 0x520   : > { %v2611_v55 = vld.sshfl [vmem:[#allocation1 + $0x8] sm:$0xff pattern:$0x75316420]  ;;  %v2610_v56 = vld.sshfl [vmem:[#allocation1] sm:$0xff pattern:$0x75316420] }
 0x521   : > { %v2683_v58 = vld.sshfl [vmem:[#allocation1 + $0x10] sm:$0xff pattern:$0x75316420]  ;;  %2615 = vrot.lane.b32.xlu1 %v2611_v55, %s5397_s17  ;;  %2613 = vrot.lane.b32.xlu0 %v2610_v56, %s5397_s17  ;;  %2678 = vst [vmem:[#allocation1] ss:$2 sm:$0xff] %v2672_v52 }
 0x522   : > { %2688 = vrot.lane.b32.xlu2 %v2683_v58, %s5402_s11  ;;  %2751 = vst [vmem:[#allocation1 + $0x10] ss:$2 sm:$0xff] %v2744_v53 }
 0x528   : > { %v2682_v6 = vld.sshfl [vmem:[#allocation1 + $0x8] sm:$0xff pattern:$0x75316420]  ;;  %v2681_v11 = vld.sshfl [vmem:[#allocation1] sm:$0xff pattern:$0x75316420] }
 0x529   : > { %2686 = vrot.lane.b32.xlu1 %v2682_v6, %s5402_s11  ;;  %2749 = vst [vmem:[#allocation1] ss:$2 sm:$0xff] %v2743_v2  ;;  %v2754_v63 = vld.sshfl [vmem:[#allocation1 + $0x10] sm:$0xff pattern:$0x75316420] }
 0x52a   : > { %2684 = vrot.lane.b32.xlu2 %v2681_v11, %s5402_s11  ;;  %2822 = vst [vmem:[#allocation1 + $0x10] ss:$2 sm:$0xff] %v2815_v3  ;;  %v5137_v6 = vld [vmem:[%s6571_s7 + $0x54] sm:$0xf] }
 0x530   : > { %v2753_v14 = vld.sshfl [vmem:[#allocation1 + $0x8] sm:$0xff pattern:$0x75316420]  ;;  %v2752_v15 = vld.sshfl [vmem:[#allocation1] sm:$0xff pattern:$0x75316420] }
 0x531   : > { %2759 = vrot.lane.b32.xlu1 %v2754_v63, %s5395_s24  ;;  %v2825_v20 = vld.sshfl [vmem:[#allocation1 + $0x10] sm:$0xff pattern:$0x75316420]  ;;  %2757 = vrot.lane.b32.xlu0 %v2753_v14, %s5395_s24  ;;  %2820 = vst [vmem:[#allocation1] ss:$2 sm:$0xff] %v2814_v13 }
 0x532   : > { %2830 = vrot.lane.b32.xlu2 %v2825_v20, %s5399_s20 }
 0x538   : > { %v2824_v54 = vld.sshfl [vmem:[#allocation1 + $0x8] sm:$0xff pattern:$0x75316420]  ;;  %v2823_v9 = vld.sshfl [vmem:[#allocation1] sm:$0xff pattern:$0x75316420] }
 0x539   : > { %2755 = vrot.lane.b32.xlu0 %v2752_v15, %s5395_s24  ;;  %2828 = vrot.lane.b32.xlu1 %v2824_v54, %s5399_s20 }
 0x53a   : > { %2910 = vperm.xlu2 %5363, %v5171_v22   ;;  %v5147_v22 = vld [vmem:[%s6571_s7 + $0x5c] sm:$0xf] }
 0x541   : > { %2898 = vperm.xlu1 %5362, %v5170_v1   ;;  %2826 = vrot.lane.b32.xlu0 %v2823_v9, %s5399_s20 }
 0x542   : > { %3054 = vperm.xlu2 %5363, %v5184_v23  }
 0x549   : > { %2937 = vperm.xlu1 %5362, %v5174_v24   ;;  %2928 = vperm.xlu0 %5361, %v5173_v28   ;;  %v5152_v24 = vld [vmem:[%s6571_s7 + $0x60] sm:$0xf] }
 0x54a   : > { %3131 = vperm.xlu2 %5363, %v5191_v29  }
 0x551   : > { %2887 = vperm.xlu1 %5362, %v5167_v32   ;;  %3063 = vperm.xlu0 %5361, %v5185_v7  }
 0x554   : > { %v2287_v36 = vpop.permute.xlu2 %2286 }
 0x559   : > { %3208 = vperm.xlu1 %5362, %v5198_v33   ;;  %3140 = vperm.xlu0 %5361, %v5192_v34   ;;  %v5157_v33 = vld [vmem:[%s6571_s7 + $0x64] sm:$0xf] }
 0x55c   : > { %v2283_v8 = vpop.permute.xlu2 %2282 }
 0x564   : > { %v2419_v41 = vpop.permute.xlu2 %2418 }
 0x56b   : > { %v2285_v25 = vpop.permute.xlu1 %2284 }
 0x56c   : > { %v2288_v39 = vsel %vm518_vm11, %v2283_v8, %v2285_v25  ;;  %v2289_v40 = vsel %vm518_vm11, %v2285_v25, %v2287_v36  ;;  %v2415_v52 = vpop.permute.xlu2 %2414 }
 0x56d   : > { %5124 = vmatpush.msk.msra.mxu0 %vm413_vm0, %v2288_v39  ;;  %5126 = vmatpush.msk.msra.mxu1 %vm413_vm0, %v2289_v40 }
 0x56e   : > { %5125 = vmatmul.msk.f32.vlgmr.msra.gmra.mxu0 %vm409_vm2, %v5123_v37  ;;  %5127 = vmatmul.msk.f32.vlgmr.msra.gmra.mxu1 %vm409_vm2, %v5123_v37  ;;  %v5162_v37 = vld [vmem:[%s6571_s7 + $0x68] sm:$0xf] }
 0x573   : > { %v2348_v44 = vpop.permute.xlu0 %2347 }
 0x574   : > { %v2350_v45 = vpop.permute.xlu1 %2349 }
 0x575   : > { %v2352_v49 = vsel %vm582_vm12, %v2348_v44, %v2350_v45 }
 0x576   : > { %5130 = vmatpush.msk.msra.mxu3 %vm413_vm0, %v2352_v49 }
 0x577   : > { %5131 = vmatmul.msk.f32.vlgmr.msra.gmra.mxu3 %vm409_vm2, %v5122_v46 }
 0x57b   : > { %v2346_v62 = vpop.permute.xlu0 %2345 }
 0x57c   : > { %v2351_v53 = vsel %vm582_vm12, %v2346_v62, %v2348_v44  ;;  %v2417_v55 = vpop.permute.xlu1 %2416 }
 0x57d   : > { %v2420_v56 = vsel %vm664_vm10, %v2415_v52, %v2417_v55  ;;  %v2421_v58 = vsel %vm664_vm10, %v2417_v55, %v2419_v41  ;;  %5128 = vmatpush.msk.msra.mxu2 %vm413_vm0, %v2351_v53  ;;  %v6144_v53 = vstv %s5168_s23 }
 0x57e   : > { %5133 = vmatpush.msk.msrb.mxu0 %vm413_vm0, %v2420_v56  ;;  %5135 = vmatpush.msk.msrb.mxu1 %vm413_vm0, %v2421_v58 }
 0x57f   : > { %5129 = vmatmul.msk.f32.vlgmr.msra.gmra.mxu2 %vm409_vm2, %v5122_v46  ;;  %5136 = vmatmul.msk.f32.vlgmr.msrb.gmra.mxu1 %vm409_vm2, %v5132_v61 }
 0x580   : > { %5143 = vmatpush.msk.msra.mxu0 %vm413_vm0, %v6005_v47  ;;  %5145 = vmatpush.msk.msra.mxu1 %vm413_vm0, %v6007_v48  ;;  %v5142_v47 = vld [vmem:[%s6571_s7 + $0x58] sm:$0xf]  ;;  %v2618_v48 = vpop.permute.xlu2 %2617 }
 0x581   : > { %5134 = vmatmul.msk.f32.vlgmr.msrb.gmra.mxu0 %vm409_vm2, %v5132_v61 }
 0x583   : > { %v2488_v2 = vpop.permute.xlu0 %2487 }
 0x584   : > { %v2490_v3 = vpop.permute.xlu1 %2489 }
 0x585   : > { %v2492_v11 = vsel %vm748_vm9, %v2488_v2, %v2490_v3 }
 0x586   : > { %5140 = vmatpush.msk.msrb.mxu3 %vm413_vm0, %v2492_v11 }
 0x587   : > { %5141 = vmatmul.msk.f32.vlgmr.msrb.gmra.mxu3 %vm409_vm2, %v5137_v6  ;;  %5146 = vmatmul.msk.f32.vlgmr.msra.gmra.mxu1 %vm409_vm2, %v5142_v47 }
 0x588   : > { %v2689_v14 = vpop.permute.xlu2 %2688 }
 0x589   : > { %5144 = vmatmul.msk.f32.vlgmr.msra.gmra.mxu0 %vm409_vm2, %v5142_v47 }
 0x58b   : > { %v2486_v63 = vpop.permute.xlu0 %2485 }
 0x58c   : > { %v2491_v13 = vsel %vm748_vm9, %v2486_v63, %v2488_v2 }
 0x58d   : > { %5138 = vmatpush.msk.msrb.mxu2 %vm413_vm0, %v2491_v13 }
 0x58e   : > { %5139 = vmatmul.msk.f32.vlgmr.msrb.gmra.mxu2 %vm409_vm2, %v5137_v6 }
 0x590   : > { %v2685_v23 = vpop.permute.xlu2 %2684 }
 0x593   : > { %v2616_v15 = vpop.permute.xlu1 %2615  ;;  %v2614_v20 = vpop.permute.xlu0 %2613 }
 0x594   : > { %v2620_v54 = vsel %vm726_vm8, %v2616_v15, %v2618_v48  ;;  %v2619_v1 = vsel %vm726_vm8, %v2614_v20, %v2616_v15 }
 0x595   : > { %5148 = vmatpush.msk.msra.mxu2 %vm413_vm0, %v2619_v1  ;;  %5150 = vmatpush.msk.msra.mxu3 %vm413_vm0, %v2620_v54 }
 0x596   : > { %5151 = vmatmul.msk.f32.vlgmr.msra.gmra.mxu3 %vm409_vm2, %v5147_v22  ;;  %5149 = vmatmul.msk.f32.vlgmr.msra.gmra.mxu2 %vm409_vm2, %v5147_v22 }
 0x598   : > { %v2831_v36 = vpop.permute.xlu2 %2830 }
 0x59b   : > { %v2687_v9 = vpop.permute.xlu1 %2686 }
 0x59c   : > { %v2690_v28 = vsel %vm642_vm7, %v2685_v23, %v2687_v9  ;;  %v2691_v29 = vsel %vm642_vm7, %v2687_v9, %v2689_v14 }
 0x59d   : > { %5153 = vmatpush.msk.msrb.mxu0 %vm413_vm0, %v2690_v28  ;;  %5155 = vmatpush.msk.msrb.mxu1 %vm413_vm0, %v2691_v29 }
 0x59e   : > { %5156 = vmatmul.msk.f32.vlgmr.msrb.gmra.mxu1 %vm409_vm2, %v5152_v24  ;;  %5154 = vmatmul.msk.f32.vlgmr.msrb.gmra.mxu0 %vm409_vm2, %v5152_v24 }
 0x5a0   : > { %v2911_v41 = vpop.permute.xlu2 %2910 }
 0x5a1   : > { %v2915_v62 = vperm.slane %v2911_v41, %v5505_v35 }
 0x5a3   : > { %v2760_v32 = vpop.permute.xlu1 %2759  ;;  %v2758_v7 = vpop.permute.xlu0 %2757 }
 0x5a4   : > { %v2762_v34 = vsel %vm496_vm5, %v2758_v7, %v2760_v32 }
 0x5a5   : > { %5160 = vmatpush.msk.msrb.mxu3 %vm413_vm0, %v2762_v34 }
 0x5a6   : > { %5161 = vmatmul.msk.f32.vlgmr.msrb.gmra.mxu3 %vm409_vm2, %v5157_v33 }
 0x5a8   : > { %v3055_v48 = vpop.permute.xlu2 %3054 }
 0x5a9   : > { %v3057_v13 = vmul.f32 %v3055_v48, %v5968_v31  ;;  %v3058_v14 = vmul.f32 %v3055_v48, %v5961_v0 }
 0x5ab   : > { %v2756_v8 = vpop.permute.xlu0 %2755  ;;  %v2829_v25 = vpop.permute.xlu1 %2828 }
 0x5ac   : > { %v2761_v39 = vsel %vm496_vm5, %v2756_v8, %v2758_v7  ;;  %v2833_v40 = vsel %vm481_vm6, %v2829_v25, %v2831_v36  ;;  %v5175_v7 = vld [vmem:[%s6569_s5 + $0x40] sm:$0xf] }
 0x5ad   : > { %5158 = vmatpush.msk.msrb.mxu2 %vm413_vm0, %v2761_v39  ;;  %5165 = vmatpush.msk.msra.mxu1 %vm413_vm0, %v2833_v40 }
 0x5ae   : > { %5159 = vmatmul.msk.f32.vlgmr.msrb.gmra.mxu2 %vm409_vm2, %v5157_v33  ;;  %5166 = vmatmul.msk.f32.vlgmr.msra.gmra.mxu1 %vm409_vm2, %v5162_v37 }
 0x5b3   : > { %v2899_v44 = vpop.permute.xlu1 %2898  ;;  %v2827_v45 = vpop.permute.xlu0 %2826 }
 0x5b4   : > { %v2903_v46 = vperm.slane %v2899_v44, %v5505_v35  ;;  %v2832_v49 = vsel %vm481_vm6, %v2827_v45, %v2829_v25  ;;  %v5172_v25 = vld [vmem:[%s6569_s5 + $0x3c] sm:$0xf] }
 0x5b5   : > { %5163 = vmatpush.msk.msra.mxu0 %vm413_vm0, %v2832_v49 }
 0x5b6   : > { %v2905_v52 = vmul.f32 %v5934_v43, %v2903_v46  ;;  %5164 = vmatmul.msk.f32.vlgmr.msra.gmra.mxu0 %vm409_vm2, %v5162_v37  ;;  %v5186_v37 = vld [vmem:[%s6569_s5 + $0x44] sm:$0xf] }
 0x5b8   : > { %v2917_v55 = vadd.f32 %v2915_v62, %v2905_v52 }
 0x5ba   : > { %vm2918_vm13 = vcmp.ge.f32.partialorder %v2917_v55, 0.0  ;;  %v2920_v56 = vmul.f32 %v6144_v53, %v2917_v55 }
 0x5bb   : > { %v2929_v58 = vpop.permute.xlu0 %2928  ;;  %v2938_v6 = vpop.permute.xlu1 %2937 }
 0x5bc   : > { %v2921_v61 = vsel %vm2918_vm13, %v2917_v55, %v2920_v56  ;;  %v2931_v2 = vmul.f32 %v2929_v58, %v5764_v57  ;;  %v2932_v3 = vmul.f32 %v2929_v58, %v5760_v42 }
 0x5bd   : > { %3000 = vst [vmem:[#allocation1] ss:$2 sm:$0xff] %v2921_v61 }
 0x5be   : > { %v2940_v11 = vadd.f32 %v2938_v6, %v2931_v2  ;;  %v2941_v47 = vadd.f32 %v2938_v6, %v2932_v3 }
 0x5c0   : > { %v2944_v43 = vmul.f32 %v2940_v11, %v6144_v53  ;;  %v2945_v63 = vmul.f32 %v2941_v47, %v6144_v53  ;;  %vm2942_vm14 = vcmp.ge.f32.partialorder %v2940_v11, 0.0  ;;  %vm2943_vm15 = vcmp.ge.f32.partialorder %v2941_v47, 0.0 }
 0x5c2   : > { %v2946_v15 = vsel %vm2942_vm14, %v2940_v11, %v2944_v43  ;;  %v2947_v20 = vsel %vm2943_vm15, %v2941_v47, %v2945_v63 }
 0x5c3   : > { %5176 = vmatpush.msk.msra.mxu2 %vm413_vm0, %v2946_v15  ;;  %5178 = vmatpush.msk.msra.mxu3 %vm413_vm0, %v2947_v20  ;;  %v3064_v22 = vpop.permute.xlu0 %3063 }
 0x5c4   : > { %v3066_v54 = vadd.f32 %v3064_v22, %v3057_v13  ;;  %v3067_v1 = vadd.f32 %v3064_v22, %v3058_v14  ;;  %v3001_v23 = vld.sshfl [vmem:[#allocation1] sm:$0xff pattern:$0x75316420]  ;;  %v3002_v9 = vld.sshfl [vmem:[#allocation1 + $0x8] sm:$0xff pattern:$0x75316420]  ;;  %5179 = vmatmul.msk.f32.vlgmr.msra.gmra.mxu3 %vm409_vm2, %v5175_v7  ;;  %5177 = vmatmul.msk.f32.vlgmr.msra.gmra.mxu2 %vm409_vm2, %v5175_v7  ;;  %v2888_v22 = vpop.permute.xlu1 %2887 }
 0x5c5   : > { %5180 = vmatpush.msk.msrb.mxu0 %vm413_vm0, %v3001_v23  ;;  %5182 = vmatpush.msk.msrb.mxu1 %vm413_vm0, %v3002_v9 }
 0x5c6   : > { %vm3068_vm1 = vcmp.ge.f32.partialorder %v3066_v54, 0.0  ;;  %vm3069_vm3 = vcmp.ge.f32.partialorder %v3067_v1, 0.0  ;;  %v3070_v24 = vmul.f32 %v3066_v54, %v6144_v53  ;;  %v3071_v28 = vmul.f32 %v3067_v1, %v6144_v53  ;;  %5183 = vmatmul.msk.f32.vlgmr.msrb.gmra.mxu1 %vm409_vm2, %v5172_v25  ;;  %5181 = vmatmul.msk.f32.vlgmr.msrb.gmra.mxu0 %vm409_vm2, %v5172_v25 }
 0x5c8   : > { %v3072_v29 = vsel %vm3068_vm1, %v3066_v54, %v3070_v24  ;;  %v3073_v32 = vsel %vm3069_vm3, %v3067_v1, %v3071_v28  ;;  %v3132_v1 = vpop.permute.xlu2 %3131 }
 0x5c9   : > { %5187 = vmatpush.msk.msrb.mxu2 %vm413_vm0, %v3072_v29  ;;  %5189 = vmatpush.msk.msrb.mxu3 %vm413_vm0, %v3073_v32 }
 0x5cb   : > { %v3141_v24 = vpop.permute.xlu0 %3140 }
 0x5cc   : > { %5190 = vmatmul.msk.f32.vlgmr.msrb.gmra.mxu3 %vm409_vm2, %v5186_v37  ;;  %5188 = vmatmul.msk.f32.vlgmr.msrb.gmra.mxu2 %vm409_vm2, %v5186_v37 }
 0x5eb   : > { %v2334_v33 = vpop.f32.mrf.mxu1  ;;  %v2314_v34 = vpop.f32.mrf.mxu0 }
 0x5fa   : > { %v2397_v36 = vpop.f32.mrf.mxu3 }
 0x5fb   : > { %v2398_v39 = vadd.f32 %v2397_v36, %v2334_v33  ;;  %v5193_v36 = vld [vmem:[%s6569_s5 + $0x48] sm:$0xf] }
 0x5fc   : > { %v2466_v8 = vpop.f32.mrf.mxu1 }
 0x5fd   : > { %v2470_v45 = vadd.f32 %v2466_v8, %v2398_v39 }
 0x5fe   : > { %v2446_v41 = vpop.f32.mrf.mxu0 }
 0x602   : > { %v2377_v40 = vpop.f32.mrf.mxu2 }
 0x603   : > { %v2378_v49 = vadd.f32 %v2377_v40, %v2314_v34 }
 0x604   : > { %v2594_v46 = vpop.f32.mrf.mxu1 }
 0x605   : > { %v2469_v55 = vadd.f32 %v2446_v41, %v2378_v49 }
 0x606   : > { %v2574_v58 = vpop.f32.mrf.mxu0 }
 0x60a   : > { %v2537_v44 = vpop.f32.mrf.mxu3 }
 0x60b   : > { %v2541_v62 = vadd.f32 %v2537_v44, %v2470_v45 }
 0x60d   : > { %v2598_v56 = vadd.f32 %v2594_v46, %v2541_v62 }
 0x611   : > { %v2517_v52 = vpop.f32.mrf.mxu2 }
 0x612   : > { %v2540_v3 = vadd.f32 %v2517_v52, %v2469_v55 }
 0x614   : > { %v2597_v11 = vadd.f32 %v2574_v58, %v2540_v3 }
 0x619   : > { %v2665_v61 = vpop.f32.mrf.mxu3  ;;  %v2645_v48 = vpop.f32.mrf.mxu2 }
 0x61a   : > { %v2669_v6 = vadd.f32 %v2665_v61, %v2598_v56  ;;  %v2668_v15 = vadd.f32 %v2645_v48, %v2597_v11  ;;  %v3209_v61 = vpop.permute.xlu1 %3208 }
 0x61b   : > { %v2736_v2 = vpop.f32.mrf.mxu1  ;;  %v2716_v13 = vpop.f32.mrf.mxu0 }
 0x61c   : > { %v2740_v47 = vadd.f32 %v2736_v2, %v2669_v6  ;;  %v2739_v23 = vadd.f32 %v2716_v13, %v2668_v15 }
 0x629   : > { %v2807_v43 = vpop.f32.mrf.mxu3 }
 0x62a   : > { %v2811_v63 = vadd.f32 %v2807_v43, %v2740_v47 }
 0x62b   : > { %v2878_v14 = vpop.f32.mrf.mxu1 }
 0x62c   : > { %v2882_v20 = vadd.f32 %v2878_v14, %v2811_v63 }
 0x62e   : > { %v6176_v54 = vadd.f32 %v2888_v22, %v2882_v20 }
 0x630   : > { %v3135_v9 = vmul.f32 %v3132_v1, %v6176_v54 }
 0x631   : > { %v2787_v28 = vpop.f32.mrf.mxu2 }
 0x632   : > { %v3144_v29 = vadd.f32 %v3141_v24, %v3135_v9  ;;  %v2810_v32 = vadd.f32 %v2787_v28, %v2739_v23 }
 0x633   : > { %v2858_v7 = vpop.f32.mrf.mxu0 }
 0x634   : > { %v2881_v33 = vadd.f32 %v2858_v7, %v2810_v32  ;;  %vm3146_vm4 = vcmp.ge.f32.partialorder %v3144_v29, 0.0  ;;  %v3148_v34 = vmul.f32 %v3144_v29, %v6144_v53 }
 0x636   : > { %v6183_v8 = vadd.f32 %v2888_v22, %v2881_v33  ;;  %v3150_v25 = vsel %vm3146_vm4, %v3144_v29, %v3148_v34 }
 0x637   : > { %5196 = vmatpush.msk.msra.mxu1 %vm413_vm0, %v3150_v25 }
 0x638   : > { %v3134_v37 = vmul.f32 %v3132_v1, %v6183_v8  ;;  %5197 = vmatmul.msk.f32.vlgmr.msra.gmra.mxu1 %vm409_vm2, %v5193_v36 }
 0x63a   : > { %v3143_v39 = vadd.f32 %v3141_v24, %v3134_v37 }
 0x63c   : > { %vm3145_vm13 = vcmp.ge.f32.partialorder %v3143_v39, 0.0  ;;  %v3147_v40 = vmul.f32 %v3143_v39, %v6144_v53  ;;  %v3215_v53 = vstv %s5169_s22 }
 0x63e   : > { %v3149_v41 = vsel %vm3145_vm13, %v3143_v39, %v3147_v40 }
 0x63f   : > { %5194 = vmatpush.msk.msra.mxu0 %vm413_vm0, %v3149_v41 }
 0x640   : > { %5195 = vmatmul.msk.f32.vlgmr.msra.gmra.mxu0 %vm409_vm2, %v5193_v36 }
 0x643   : > { %v3047_v45 = vpop.f32.mrf.mxu1  ;;  %v3027_v55 = vpop.f32.mrf.mxu0 }
 0x647   : > { %v2996_v44 = vpop.f32.mrf.mxu3  ;;  %v2976_v49 = vpop.f32.mrf.mxu2 }
 0x648   : > { %v3048_v46 = vadd.f32 %v3047_v45, %v2996_v44  ;;  %v3028_v2 = vadd.f32 %v3027_v55, %v2976_v49 }
 0x64f   : > { %v3122_v62 = vpop.f32.mrf.mxu3  ;;  %v3102_v6 = vpop.f32.mrf.mxu2 }
 0x650   : > { %v3126_v52 = vadd.f32 %v3122_v62, %v3048_v46  ;;  %v3125_v11 = vadd.f32 %v3102_v6, %v3028_v2 }
 0x6b5   : > { %v3199_v56 = vpop.f32.mrf.mxu1 }
 0x6b6   : > { %v3203_v58 = vadd.f32 %v3199_v56, %v3126_v52  ;;  %v3562_v52 = vld [vmem:[#allocation2 + $0xc] sm:$0xf] }
 0x6b7   : > { %v3564_v56 = vmul.f32 %v3562_v52, %v5591_v51 }
 0x6b8   : > { %v3212_v3 = vadd.f32 %v3209_v61, %v3203_v58 }
 0x6ba   : > { %v3217_v47 = vmul.f32 %v3215_v53, %v3212_v3  ;;  %vm3214_vm14 = vcmp.ge.f32.partialorder %v3212_v3, 0.0 }
 0x6bc   : > { %v3219_v63 = vsel %vm3214_vm14, %v3212_v3, %v3217_v47  ;;  %v3633_v3 = vld [vmem:[#allocation2 + $0xc] sm:$0xf] }
 0x6bd   : > { %v3179_v48 = vpop.f32.mrf.mxu0  ;;  %v3222_v15 = vrot.slane %v3219_v63, 4 }
 0x6be   : > { %v3202_v43 = vadd.f32 %v3179_v48, %v3125_v11 }
 0x6c0   : > { %v3211_v13 = vadd.f32 %v3209_v61, %v3202_v43  ;;  %v3704_v43 = vld [vmem:[#allocation2 + $0xc] sm:$0xf] }
 0x6c2   : > { %vm3213_vm15 = vcmp.ge.f32.partialorder %v3211_v13, 0.0  ;;  %v3216_v14 = vmul.f32 %v3215_v53, %v3211_v13  ;;  %v3635_v53 = vmul.f32 %v3633_v3, %v5603_v60 }
 0x6c4   : > { %v3218_v20 = vsel %vm3213_vm15, %v3211_v13, %v3216_v14  ;;  %v3706_v13 = vmul.f32 %v3704_v43, %v5613_v4 }
 0x6c5   : > { %v6192_v22 = vsel %vm413_vm0, %v3218_v20, %v3222_v15 }
 0x6c6   : > { %3225 = vst [vmem:[#allocation2 + $0x4] sm:$0xff] %v6192_v22  ;;  %v3505_v55 = vmul.f32 %v6192_v22, %v5589_v50  ;;  %v3563_v6 = vmul.f32 %v6192_v22, %v5601_v59  ;;  %v3634_v63 = vmul.f32 %v6192_v22, %v5617_v5 }
 0x6cd   : > { %v3226_v1 = vld [vmem:[#allocation2] sm:$0xff]  ;;  %v3227_v23 = vld [vmem:[#allocation2 + $0x8] sm:$0xf] }
 0x6ce   : > { %v3232_v9 = vmul.f32 %v3226_v1, %v5548_v12  ;;  %v3233_v24 = vmul.f32 %v3227_v23, %v5544_v10  ;;  %v3228_v28 = vmul.f32 %v3226_v1, %v5556_v18  ;;  %v3229_v29 = vmul.f32 %v3227_v23, %v5551_v16  ;;  %v3363_v34 = vld [vmem:[#allocation2 + $0x8] sm:$0xf] }
 0x6cf   : > { %v3364_v36 = vmul.f32 %v3226_v1, %v5567_v26  ;;  %v3365_v25 = vmul.f32 %v3363_v34, %v5559_v21  ;;  %v3434_v41 = vld [vmem:[#allocation2 + $0x8] sm:$0xf]  ;;  %v3435_v44 = vmul.f32 %v3226_v1, %v5581_v38  ;;  %v3775_v1 = vld [vmem:[#allocation2 + $0xc] sm:$0xf]  ;;  %v3705_v23 = vmul.f32 %v6192_v22, %v5627_v17 }
 0x6d0   : > { %3238 = vst [vmem:[#allocation1] ss:$2 sm:$0xff] %v3232_v9  ;;  %v3436_v45 = vmul.f32 %v3434_v41, %v5572_v30  ;;  %v3777_v9 = vmul.f32 %v3775_v1, %v5629_v19  ;;  %v5251_v41 = vld [vmem:[%s6568_s4 + $0x54] sm:$0xf] }
 0x6d1   : > { %3240 = vst [vmem:[#allocation1 + $0x10] ss:$2 sm:$0xff] %v3233_v24 }
 0x6d7   : > { %v3242_v32 = vld.sshfl [vmem:[#allocation1 + $0x8] sm:$0xff pattern:$0x75316420]  ;;  %v3241_v7 = vld.sshfl [vmem:[#allocation1] sm:$0xff pattern:$0x75316420] }
 0x6d8   : > { %v3243_v33 = vld.sshfl [vmem:[#allocation1 + $0x10] sm:$0xff pattern:$0x75316420]  ;;  %3246 = vrot.lane.b32.xlu2 %v3242_v32, %s5400_s29  ;;  %3244 = vrot.lane.b32.xlu1 %v3241_v7, %s5400_s29  ;;  %3301 = vst [vmem:[#allocation1] ss:$2 sm:$0xff] %v3228_v28  ;;  %v3776_v32 = vmul.f32 %v6192_v22, %v5638_v27 }
 0x6d9   : > { %3248 = vrot.lane.b32.xlu0 %v3243_v33, %s5400_s29  ;;  %3303 = vst [vmem:[#allocation1 + $0x10] ss:$2 sm:$0xff] %v3229_v29  ;;  %v5247_v22 = vld [vmem:[%s6567_s3 + $0x50] sm:$0xf] }
 0x6df   : > { %v3305_v37 = vld.sshfl [vmem:[#allocation1 + $0x8] sm:$0xff pattern:$0x75316420]  ;;  %v3304_v39 = vld.sshfl [vmem:[#allocation1] sm:$0xff pattern:$0x75316420] }
 0x6e0   : > { %v3306_v40 = vld.sshfl [vmem:[#allocation1 + $0x10] sm:$0xff pattern:$0x75316420]  ;;  %3309 = vrot.lane.b32.xlu2 %v3305_v37, %s5401_s10  ;;  %3307 = vrot.lane.b32.xlu1 %v3304_v39, %s5401_s10  ;;  %3370 = vst [vmem:[#allocation1] ss:$2 sm:$0xff] %v3364_v36 }
 0x6e1   : > { %3311 = vrot.lane.b32.xlu0 %v3306_v40, %s5401_s10  ;;  %3372 = vst [vmem:[#allocation1 + $0x10] ss:$2 sm:$0xff] %v3365_v25  ;;  %v5248_v37 = vld [vmem:[%s6568_s4 + $0x50] sm:$0xf]  ;;  %v5250_v39 = vld [vmem:[%s6567_s3 + $0x54] sm:$0xf] }
 0x6e2   : > { %v5261_v40 = vld [vmem:[%s6567_s3 + $0x58] sm:$0xf] }
 0x6e7   : > { %v3374_v46 = vld.sshfl [vmem:[#allocation1 + $0x8] sm:$0xff pattern:$0x75316420]  ;;  %v3373_v49 = vld.sshfl [vmem:[#allocation1] sm:$0xff pattern:$0x75316420] }
 0x6e8   : > { %v3375_v62 = vld.sshfl [vmem:[#allocation1 + $0x10] sm:$0xff pattern:$0x75316420]  ;;  %3378 = vrot.lane.b32.xlu2 %v3374_v46, %s5403_s12  ;;  %3376 = vrot.lane.b32.xlu1 %v3373_v49, %s5403_s12  ;;  %3441 = vst [vmem:[#allocation1] ss:$2 sm:$0xff] %v3435_v44 }
 0x6e9   : > { %3380 = vrot.lane.b32.xlu0 %v3375_v62, %s5403_s12  ;;  %3443 = vst [vmem:[#allocation1 + $0x10] ss:$2 sm:$0xff] %v3436_v45  ;;  %v5268_v44 = vld [vmem:[%s6567_s3 + $0x5c] sm:$0xf]  ;;  %v5262_v46 = vld [vmem:[%s6568_s4 + $0x58] sm:$0xf] }
 0x6ea   : > { %v5269_v45 = vld [vmem:[%s6568_s4 + $0x5c] sm:$0xf]  ;;  %v5244_v49 = vld [vmem:[%s6572_s8 + $0xc] sm:$0xf]  ;;  %v5276_v62 = vld [vmem:[%s6568_s4 + $0x60] sm:$0xf] }
 0x6ef   : > { %v3445_v58 = vld.sshfl [vmem:[#allocation1 + $0x8] sm:$0xff pattern:$0x75316420]  ;;  %v3444_v61 = vld.sshfl [vmem:[#allocation1] sm:$0xff pattern:$0x75316420] }
 0x6f0   : > { %v3446_v2 = vld.sshfl [vmem:[#allocation1 + $0x10] sm:$0xff pattern:$0x75316420]  ;;  %3449 = vrot.lane.b32.xlu2 %v3445_v58, %s5398_s19  ;;  %3447 = vrot.lane.b32.xlu1 %v3444_v61, %s5398_s19  ;;  %3509 = vst [vmem:[#allocation1] ss:$2 sm:$0xff] %v3505_v55 }
 0x6f1   : > { %3451 = vrot.lane.b32.xlu0 %v3446_v2, %s5398_s19  ;;  %3571 = vst [vmem:[#allocation1 + $0x10] ss:$2 sm:$0xff] %v3564_v56  ;;  %v5275_v55 = vld [vmem:[%s6567_s3 + $0x60] sm:$0xf]  ;;  %v5282_v56 = vld [vmem:[%s6570_s6 + $0x10] sm:$0xf] }
 0x6f2   : > { %v5200_v2 = vld [vmem:[%s6571_s7 + $0x70] sm:$0xf] }
 0x6f7   : > { %v6221_v11 = vld.sshfl [vmem:[#allocation1] sm:$0xff pattern:$0x75316420]  ;;  %v6223_v47 = vld.sshfl [vmem:[#allocation1 + $0x8] sm:$0xff pattern:$0x75316420] }
 0x6f8   : > { %v3574_v48 = vld.sshfl [vmem:[#allocation1 + $0x10] sm:$0xff pattern:$0x75316420]  ;;  %3569 = vst [vmem:[#allocation1] ss:$2 sm:$0xff] %v3563_v6 }
 0x6f9   : > { %3579 = vrot.lane.b32.xlu0 %v3574_v48, %s5397_s17  ;;  %3642 = vst [vmem:[#allocation1 + $0x10] ss:$2 sm:$0xff] %v3635_v53 }
 0x6ff   : > { %v3573_v14 = vld.sshfl [vmem:[#allocation1 + $0x8] sm:$0xff pattern:$0x75316420]  ;;  %v3572_v15 = vld.sshfl [vmem:[#allocation1] sm:$0xff pattern:$0x75316420] }
 0x700   : > { %v3645_v20 = vld.sshfl [vmem:[#allocation1 + $0x10] sm:$0xff pattern:$0x75316420]  ;;  %3577 = vrot.lane.b32.xlu2 %v3573_v14, %s5397_s17  ;;  %3575 = vrot.lane.b32.xlu1 %v3572_v15, %s5397_s17  ;;  %3640 = vst [vmem:[#allocation1] ss:$2 sm:$0xff] %v3634_v63 }
 0x701   : > { %3650 = vrot.lane.b32.xlu0 %v3645_v20, %s5402_s11  ;;  %3713 = vst [vmem:[#allocation1 + $0x10] ss:$2 sm:$0xff] %v3706_v13  ;;  %v5199_v14 = vld [vmem:[%s6571_s7 + $0x6c] sm:$0xf] }
 0x707   : > { %v3644_v24 = vld.sshfl [vmem:[#allocation1 + $0x8] sm:$0xff pattern:$0x75316420]  ;;  %v3643_v28 = vld.sshfl [vmem:[#allocation1] sm:$0xff pattern:$0x75316420] }
 0x708   : > { %v3716_v29 = vld.sshfl [vmem:[#allocation1 + $0x10] sm:$0xff pattern:$0x75316420]  ;;  %3648 = vrot.lane.b32.xlu2 %v3644_v24, %s5402_s11  ;;  %3646 = vrot.lane.b32.xlu1 %v3643_v28, %s5402_s11  ;;  %3711 = vst [vmem:[#allocation1] ss:$2 sm:$0xff] %v3705_v23 }
 0x709   : > { %3784 = vst [vmem:[#allocation1 + $0x10] ss:$2 sm:$0xff] %v3777_v9  ;;  %v5209_v28 = vld [vmem:[%s6571_s7 + $0x74] sm:$0xf] }
 0x70f   : > { %v3714_v7 = vld.sshfl [vmem:[#allocation1] sm:$0xff pattern:$0x75316420]  ;;  %v3715_v33 = vld.sshfl [vmem:[#allocation1 + $0x8] sm:$0xff pattern:$0x75316420] }
 0x710   : > { %v3787_v34 = vld.sshfl [vmem:[#allocation1 + $0x10] sm:$0xff pattern:$0x75316420]  ;;  %3782 = vst [vmem:[#allocation1] ss:$2 sm:$0xff] %v3776_v32 }
 0x711   : > { %3792 = vrot.lane.b32.xlu0 %v3787_v34, %s5399_s20  ;;  %v5214_v34 = vld [vmem:[%s6571_s7 + $0x78] sm:$0xf] }
 0x717   : > { %v3786_v36 = vld.sshfl [vmem:[#allocation1 + $0x8] sm:$0xff pattern:$0x75316420]  ;;  %v3785_v25 = vld.sshfl [vmem:[#allocation1] sm:$0xff pattern:$0x75316420] }
 0x718   : > { %3790 = vrot.lane.b32.xlu2 %v3786_v36, %s5399_s20  ;;  %3788 = vrot.lane.b32.xlu1 %v3785_v25, %s5399_s20  ;;  %v5224_v25 = vld [vmem:[%s6571_s7 + $0x80] sm:$0xf] }
 0x719   : > { %3721 = vrot.lane.b32.xlu0 %v3716_v29, %s5395_s24 }
 0x720   : > { %3719 = vrot.lane.b32.xlu2 %v3715_v33, %s5395_s24  ;;  %3717 = vrot.lane.b32.xlu1 %v3714_v7, %s5395_s24 }
 0x721   : > { %3872 = vperm.xlu0 %5361, %v5248_v37  }
 0x728   : > { %3860 = vperm.xlu2 %5363, %v5247_v22   ;;  %3890 = vperm.xlu1 %5362, %v5250_v39  }
 0x729   : > { %4016 = vperm.xlu0 %5361, %v5261_v40  }
 0x730   : > { %3899 = vperm.xlu2 %5363, %v5251_v41   ;;  %4093 = vperm.xlu1 %5362, %v5268_v44   ;;  %v5229_v44 = vld [vmem:[%s6571_s7 + $0x84] sm:$0xf] }
 0x731   : > { %4102 = vperm.xlu0 %5361, %v5269_v45  }
 0x732   : > { %v3247_v52 = vpop.permute.xlu2 %3246 }
 0x738   : > { %4025 = vperm.xlu2 %5363, %v5262_v46   ;;  %3849 = vperm.xlu1 %5362, %v5244_v49  }
 0x739   : > { %4179 = vperm.xlu0 %5361, %v5276_v62  }
 0x73a   : > { %v3310_v58 = vpop.permute.xlu2 %3309 }
 0x740   : > { %4170 = vperm.xlu2 %5363, %v5275_v55   ;;  %4247 = vperm.xlu1 %5362, %v5282_v56   ;;  %v5239_v56 = vld [vmem:[%s6571_s7 + $0x8c] sm:$0xf] }
 0x742   : > { %v3379_v48 = vpop.permute.xlu2 %3378 }
 0x74a   : > { %v3245_v61 = vpop.permute.xlu1 %3244  ;;  %v3450_v1 = vpop.permute.xlu2 %3449 }
 0x74b   : > { %v3249_v3 = vpop.permute.xlu0 %3248  ;;  %v3250_v6 = vsel %vm518_vm11, %v3245_v61, %v3247_v52 }
 0x74c   : > { %v3251_v53 = vsel %vm518_vm11, %v3247_v52, %v3249_v3  ;;  %5201 = vmatpush.msk.msra.mxu2 %vm413_vm0, %v3250_v6 }
 0x74d   : > { %5203 = vmatpush.msk.msra.mxu3 %vm413_vm0, %v3251_v53  ;;  %5202 = vmatmul.msk.f32.vlgmr.msra.gmra.mxu2 %vm409_vm2, %v5200_v2  ;;  %v5234_v53 = vld [vmem:[%s6571_s7 + $0x88] sm:$0xf] }
 0x74e   : > { %5204 = vmatmul.msk.f32.vlgmr.msra.gmra.mxu3 %vm409_vm2, %v5200_v2 }
 0x752   : > { %v3308_v43 = vpop.permute.xlu1 %3307 }
 0x753   : > { %v3312_v63 = vpop.permute.xlu0 %3311  ;;  %v3313_v13 = vsel %vm582_vm12, %v3308_v43, %v3310_v58 }
 0x754   : > { %v3314_v15 = vsel %vm582_vm12, %v3310_v58, %v3312_v63  ;;  %5205 = vmatpush.msk.msrb.mxu0 %vm413_vm0, %v3313_v13 }
 0x755   : > { %5207 = vmatpush.msk.msrb.mxu1 %vm413_vm0, %v3314_v15  ;;  %5206 = vmatmul.msk.f32.vlgmr.msrb.gmra.mxu0 %vm409_vm2, %v5199_v14 }
 0x756   : > { %5208 = vmatmul.msk.f32.vlgmr.msrb.gmra.mxu1 %vm409_vm2, %v5199_v14 }
 0x75a   : > { %v3377_v20 = vpop.permute.xlu1 %3376  ;;  %v3578_v32 = vpop.permute.xlu2 %3577 }
 0x75b   : > { %v3381_v23 = vpop.permute.xlu0 %3380  ;;  %v3382_v9 = vsel %vm664_vm10, %v3377_v20, %v3379_v48  ;;  %v5365_v20 = vld [vmem:[%s5514_s26] sm:$0xff] }
 0x75c   : > { %v3383_v24 = vsel %vm664_vm10, %v3379_v48, %v3381_v23  ;;  %5210 = vmatpush.msk.msrb.mxu2 %vm413_vm0, %v3382_v9  ;;  %v6364_v9 = vstv %s5245_s27  ;;  %s5246_s27 = sld [smem:[#allocation3 + $0x201]] }
 0x75d   : > { %5212 = vmatpush.msk.msrb.mxu3 %vm413_vm0, %v3383_v24  ;;  %5211 = vmatmul.msk.f32.vlgmr.msrb.gmra.mxu2 %vm409_vm2, %v5209_v28 }
 0x75e   : > { %5220 = vmatpush.msk.msra.mxu2 %vm413_vm0, %v6221_v11  ;;  %5213 = vmatmul.msk.f32.vlgmr.msrb.gmra.mxu3 %vm409_vm2, %v5209_v28  ;;  %v5219_v11 = vld [vmem:[%s6571_s7 + $0x7c] sm:$0xf] }
 0x75f   : > { %5222 = vmatpush.msk.msra.mxu3 %vm413_vm0, %v6223_v47 }
 0x762   : > { %v3448_v29 = vpop.permute.xlu1 %3447  ;;  %v3649_v22 = vpop.permute.xlu2 %3648 }
 0x763   : > { %v3452_v7 = vpop.permute.xlu0 %3451  ;;  %v3453_v33 = vsel %vm748_vm9, %v3448_v29, %v3450_v1 }
 0x764   : > { %v3454_v36 = vsel %vm748_vm9, %v3450_v1, %v3452_v7  ;;  %5215 = vmatpush.msk.msra.mxu0 %vm413_vm0, %v3453_v33 }
 0x765   : > { %5217 = vmatpush.msk.msra.mxu1 %vm413_vm0, %v3454_v36  ;;  %5216 = vmatmul.msk.f32.vlgmr.msra.gmra.mxu0 %vm409_vm2, %v5214_v34 }
 0x766   : > { %5218 = vmatmul.msk.f32.vlgmr.msra.gmra.mxu1 %vm409_vm2, %v5214_v34  ;;  %5221 = vmatmul.msk.f32.vlgmr.msra.gmra.mxu2 %vm409_vm2, %v5219_v11 }
 0x767   : > { %5223 = vmatmul.msk.f32.vlgmr.msra.gmra.mxu3 %vm409_vm2, %v5219_v11 }
 0x76b   : > { %v3580_v47 = vpop.permute.xlu0 %3579 }
 0x76c   : > { %v3582_v37 = vsel %vm726_vm8, %v3578_v32, %v3580_v47 }
 0x76d   : > { %5227 = vmatpush.msk.msrb.mxu1 %vm413_vm0, %v3582_v37 }
 0x76e   : > { %5228 = vmatmul.msk.f32.vlgmr.msrb.gmra.mxu1 %vm409_vm2, %v5224_v25 }
 0x772   : > { %v3576_v39 = vpop.permute.xlu1 %3575  ;;  %v3791_v46 = vpop.permute.xlu2 %3790 }
 0x773   : > { %v3651_v40 = vpop.permute.xlu0 %3650  ;;  %v3581_v41 = vsel %vm726_vm8, %v3576_v39, %v3578_v32 }
 0x774   : > { %v3653_v45 = vsel %vm642_vm7, %v3649_v22, %v3651_v40  ;;  %5225 = vmatpush.msk.msrb.mxu0 %vm413_vm0, %v3581_v41 }
 0x775   : > { %5232 = vmatpush.msk.msrb.mxu3 %vm413_vm0, %v3653_v45  ;;  %5226 = vmatmul.msk.f32.vlgmr.msrb.gmra.mxu0 %vm409_vm2, %v5224_v25 }
 0x776   : > { %5233 = vmatmul.msk.f32.vlgmr.msrb.gmra.mxu3 %vm409_vm2, %v5229_v44 }
 0x77a   : > { %v3647_v49 = vpop.permute.xlu1 %3646  ;;  %v3720_v52 = vpop.permute.xlu2 %3719 }
 0x77b   : > { %v3652_v62 = vsel %vm642_vm7, %v3647_v49, %v3649_v22 }
 0x77c   : > { %5230 = vmatpush.msk.msrb.mxu2 %vm413_vm0, %v3652_v62 }
 0x77d   : > { %5231 = vmatmul.msk.f32.vlgmr.msrb.gmra.mxu2 %vm409_vm2, %v5229_v44 }
 0x782   : > { %v3861_v61 = vpop.permute.xlu2 %3860 }
 0x783   : > { %v3793_v55 = vpop.permute.xlu0 %3792  ;;  %v3865_v43 = vperm.slane %v3861_v61, %v5505_v35 }
 0x784   : > { %v3795_v58 = vsel %vm481_vm6, %v3791_v46, %v3793_v55 }
 0x785   : > { %5242 = vmatpush.msk.msra.mxu3 %vm413_vm0, %v3795_v58  ;;  %v3867_v1 = vmul.f32 %v5365_v20, %v3865_v43  ;;  %v5270_v43 = vld [vmem:[%s6569_s5 + $0x5c] sm:$0xf] }
 0x786   : > { %5243 = vmatmul.msk.f32.vlgmr.msra.gmra.mxu3 %vm409_vm2, %v5239_v56 }
 0x78a   : > { %v3789_v2 = vpop.permute.xlu1 %3788  ;;  %v3900_v13 = vpop.permute.xlu2 %3899 }
 0x78b   : > { %v3722_v3 = vpop.permute.xlu0 %3721  ;;  %v3794_v6 = vsel %vm481_vm6, %v3789_v2, %v3791_v46 }
 0x78c   : > { %v3724_v48 = vsel %vm496_vm5, %v3720_v52, %v3722_v3  ;;  %5240 = vmatpush.msk.msra.mxu2 %vm413_vm0, %v3794_v6  ;;  %v5252_v6 = vld [vmem:[%s6569_s5 + $0x54] sm:$0xf] }
 0x78d   : > { %5237 = vmatpush.msk.msra.mxu1 %vm413_vm0, %v3724_v48  ;;  %5241 = vmatmul.msk.f32.vlgmr.msra.gmra.mxu2 %vm409_vm2, %v5239_v56 }
 0x78e   : > { %5238 = vmatmul.msk.f32.vlgmr.msra.gmra.mxu1 %vm409_vm2, %v5234_v53 }
 0x792   : > { %v3718_v63 = vpop.permute.xlu1 %3717  ;;  %v4026_v11 = vpop.permute.xlu2 %4025 }
 0x793   : > { %v3873_v14 = vpop.permute.xlu0 %3872  ;;  %v3723_v15 = vsel %vm496_vm5, %v3718_v63, %v3720_v52 }
 0x794   : > { %v3877_v23 = vperm.slane %v3873_v14, %v5505_v35  ;;  %5235 = vmatpush.msk.msra.mxu0 %vm413_vm0, %v3723_v15  ;;  %v5263_v14 = vld [vmem:[%s6569_s5 + $0x58] sm:$0xf] }
 0x795   : > { %5236 = vmatmul.msk.f32.vlgmr.msra.gmra.mxu0 %vm409_vm2, %v5234_v53 }
 0x796   : > { %v3879_v24 = vadd.f32 %v3877_v23, %v3867_v1 }
 0x798   : > { %vm3880_vm1 = vcmp.ge.f32.partialorder %v3879_v24, 0.0  ;;  %v3882_v28 = vmul.f32 %v6364_v9, %v3879_v24 }
 0x79a   : > { %v3883_v29 = vsel %vm3880_vm1, %v3879_v24, %v3882_v28  ;;  %v3891_v32 = vpop.permute.xlu1 %3890 }
 0x79b   : > { %3962 = vst [vmem:[#allocation1] ss:$2 sm:$0xff] %v3883_v29  ;;  %v4017_v7 = vpop.permute.xlu0 %4016  ;;  %v3893_v33 = vmul.f32 %v3891_v32, %v5764_v57  ;;  %v3894_v34 = vmul.f32 %v3891_v32, %v5760_v42 }
 0x79c   : > { %v4019_v35 = vmul.f32 %v4017_v7, %v5968_v31  ;;  %v4020_v36 = vmul.f32 %v4017_v7, %v5961_v0 }
 0x79d   : > { %v3902_v47 = vadd.f32 %v3900_v13, %v3893_v33  ;;  %v3903_v25 = vadd.f32 %v3900_v13, %v3894_v34 }
 0x79e   : > { %v4028_v37 = vadd.f32 %v4026_v11, %v4019_v35  ;;  %v4029_v22 = vadd.f32 %v4026_v11, %v4020_v36 }
 0x79f   : > { %v3906_v39 = vmul.f32 %v3902_v47, %v6364_v9  ;;  %v3907_v40 = vmul.f32 %v3903_v25, %v6364_v9  ;;  %vm3904_vm3 = vcmp.ge.f32.partialorder %v3902_v47, 0.0  ;;  %vm3905_vm4 = vcmp.ge.f32.partialorder %v3903_v25, 0.0 }
 0x7a0   : > { %v4032_v41 = vmul.f32 %v4028_v37, %v6364_v9  ;;  %v4033_v57 = vmul.f32 %v4029_v22, %v6364_v9  ;;  %vm4030_vm13 = vcmp.ge.f32.partialorder %v4028_v37, 0.0  ;;  %vm4031_vm14 = vcmp.ge.f32.partialorder %v4029_v22, 0.0 }
 0x7a1   : > { %v3908_v42 = vsel %vm3904_vm3, %v3902_v47, %v3906_v39  ;;  %v3909_v31 = vsel %vm3905_vm4, %v3903_v25, %v3907_v40 }
 0x7a2   : > { %5253 = vmatpush.msk.msrb.mxu0 %vm413_vm0, %v3908_v42  ;;  %5255 = vmatpush.msk.msrb.mxu1 %vm413_vm0, %v3909_v31  ;;  %v4094_v0 = vpop.permute.xlu1 %4093  ;;  %v3963_v44 = vld.sshfl [vmem:[#allocation1] sm:$0xff pattern:$0x75316420]  ;;  %v3964_v45 = vld.sshfl [vmem:[#allocation1 + $0x8] sm:$0xff pattern:$0x75316420]  ;;  %v4034_v46 = vsel %vm4030_vm13, %v4028_v37, %v4032_v41  ;;  %v4035_v49 = vsel %vm4031_vm14, %v4029_v22, %v4033_v57 }
 0x7a3   : > { %v4096_v62 = vmul.f32 %v4094_v0, %v6183_v8  ;;  %v4097_v52 = vmul.f32 %v4094_v0, %v6176_v54  ;;  %5257 = vmatpush.msk.msrb.mxu2 %vm413_vm0, %v3963_v44  ;;  %5259 = vmatpush.msk.msrb.mxu3 %vm413_vm0, %v3964_v45  ;;  %v4103_v55 = vpop.permute.xlu0 %4102  ;;  %v5249_v54 = vld [vmem:[%s6569_s5 + $0x50] sm:$0xf] }
 0x7a4   : > { %5264 = vmatpush.msk.msra.mxu0 %vm413_vm0, %v4034_v46  ;;  %5266 = vmatpush.msk.msra.mxu1 %vm413_vm0, %v4035_v49  ;;  %v4171_v46 = vpop.permute.xlu2 %4170 }
 0x7a5   : > { %v4105_v56 = vadd.f32 %v4103_v55, %v4096_v62  ;;  %v4106_v58 = vadd.f32 %v4103_v55, %v4097_v52  ;;  %5260 = vmatmul.msk.f32.vlgmr.msrb.gmra.mxu3 %vm409_vm2, %v5249_v54  ;;  %5258 = vmatmul.msk.f32.vlgmr.msrb.gmra.mxu2 %vm409_vm2, %v5249_v54  ;;  %v5277_v54 = vld [vmem:[%s6569_s5 + $0x60] sm:$0xf] }
 0x7a6   : > { %5256 = vmatmul.msk.f32.vlgmr.msrb.gmra.mxu1 %vm409_vm2, %v5252_v6  ;;  %5254 = vmatmul.msk.f32.vlgmr.msrb.gmra.mxu0 %vm409_vm2, %v5252_v6 }
 0x7a7   : > { %v4109_v61 = vmul.f32 %v4105_v56, %v6364_v9  ;;  %v4110_v2 = vmul.f32 %v4106_v58, %v6364_v9  ;;  %vm4107_vm15 = vcmp.ge.f32.partialorder %v4105_v56, 0.0  ;;  %vm4108_vm1 = vcmp.ge.f32.partialorder %v4106_v58, 0.0 }
 0x7a9   : > { %v4111_v8 = vsel %vm4107_vm15, %v4105_v56, %v4109_v61  ;;  %v4112_v3 = vsel %vm4108_vm1, %v4106_v58, %v4110_v2 }
 0x7aa   : > { %5271 = vmatpush.msk.msra.mxu2 %vm413_vm0, %v4111_v8  ;;  %5273 = vmatpush.msk.msra.mxu3 %vm413_vm0, %v4112_v3  ;;  %v3850_v0 = vpop.permute.xlu1 %3849 }
 0x7ab   : > { %v4180_v56 = vpop.permute.xlu0 %4179 }
 0x7ad   : > { %5274 = vmatmul.msk.f32.vlgmr.msra.gmra.mxu3 %vm409_vm2, %v5270_v43  ;;  %5272 = vmatmul.msk.f32.vlgmr.msra.gmra.mxu2 %vm409_vm2, %v5270_v43 }
 0x7ae   : > { %5267 = vmatmul.msk.f32.vlgmr.msra.gmra.mxu1 %vm409_vm2, %v5263_v14  ;;  %5265 = vmatmul.msk.f32.vlgmr.msra.gmra.mxu0 %vm409_vm2, %v5263_v14 }
 0x7d0   : > { %v3276_v48 = vpop.f32.mrf.mxu2 }
 0x7d1   : > { %v3296_v53 = vpop.f32.mrf.mxu3 }
 0x7d2   : > { %v3339_v20 = vpop.f32.mrf.mxu0 }
 0x7d3   : > { %v3359_v63 = vpop.f32.mrf.mxu1  ;;  %v3340_v32 = vadd.f32 %v3339_v20, %v3276_v48 }
 0x7d4   : > { %v3360_v15 = vadd.f32 %v3359_v63, %v3296_v53 }
 0x7e0   : > { %v3408_v1 = vpop.f32.mrf.mxu2 }
 0x7e1   : > { %v3428_v13 = vpop.f32.mrf.mxu3  ;;  %v3431_v35 = vadd.f32 %v3408_v1, %v3340_v32 }
 0x7e2   : > { %v3432_v28 = vadd.f32 %v3428_v13, %v3360_v15  ;;  %v3479_v7 = vpop.f32.mrf.mxu0 }
 0x7e3   : > { %v3499_v23 = vpop.f32.mrf.mxu1  ;;  %v3502_v25 = vadd.f32 %v3479_v7, %v3431_v35 }
 0x7e4   : > { %v3503_v29 = vadd.f32 %v3499_v23, %v3432_v28 }
 0x7e9   : > { %v3536_v33 = vpop.f32.mrf.mxu2 }
 0x7ea   : > { %v3556_v24 = vpop.f32.mrf.mxu3  ;;  %v3559_v40 = vadd.f32 %v3536_v33, %v3502_v25 }
 0x7eb   : > { %v3560_v34 = vadd.f32 %v3556_v24, %v3503_v29  ;;  %v3627_v36 = vpop.f32.mrf.mxu1 }
 0x7ed   : > { %v3631_v47 = vadd.f32 %v3627_v36, %v3560_v34 }
 0x7f2   : > { %v3607_v37 = vpop.f32.mrf.mxu0 }
 0x7f3   : > { %v3630_v44 = vadd.f32 %v3607_v37, %v3559_v40 }
 0x7f9   : > { %v3698_v11 = vpop.f32.mrf.mxu3 }
 0x7fa   : > { %v3702_v22 = vadd.f32 %v3698_v11, %v3631_v47  ;;  %v4254_v47 = vstv %s5246_s27 }
 0x800   : > { %v3678_v39 = vpop.f32.mrf.mxu2 }
 0x801   : > { %v3701_v49 = vadd.f32 %v3678_v39, %v3630_v44 }
 0x809   : > { %v3840_v57 = vpop.f32.mrf.mxu3 }
 0x80b   : > { %v3769_v41 = vpop.f32.mrf.mxu1 }
 0x80c   : > { %v3773_v42 = vadd.f32 %v3769_v41, %v3702_v22 }
 0x80e   : > { %v3844_v31 = vadd.f32 %v3840_v57, %v3773_v42 }
 0x810   : > { %v3853_v45 = vadd.f32 %v3850_v0, %v3844_v31  ;;  %v3820_v55 = vpop.f32.mrf.mxu2 }
 0x812   : > { %v4174_v62 = vmul.f32 %v4171_v46, %v3853_v45  ;;  %v3749_v52 = vpop.f32.mrf.mxu0 }
 0x813   : > { %v3772_v58 = vadd.f32 %v3749_v52, %v3701_v49 }
 0x814   : > { %v4183_v61 = vadd.f32 %v4180_v56, %v4174_v62 }
 0x815   : > { %v3843_v2 = vadd.f32 %v3820_v55, %v3772_v58 }
 0x816   : > { %vm4185_vm3 = vcmp.ge.f32.partialorder %v4183_v61, 0.0  ;;  %v4187_v8 = vmul.f32 %v4183_v61, %v6364_v9 }
 0x817   : > { %v3852_v3 = vadd.f32 %v3850_v0, %v3843_v2 }
 0x818   : > { %v4189_v6 = vsel %vm4185_vm3, %v4183_v61, %v4187_v8 }
 0x819   : > { %v4173_v53 = vmul.f32 %v4171_v46, %v3852_v3  ;;  %5280 = vmatpush.msk.msrb.mxu1 %vm413_vm0, %v4189_v6 }
 0x81a   : > { %5281 = vmatmul.msk.f32.vlgmr.msrb.gmra.mxu1 %vm409_vm2, %v5277_v54 }
 0x81b   : > { %v4182_v48 = vadd.f32 %v4180_v56, %v4173_v53 }
 0x81d   : > { %vm4184_vm4 = vcmp.ge.f32.partialorder %v4182_v48, 0.0  ;;  %v4186_v43 = vmul.f32 %v4182_v48, %v6364_v9  ;;  %v4248_v9 = vpop.permute.xlu1 %4247 }
 0x81f   : > { %v4188_v63 = vsel %vm4184_vm4, %v4182_v48, %v4186_v43 }
 0x820   : > { %5278 = vmatpush.msk.msrb.mxu0 %vm413_vm0, %v4188_v63 }
 0x821   : > { %5279 = vmatmul.msk.f32.vlgmr.msrb.gmra.mxu0 %vm409_vm2, %v5277_v54 }
 0x823   : > { %v3958_v13 = vpop.f32.mrf.mxu1  ;;  %v3938_v15 = vpop.f32.mrf.mxu0 }
 0x828   : > { %v4009_v14 = vpop.f32.mrf.mxu3  ;;  %v3989_v23 = vpop.f32.mrf.mxu2 }
 0x829   : > { %v4010_v1 = vadd.f32 %v4009_v14, %v3958_v13  ;;  %v3990_v29 = vadd.f32 %v3989_v23, %v3938_v15  ;;  %v4672_v13 = vld [vmem:[#allocation2 + $0xc] sm:$0xf] }
 0x82a   : > { %v4674_v15 = vmul.f32 %v4672_v13, %v5603_v60  ;;  %v4814_v60 = vld [vmem:[#allocation2 + $0xc] sm:$0xf]  ;;  %v5323_v13 = vld [vmem:[%s6571_s7 + $0xb0] sm:$0xf] }
 0x82b   : > { %v4084_v20 = vpop.f32.mrf.mxu1  ;;  %v4064_v32 = vpop.f32.mrf.mxu0 }
 0x82c   : > { %v4088_v24 = vadd.f32 %v4084_v20, %v4010_v1  ;;  %v4087_v35 = vadd.f32 %v4064_v32, %v3990_v29  ;;  %v4743_v1 = vld [vmem:[#allocation2 + $0xc] sm:$0xf] }
 0x830   : > { %v4161_v28 = vpop.f32.mrf.mxu3  ;;  %v4141_v36 = vpop.f32.mrf.mxu2 }
 0x831   : > { %v4165_v7 = vadd.f32 %v4161_v28, %v4088_v24  ;;  %v4164_v25 = vadd.f32 %v4141_v36, %v4087_v35  ;;  %v4745_v24 = vmul.f32 %v4743_v1, %v5613_v4  ;;  %v5318_v1 = vld [vmem:[%s6571_s7 + $0xac] sm:$0xf] }
 0x897   : > { %v4238_v33 = vpop.f32.mrf.mxu1 }
 0x898   : > { %v4242_v34 = vadd.f32 %v4238_v33, %v4165_v7  ;;  %v4816_v7 = vmul.f32 %v4814_v60, %v5629_v19 }
 0x89a   : > { %v4251_v11 = vadd.f32 %v4248_v9, %v4242_v34 }
 0x89c   : > { %v4256_v37 = vmul.f32 %v4254_v47, %v4251_v11  ;;  %vm4253_vm13 = vcmp.ge.f32.partialorder %v4251_v11, 0.0 }
 0x89e   : > { %v4218_v22 = vpop.f32.mrf.mxu0  ;;  %v4258_v40 = vsel %vm4253_vm13, %v4251_v11, %v4256_v37 }
 0x89f   : > { %v4241_v39 = vadd.f32 %v4218_v22, %v4164_v25  ;;  %v4261_v42 = vrot.slane %v4258_v40, 4  ;;  %v5284_v25 = vld [vmem:[%s6571_s7 + $0x94] sm:$0xf] }
 0x8a1   : > { %v4250_v41 = vadd.f32 %v4248_v9, %v4241_v39 }
 0x8a3   : > { %vm4252_vm14 = vcmp.ge.f32.partialorder %v4250_v41, 0.0  ;;  %v4255_v57 = vmul.f32 %v4254_v47, %v4250_v41 }
 0x8a5   : > { %v4257_v31 = vsel %vm4252_vm14, %v4250_v41, %v4255_v57 }
 0x8a6   : > { %v6418_v0 = vsel %vm413_vm0, %v4257_v31, %v4261_v42  ;;  %v5283_v31 = vld [vmem:[%s6571_s7 + $0x90] sm:$0xf] }
 0x8a7   : > { %4264 = vst [vmem:[#allocation2 + $0x4] sm:$0xff] %v6418_v0  ;;  %v4544_v48 = vmul.f32 %v6418_v0, %v5589_v50  ;;  %v4602_v14 = vmul.f32 %v6418_v0, %v5601_v59  ;;  %v4673_v23 = vmul.f32 %v6418_v0, %v5617_v5  ;;  %v4744_v32 = vmul.f32 %v6418_v0, %v5627_v17 }
 0x8a8   : > { %v4815_v34 = vmul.f32 %v6418_v0, %v5638_v27  ;;  %v5328_v27 = vld [vmem:[%s6572_s8 + $0x10] sm:$0xf] }
 0x8ae   : > { %v4265_v44 = vld [vmem:[#allocation2] sm:$0xff]  ;;  %v4266_v45 = vld [vmem:[#allocation2 + $0x8] sm:$0xf] }
 0x8af   : > { %v4271_v46 = vmul.f32 %v4265_v44, %v5548_v12  ;;  %v4272_v49 = vmul.f32 %v4266_v45, %v5544_v10  ;;  %v4267_v62 = vmul.f32 %v4265_v44, %v5556_v18  ;;  %v4268_v52 = vmul.f32 %v4266_v45, %v5551_v16  ;;  %v4402_v12 = vld [vmem:[#allocation2 + $0x8] sm:$0xf] }
 0x8b0   : > { %v4403_v10 = vmul.f32 %v4265_v44, %v5567_v26  ;;  %v4404_v61 = vmul.f32 %v4402_v12, %v5559_v21  ;;  %v4473_v16 = vld [vmem:[#allocation2 + $0x8] sm:$0xf]  ;;  %v4474_v3 = vmul.f32 %v4265_v44, %v5581_v38  ;;  %v4601_v21 = vld [vmem:[#allocation2 + $0xc] sm:$0xf] }
 0x8b1   : > { %4277 = vst [vmem:[#allocation1] ss:$2 sm:$0xff] %v4271_v46  ;;  %v4475_v54 = vmul.f32 %v4473_v16, %v5572_v30  ;;  %v4603_v43 = vmul.f32 %v4601_v21, %v5591_v51  ;;  %v5308_v16 = vld [vmem:[%s6571_s7 + $0xa4] sm:$0xf]  ;;  %v5313_v21 = vld [vmem:[%s6571_s7 + $0xa8] sm:$0xf] }
 0x8b2   : > { %4279 = vst [vmem:[#allocation1 + $0x10] ss:$2 sm:$0xff] %v4272_v49 }
 0x8b8   : > { %v4281_v55 = vld.sshfl [vmem:[#allocation1 + $0x8] sm:$0xff pattern:$0x75316420]  ;;  %v4280_v56 = vld.sshfl [vmem:[#allocation1] sm:$0xff pattern:$0x75316420] }
 0x8b9   : > { %v4282_v58 = vld.sshfl [vmem:[#allocation1 + $0x10] sm:$0xff pattern:$0x75316420]  ;;  %4285 = vrot.lane.b32.xlu2 %v4281_v55, %s5400_s29  ;;  %4283 = vrot.lane.b32.xlu1 %v4280_v56, %s5400_s29  ;;  %4340 = vst [vmem:[#allocation1] ss:$2 sm:$0xff] %v4267_v62 }
 0x8ba   : > { %4287 = vrot.lane.b32.xlu0 %v4282_v58, %s5400_s29  ;;  %4342 = vst [vmem:[#allocation1 + $0x10] ss:$2 sm:$0xff] %v4268_v52  ;;  %v5293_v52 = vld [vmem:[%s6571_s7 + $0x98] sm:$0xf] }
 0x8c0   : > { %v4344_v2 = vld.sshfl [vmem:[#allocation1 + $0x8] sm:$0xff pattern:$0x75316420]  ;;  %v4343_v18 = vld.sshfl [vmem:[#allocation1] sm:$0xff pattern:$0x75316420] }
 0x8c1   : > { %v4345_v8 = vld.sshfl [vmem:[#allocation1 + $0x10] sm:$0xff pattern:$0x75316420]  ;;  %4348 = vrot.lane.b32.xlu2 %v4344_v2, %s5401_s10  ;;  %4346 = vrot.lane.b32.xlu1 %v4343_v18, %s5401_s10  ;;  %4409 = vst [vmem:[#allocation1] ss:$2 sm:$0xff] %v4403_v10 }
 0x8c2   : > { %4350 = vrot.lane.b32.xlu0 %v4345_v8, %s5401_s10  ;;  %4411 = vst [vmem:[#allocation1 + $0x10] ss:$2 sm:$0xff] %v4404_v61  ;;  %v5298_v10 = vld [vmem:[%s6571_s7 + $0x9c] sm:$0xf]  ;;  %v5303_v2 = vld [vmem:[%s6571_s7 + $0xa0] sm:$0xf] }
 0x8c8   : > { %v4413_v6 = vld.sshfl [vmem:[#allocation1 + $0x8] sm:$0xff pattern:$0x75316420]  ;;  %v4412_v26 = vld.sshfl [vmem:[#allocation1] sm:$0xff pattern:$0x75316420] }
 0x8c9   : > { %v4414_v53 = vld.sshfl [vmem:[#allocation1 + $0x10] sm:$0xff pattern:$0x75316420]  ;;  %4417 = vrot.lane.b32.xlu2 %v4413_v6, %s5403_s12  ;;  %4415 = vrot.lane.b32.xlu1 %v4412_v26, %s5403_s12  ;;  %4480 = vst [vmem:[#allocation1] ss:$2 sm:$0xff] %v4474_v3 }
 0x8ca   : > { %4419 = vrot.lane.b32.xlu0 %v4414_v53, %s5403_s12  ;;  %4482 = vst [vmem:[#allocation1 + $0x10] ss:$2 sm:$0xff] %v4475_v54 }
 0x8d0   : > { %v4484_v38 = vld.sshfl [vmem:[#allocation1 + $0x8] sm:$0xff pattern:$0x75316420]  ;;  %v4483_v63 = vld.sshfl [vmem:[#allocation1] sm:$0xff pattern:$0x75316420] }
 0x8d1   : > { %v4485_v30 = vld.sshfl [vmem:[#allocation1 + $0x10] sm:$0xff pattern:$0x75316420]  ;;  %4488 = vrot.lane.b32.xlu2 %v4484_v38, %s5398_s19  ;;  %4486 = vrot.lane.b32.xlu1 %v4483_v63, %s5398_s19  ;;  %4548 = vst [vmem:[#allocation1] ss:$2 sm:$0xff] %v4544_v48 }
 0x8d2   : > { %4490 = vrot.lane.b32.xlu0 %v4485_v30, %s5398_s19  ;;  %4610 = vst [vmem:[#allocation1 + $0x10] ss:$2 sm:$0xff] %v4603_v43  ;;  %s6575_s19 = sshll.u32 %s6577_s21, 2 }
 0x8d8   : > { %v6447_v50 = vld.sshfl [vmem:[#allocation1] sm:$0xff pattern:$0x75316420]  ;;  %v6449_v51 = vld.sshfl [vmem:[#allocation1 + $0x8] sm:$0xff pattern:$0x75316420] }
 0x8d9   : > { %v4613_v20 = vld.sshfl [vmem:[#allocation1 + $0x10] sm:$0xff pattern:$0x75316420]  ;;  %4608 = vst [vmem:[#allocation1] ss:$2 sm:$0xff] %v4602_v14 }
 0x8da   : > { %4618 = vrot.lane.b32.xlu0 %v4613_v20, %s5397_s17  ;;  %4681 = vst [vmem:[#allocation1 + $0x10] ss:$2 sm:$0xff] %v4674_v15 }
 0x8e0   : > { %v4612_v28 = vld.sshfl [vmem:[#allocation1 + $0x8] sm:$0xff pattern:$0x75316420]  ;;  %v4611_v29 = vld.sshfl [vmem:[#allocation1] sm:$0xff pattern:$0x75316420] }
 0x8e1   : > { %v4684_v59 = vld.sshfl [vmem:[#allocation1 + $0x10] sm:$0xff pattern:$0x75316420]  ;;  %4616 = vrot.lane.b32.xlu2 %v4612_v28, %s5397_s17  ;;  %4614 = vrot.lane.b32.xlu1 %v4611_v29, %s5397_s17  ;;  %4679 = vst [vmem:[#allocation1] ss:$2 sm:$0xff] %v4673_v23 }
 0x8e2   : > { %4689 = vrot.lane.b32.xlu0 %v4684_v59, %s5402_s11  ;;  %4752 = vst [vmem:[#allocation1 + $0x10] ss:$2 sm:$0xff] %v4745_v24 }
 0x8e8   : > { %v4683_v5 = vld.sshfl [vmem:[#allocation1 + $0x8] sm:$0xff pattern:$0x75316420]  ;;  %v4682_v33 = vld.sshfl [vmem:[#allocation1] sm:$0xff pattern:$0x75316420] }
 0x8e9   : > { %4687 = vrot.lane.b32.xlu2 %v4683_v5, %s5402_s11  ;;  %4685 = vrot.lane.b32.xlu1 %v4682_v33, %s5402_s11  ;;  %4750 = vst [vmem:[#allocation1] ss:$2 sm:$0xff] %v4744_v32  ;;  %v4755_v4 = vld.sshfl [vmem:[#allocation1 + $0x10] sm:$0xff pattern:$0x75316420] }
 0x8ea   : > { %4823 = vst [vmem:[#allocation1 + $0x10] ss:$2 sm:$0xff] %v4816_v7 }
 0x8f0   : > { %v4753_v9 = vld.sshfl [vmem:[#allocation1] sm:$0xff pattern:$0x75316420]  ;;  %v4754_v35 = vld.sshfl [vmem:[#allocation1 + $0x8] sm:$0xff pattern:$0x75316420] }
 0x8f1   : > { %v4826_v36 = vld.sshfl [vmem:[#allocation1 + $0x10] sm:$0xff pattern:$0x75316420]  ;;  %4821 = vst [vmem:[#allocation1] ss:$2 sm:$0xff] %v4815_v34 }
 0x8f2   : > { %4831 = vrot.lane.b32.xlu0 %v4826_v36, %s5399_s20 }
 0x8f8   : > { %v4825_v17 = vld.sshfl [vmem:[#allocation1 + $0x8] sm:$0xff pattern:$0x75316420]  ;;  %v4824_v19 = vld.sshfl [vmem:[#allocation1] sm:$0xff pattern:$0x75316420] }
 0x8f9   : > { %4829 = vrot.lane.b32.xlu2 %v4825_v17, %s5399_s20  ;;  %4827 = vrot.lane.b32.xlu1 %v4824_v19, %s5399_s20 }
 0x8fa   : > { %4760 = vrot.lane.b32.xlu0 %v4755_v4, %s5395_s24 }
 0x901   : > { %4758 = vrot.lane.b32.xlu2 %v4754_v35, %s5395_s24  ;;  %4756 = vrot.lane.b32.xlu1 %v4753_v9, %s5395_s24  ;;  %s348_s24 = scalar_lea.vmem %s6573_s9, %s6575_s19 }
 0x909   : > { %4888 = vperm.xlu2 %5363, %v5328_v27  }
 0x913   : > { %v4286_v11 = vpop.permute.xlu2 %4285 }
 0x91b   : > { %v4349_v40 = vpop.permute.xlu2 %4348 }
 0x923   : > { %v4418_v44 = vpop.permute.xlu2 %4417 }
 0x92b   : > { %v4284_v47 = vpop.permute.xlu1 %4283  ;;  %v4489_v55 = vpop.permute.xlu2 %4488 }
 0x92c   : > { %v4288_v37 = vpop.permute.xlu0 %4287  ;;  %v4289_v22 = vsel %vm518_vm11, %v4284_v47, %v4286_v11 }
 0x92d   : > { %v4290_v39 = vsel %vm518_vm11, %v4286_v11, %v4288_v37  ;;  %5285 = vmatpush.msk.msrb.mxu2 %vm413_vm0, %v4289_v22 }
 0x92e   : > { %5287 = vmatpush.msk.msrb.mxu3 %vm413_vm0, %v4290_v39  ;;  %5286 = vmatmul.msk.f32.vlgmr.msrb.gmra.mxu2 %vm409_vm2, %v5284_v25 }
 0x92f   : > { %5288 = vmatmul.msk.f32.vlgmr.msrb.gmra.mxu3 %vm409_vm2, %v5284_v25 }
 0x933   : > { %v4347_v41 = vpop.permute.xlu1 %4346 }
 0x934   : > { %v4351_v57 = vpop.permute.xlu0 %4350  ;;  %v4352_v42 = vsel %vm582_vm12, %v4347_v41, %v4349_v40 }
 0x935   : > { %v4353_v0 = vsel %vm582_vm12, %v4349_v40, %v4351_v57  ;;  %5289 = vmatpush.msk.msra.mxu0 %vm413_vm0, %v4352_v42 }
 0x936   : > { %5291 = vmatpush.msk.msra.mxu1 %vm413_vm0, %v4353_v0  ;;  %5290 = vmatmul.msk.f32.vlgmr.msra.gmra.mxu0 %vm409_vm2, %v5283_v31 }
 0x937   : > { %5292 = vmatmul.msk.f32.vlgmr.msra.gmra.mxu1 %vm409_vm2, %v5283_v31 }
 0x93b   : > { %v4416_v45 = vpop.permute.xlu1 %4415  ;;  %v4617_v18 = vpop.permute.xlu2 %4616 }
 0x93c   : > { %v4420_v46 = vpop.permute.xlu0 %4419  ;;  %v4421_v49 = vsel %vm664_vm10, %v4416_v45, %v4418_v44 }
 0x93d   : > { %v4422_v62 = vsel %vm664_vm10, %v4418_v44, %v4420_v46  ;;  %5294 = vmatpush.msk.msra.mxu2 %vm413_vm0, %v4421_v49 }
 0x93e   : > { %5296 = vmatpush.msk.msra.mxu3 %vm413_vm0, %v4422_v62  ;;  %5295 = vmatmul.msk.f32.vlgmr.msra.gmra.mxu2 %vm409_vm2, %v5293_v52 }
 0x93f   : > { %5304 = vmatpush.msk.msrb.mxu2 %vm413_vm0, %v6447_v50  ;;  %5297 = vmatmul.msk.f32.vlgmr.msra.gmra.mxu3 %vm409_vm2, %v5293_v52 }
 0x940   : > { %5306 = vmatpush.msk.msrb.mxu3 %vm413_vm0, %v6449_v51 }
 0x943   : > { %v4487_v56 = vpop.permute.xlu1 %4486  ;;  %v4688_v6 = vpop.permute.xlu2 %4687 }
 0x944   : > { %v4491_v58 = vpop.permute.xlu0 %4490  ;;  %v4492_v12 = vsel %vm748_vm9, %v4487_v56, %v4489_v55 }
 0x945   : > { %v4493_v61 = vsel %vm748_vm9, %v4489_v55, %v4491_v58  ;;  %5299 = vmatpush.msk.msrb.mxu0 %vm413_vm0, %v4492_v12 }
 0x946   : > { %5301 = vmatpush.msk.msrb.mxu1 %vm413_vm0, %v4493_v61  ;;  %5300 = vmatmul.msk.f32.vlgmr.msrb.gmra.mxu0 %vm409_vm2, %v5298_v10 }
 0x947   : > { %5305 = vmatmul.msk.f32.vlgmr.msrb.gmra.mxu2 %vm409_vm2, %v5303_v2  ;;  %5302 = vmatmul.msk.f32.vlgmr.msrb.gmra.mxu1 %vm409_vm2, %v5298_v10 }
 0x948   : > { %5307 = vmatmul.msk.f32.vlgmr.msrb.gmra.mxu3 %vm409_vm2, %v5303_v2 }
 0x94c   : > { %v4619_v8 = vpop.permute.xlu0 %4618 }
 0x94d   : > { %v4621_v3 = vsel %vm726_vm8, %v4617_v18, %v4619_v8 }
 0x94e   : > { %5311 = vmatpush.msk.msra.mxu1 %vm413_vm0, %v4621_v3 }
 0x94f   : > { %5312 = vmatmul.msk.f32.vlgmr.msra.gmra.mxu1 %vm409_vm2, %v5308_v16 }
 0x953   : > { %v4615_v54 = vpop.permute.xlu1 %4614  ;;  %v4830_v63 = vpop.permute.xlu2 %4829 }
 0x954   : > { %v4690_v26 = vpop.permute.xlu0 %4689  ;;  %v4620_v53 = vsel %vm726_vm8, %v4615_v54, %v4617_v18 }
 0x955   : > { %v4692_v48 = vsel %vm642_vm7, %v4688_v6, %v4690_v26  ;;  %5309 = vmatpush.msk.msra.mxu0 %vm413_vm0, %v4620_v53 }
 0x956   : > { %5316 = vmatpush.msk.msra.mxu3 %vm413_vm0, %v4692_v48  ;;  %5310 = vmatmul.msk.f32.vlgmr.msra.gmra.mxu0 %vm409_vm2, %v5308_v16 }
 0x957   : > { %5317 = vmatmul.msk.f32.vlgmr.msra.gmra.mxu3 %vm409_vm2, %v5313_v21 }
 0x95b   : > { %v4686_v43 = vpop.permute.xlu1 %4685  ;;  %v4759_v50 = vpop.permute.xlu2 %4758 }
 0x95c   : > { %v4691_v38 = vsel %vm642_vm7, %v4686_v43, %v4688_v6 }
 0x95d   : > { %5314 = vmatpush.msk.msra.mxu2 %vm413_vm0, %v4691_v38 }
 0x95e   : > { %5315 = vmatmul.msk.f32.vlgmr.msra.gmra.mxu2 %vm409_vm2, %v5313_v21 }
 0x963   : > { %v4889_v46 = vpop.permute.xlu2 %4888 }
 0x964   : > { %v4832_v30 = vpop.permute.xlu0 %4831 }
 0x965   : > { %v4834_v14 = vsel %vm481_vm6, %v4830_v63, %v4832_v30 }
 0x966   : > { %5326 = vmatpush.msk.msrb.mxu3 %vm413_vm0, %v4834_v14 }
 0x967   : > { %5327 = vmatmul.msk.f32.vlgmr.msrb.gmra.mxu3 %vm409_vm2, %v5323_v13 }
 0x96b   : > { %v4828_v15 = vpop.permute.xlu1 %4827 }
 0x96c   : > { %v4761_v51 = vpop.permute.xlu0 %4760  ;;  %v4833_v20 = vsel %vm481_vm6, %v4828_v15, %v4830_v63 }
 0x96d   : > { %v4763_v23 = vsel %vm496_vm5, %v4759_v50, %v4761_v51  ;;  %5324 = vmatpush.msk.msrb.mxu2 %vm413_vm0, %v4833_v20 }
 0x96e   : > { %5321 = vmatpush.msk.msrb.mxu1 %vm413_vm0, %v4763_v23  ;;  %5325 = vmatmul.msk.f32.vlgmr.msrb.gmra.mxu2 %vm409_vm2, %v5323_v13 }
 0x96f   : > { %5322 = vmatmul.msk.f32.vlgmr.msrb.gmra.mxu1 %vm409_vm2, %v5318_v1 }
 0x973   : > { %v4757_v24 = vpop.permute.xlu1 %4756 }
 0x974   : > { %v4762_v28 = vsel %vm496_vm5, %v4757_v24, %v4759_v50 }
 0x975   : > { %5319 = vmatpush.msk.msrb.mxu0 %vm413_vm0, %v4762_v28 }
 0x976   : > { %5320 = vmatmul.msk.f32.vlgmr.msrb.gmra.mxu0 %vm409_vm2, %v5318_v1 }
 0x9b1   : > { %v4315_v59 = vpop.f32.mrf.mxu2 }
 0x9b2   : > { %v4335_v29 = vpop.f32.mrf.mxu3 }
 0x9b3   : > { %v4378_v5 = vpop.f32.mrf.mxu0 }
 0x9b4   : > { %v4398_v60 = vpop.f32.mrf.mxu1  ;;  %v4379_v36 = vadd.f32 %v4378_v5, %v4315_v59 }
 0x9b5   : > { %v4399_v7 = vadd.f32 %v4398_v60, %v4335_v29 }
 0x9c1   : > { %v4447_v33 = vpop.f32.mrf.mxu2 }
 0x9c2   : > { %v4467_v32 = vpop.f32.mrf.mxu3  ;;  %v4470_v11 = vadd.f32 %v4447_v33, %v4379_v36 }
 0x9c3   : > { %v4471_v34 = vadd.f32 %v4467_v32, %v4399_v7  ;;  %v4518_v17 = vpop.f32.mrf.mxu0 }
 0x9c4   : > { %v4538_v4 = vpop.f32.mrf.mxu1  ;;  %v4541_v22 = vadd.f32 %v4518_v17, %v4470_v11 }
 0x9c5   : > { %v4542_v35 = vadd.f32 %v4538_v4, %v4471_v34 }
 0x9ca   : > { %v4575_v19 = vpop.f32.mrf.mxu2 }
 0x9cb   : > { %v4595_v9 = vpop.f32.mrf.mxu3  ;;  %v4598_v57 = vadd.f32 %v4575_v19, %v4541_v22 }
 0x9cc   : > { %v4599_v27 = vadd.f32 %v4595_v9, %v4542_v35  ;;  %v4666_v47 = vpop.f32.mrf.mxu1 }
 0x9ce   : > { %v4670_v37 = vadd.f32 %v4666_v47, %v4599_v27 }
 0x9d3   : > { %v4646_v39 = vpop.f32.mrf.mxu0 }
 0x9d4   : > { %v4669_v44 = vadd.f32 %v4646_v39, %v4598_v57 }
 0x9da   : > { %v4737_v25 = vpop.f32.mrf.mxu3 }
 0x9db   : > { %v4741_v40 = vadd.f32 %v4737_v25, %v4670_v37 }
 0x9e1   : > { %v4717_v41 = vpop.f32.mrf.mxu2 }
 0x9e2   : > { %v4740_v49 = vadd.f32 %v4717_v41, %v4669_v44 }
 0x9ea   : > { %v4879_v0 = vpop.f32.mrf.mxu3 }
 0x9ec   : > { %v4808_v42 = vpop.f32.mrf.mxu1 }
 0x9ed   : > { %v4812_v31 = vadd.f32 %v4808_v42, %v4741_v40 }
 0x9ef   : > { %v4883_v45 = vadd.f32 %v4879_v0, %v4812_v31 }
 0x9f1   : > { %v4859_v52 = vpop.f32.mrf.mxu2  ;;  %v4892_v55 = vadd.f32 %v4889_v46, %v4883_v45 }
 0x9f3   : > { %v4788_v62 = vpop.f32.mrf.mxu0  ;;  %v4895_v12 = vrot.slane %v4892_v55, 4 }
 0x9f4   : > { %v4811_v56 = vadd.f32 %v4788_v62, %v4740_v49 }
 0x9f6   : > { %v4882_v58 = vadd.f32 %v4859_v52, %v4811_v56 }
 0x9f8   : > { %v4891_v10 = vadd.f32 %v4889_v46, %v4882_v58 }
 0x9fa   : > { %v4896_v61 = vsel %vm413_vm0, %v4891_v10, %v4895_v12 }
 0x9fb   : > { %4898 = vst [vmem:[%s348_s24] sm:$0xff] %v4896_v61 }
 0x9fc PF: > { %s20_s30 = sadd.s32 1, %s5391_s30  }
 0x9fd   : > { %p17_p7 = scmp.ge.s32.totalorder %s20_s30, 4  }
 0x9ff   :  { %19 = sbr.rel (!%p17_p7) target bundleno = 1 (0x1), region = 233 }
 0xa04   :  { %4921 = vsyncpa [#allocation4], 1 }
 0xa05   :  { %4923 = vsyncpa [#allocation4 + $0x1], 1 }

</bundles_post_ra>
